<compile_context>
chip_gen: v6e
topology: v6e:2x2x1
jax: 0.10.0
libtpu: 0.0.40
codegen_flags: <defaults>
</compile_context>

<pallas_src>
import functools
import math

import jax
import jax.numpy as jnp
from jax.experimental import pallas as pl
from jax.experimental.pallas import tpu as pltpu


_TILE_M = 512                            # row tile for per-token kernels
_VMEM_LIMIT_BYTES = 64 * 1024 * 1024     # safe on v5e/v6e (128 MiB) and v7x (64 MiB)
_SDPA_VMEM_BUDGET = 16 * 1024 * 1024     # budget used to derive the attention N-tile


def _round_up(n, m):
    return ((n + m - 1) // m) * m


def _pad_axis0(x, rows):
    pad = rows - x.shape[0]
    if pad == 0:
        return x
    return jnp.pad(x, ((0, pad),) + ((0, 0),) * (x.ndim - 1))


def _const_spec(shape):
    # Same block every grid step (weights / biases / LN params): a single VMEM
    # buffer is enough — double-buffering them just burns VMEM.
    return pl.BlockSpec(shape, lambda *_: (0,) * len(shape),
                        pipeline_mode=pl.Buffered(1))


# ---------------------------------------------------------------------------
# Kernels
# ---------------------------------------------------------------------------

def _linear_kernel(x_ref, w_ref, b_ref, o_ref):
    # y = x @ W^T + b ; W already pre-transposed to (K, N) and cast to bf16.
    x = x_ref[...].astype(jnp.bfloat16)
    y = jnp.dot(x, w_ref[...], preferred_element_type=jnp.float32) + b_ref[...]
    o_ref[...] = y.astype(o_ref.dtype)


def linear(x2d, w_t, b, *, out_dtype=jnp.float32, tile_m=_TILE_M):
    """x2d: (M, K), w_t: (K, N) bf16 (= torch_weight.T), b: (N,)."""
    M, K = x2d.shape
    N = w_t.shape[1]
    tm = min(tile_m, _round_up(M, 8))
    Mp = _round_up(M, tm)
    xp = _pad_axis0(x2d, Mp)
    out = pl.pallas_call(
        _linear_kernel,
        out_shape=jax.ShapeDtypeStruct((Mp, N), out_dtype),
        grid=(Mp // tm,),
        in_specs=[
            pl.BlockSpec((tm, K), lambda i: (i, 0)),
            _const_spec((K, N)),
            _const_spec((1, N)),
        ],
        out_specs=pl.BlockSpec((tm, N), lambda i: (i, 0)),
        compiler_params=pltpu.CompilerParams(
            dimension_semantics=("parallel",),
            vmem_limit_bytes=_VMEM_LIMIT_BYTES),
    )(xp, w_t, b.reshape(1, N))
    return out[:M]


def _proj_add_ln_kernel(a_ref, x_ref, w_ref, b_ref, g_ref, bb_ref, o_ref, *, eps):
    # LayerNorm(x + a @ Wout^T + bout) * gamma + beta  (post-norm residual)
    y = jnp.dot(a_ref[...].astype(jnp.bfloat16), w_ref[...],
                preferred_element_type=jnp.float32) + b_ref[...]
    z = x_ref[...] + y
    mu = jnp.mean(z, axis=-1, keepdims=True)
    var = jnp.mean(jnp.square(z - mu), axis=-1, keepdims=True)
    o_ref[...] = (z - mu) * jax.lax.rsqrt(var + eps) * g_ref[...] + bb_ref[...]


def proj_add_ln(a2d, x2d, w_t, b, gamma, beta, *, eps=1e-5, tile_m=_TILE_M):
    M, D = x2d.shape
    tm = min(tile_m, _round_up(M, 8))
    Mp = _round_up(M, tm)
    ap, xp = _pad_axis0(a2d, Mp), _pad_axis0(x2d, Mp)
    out = pl.pallas_call(
        functools.partial(_proj_add_ln_kernel, eps=eps),
        out_shape=jax.ShapeDtypeStruct((Mp, D), jnp.float32),
        grid=(Mp // tm,),
        in_specs=[
            pl.BlockSpec((tm, D), lambda i: (i, 0)),
            pl.BlockSpec((tm, D), lambda i: (i, 0)),
            _const_spec((D, D)),
            _const_spec((1, D)),
            _const_spec((1, D)),
            _const_spec((1, D)),
        ],
        out_specs=pl.BlockSpec((tm, D), lambda i: (i, 0)),
        compiler_params=pltpu.CompilerParams(
            dimension_semantics=("parallel",),
            vmem_limit_bytes=_VMEM_LIMIT_BYTES),
    )(ap, xp, w_t, b.reshape(1, D), gamma.reshape(1, D), beta.reshape(1, D))
    return out[:M]


def _ffn_add_ln_kernel(x_ref, w1_ref, b1_ref, w2_ref, b2_ref, g_ref, bb_ref,
                       o_ref, *, eps):
    # LayerNorm(x + relu(x @ W1^T + b1) @ W2^T + b2) * gamma + beta
    x = x_ref[...]
    h = jnp.dot(x.astype(jnp.bfloat16), w1_ref[...],
                preferred_element_type=jnp.float32) + b1_ref[...]
    h = jnp.maximum(h, 0.0)
    y = jnp.dot(h.astype(jnp.bfloat16), w2_ref[...],
                preferred_element_type=jnp.float32) + b2_ref[...]
    z = x + y
    mu = jnp.mean(z, axis=-1, keepdims=True)
    var = jnp.mean(jnp.square(z - mu), axis=-1, keepdims=True)
    o_ref[...] = (z - mu) * jax.lax.rsqrt(var + eps) * g_ref[...] + bb_ref[...]


def ffn_add_ln(x2d, w1_t, b1, w2_t, b2, gamma, beta, *, eps=1e-5,
               tile_m=_TILE_M):
    M, D = x2d.shape
    F = w1_t.shape[1]
    tm = min(tile_m, _round_up(M, 8))
    Mp = _round_up(M, tm)
    xp = _pad_axis0(x2d, Mp)
    out = pl.pallas_call(
        functools.partial(_ffn_add_ln_kernel, eps=eps),
        out_shape=jax.ShapeDtypeStruct((Mp, D), jnp.float32),
        grid=(Mp // tm,),
        in_specs=[
            pl.BlockSpec((tm, D), lambda i: (i, 0)),
            _const_spec((D, F)),
            _const_spec((1, F)),
            _const_spec((F, D)),
            _const_spec((1, D)),
            _const_spec((1, D)),
            _const_spec((1, D)),
        ],
        out_specs=pl.BlockSpec((tm, D), lambda i: (i, 0)),
        compiler_params=pltpu.CompilerParams(
            dimension_semantics=("parallel",),
            vmem_limit_bytes=_VMEM_LIMIT_BYTES),
    )(xp, w1_t, b1.reshape(1, F), w2_t, b2.reshape(1, D),
      gamma.reshape(1, D), beta.reshape(1, D))
    return out[:M]


def _sdpa_kernel(qkv_ref, o_ref, acc_ref, *, nhead, scale):
    # qkv_ref: (tn, L, 3D) bf16 block in the native row layout; heads are
    # sliced in-kernel, so no (N*H, L, dh) HBM re-layout is ever materialized
    # and the output block is written feature-contiguous as (tn, L, D).
    tn, L, three_d = qkv_ref.shape
    D = three_d // 3
    dh = D // nhead
    qkv = qkv_ref[...]
    for h in range(nhead):
        q = qkv[:, :, h * dh:(h + 1) * dh]                    # bf16
        k = qkv[:, :, D + h * dh:D + (h + 1) * dh]            # bf16
        v = qkv[:, :, 2 * D + h * dh:2 * D + (h + 1) * dh]    # bf16
        s = jax.lax.dot_general(q, k, (((2,), (2,)), ((0,), (0,))),
                                preferred_element_type=jnp.float32) * scale
        s = s - jnp.max(s, axis=-1, keepdims=True)
        p = jnp.exp(s)
        p = p * pl.reciprocal(jnp.sum(p, axis=-1, keepdims=True), approx=True)
        acc_ref[:, :, h * dh:(h + 1) * dh] = jax.lax.dot_general(
            p.astype(jnp.bfloat16), v, (((2,), (1,)), ((0,), (0,))),
            preferred_element_type=jnp.float32)
    o_ref[...] = acc_ref[...].astype(o_ref.dtype)
    # TODO(synk): for long sequence axes replace the full (L, L) scores with a
    # flash-attention style K-block online-softmax loop.


def _sdpa_tile_n(N, L, D):
    # Per-n VMEM (bytes): f32 scores L*L*4 + double-buffered bf16 qkv in
    # (2*L*3D*2) + double-buffered bf16 out (2*L*D*2) + f32 head accumulator
    # (L*D*4) + slack for per-head temporaries.
    per_n = 4 * L * L + 12 * L * D + 4 * L * D + 4 * L * D + 8 * L * D
    tn = max(1, _SDPA_VMEM_BUDGET // max(per_n, 1))
    return min(tn, N)


def sdpa(qkv3d, nhead):
    """Multi-head self-attention.  qkv3d: (N, L, 3D) bf16 -> (N, L, D) bf16."""
    N, L, three_d = qkv3d.shape
    D = three_d // 3
    dh = D // nhead
    scale = 1.0 / math.sqrt(dh)
    tn = _sdpa_tile_n(N, L, D)
    Np = _round_up(N, tn)
    qkv_p = _pad_axis0(qkv3d, Np)
    out = pl.pallas_call(
        functools.partial(_sdpa_kernel, nhead=nhead, scale=scale),
        out_shape=jax.ShapeDtypeStruct((Np, L, D), jnp.bfloat16),
        grid=(Np // tn,),
        in_specs=[pl.BlockSpec((tn, L, three_d), lambda i: (i, 0, 0))],
        out_specs=pl.BlockSpec((tn, L, D), lambda i: (i, 0, 0)),
        scratch_shapes=[pltpu.VMEM((tn, L, D), jnp.float32)],
        compiler_params=pltpu.CompilerParams(
            dimension_semantics=("parallel",),
            vmem_limit_bytes=_VMEM_LIMIT_BYTES),
    )(qkv_p)
    return out[:N]


# ---------------------------------------------------------------------------
# One-time parameter preparation (transpose + bf16 cast OUTSIDE the forward)
# ---------------------------------------------------------------------------

def prepare_params(params):
    def t_bf16(w):
        return jnp.asarray(w).T.astype(jnp.bfloat16)

    prepped = {
        "linear_w_t": t_bf16(params["linear_w"]),            # (G, D)
        "linear_b": params["linear_b"].astype(jnp.float32),
        "layers": [],
    }
    if params.get("out_linear_w") is not None:
        prepped["out_linear_w_t"] = t_bf16(params["out_linear_w"])   # (D, G)
        prepped["out_linear_b"] = params["out_linear_b"].astype(jnp.float32)
    for lp in params["layers"]:
        prepped["layers"].append({
            "in_proj_w_t": t_bf16(lp["in_proj_w"]),           # (D, 3D) fused QKV
            "in_proj_b": lp["in_proj_b"].astype(jnp.float32),
            "out_proj_w_t": t_bf16(lp["out_proj_w"]),         # (D, D)
            "out_proj_b": lp["out_proj_b"].astype(jnp.float32),
            "lin1_w_t": t_bf16(lp["lin1_w"]),                 # (D, F)
            "lin1_b": lp["lin1_b"].astype(jnp.float32),
            "lin2_w_t": t_bf16(lp["lin2_w"]),                 # (F, D)
            "lin2_b": lp["lin2_b"].astype(jnp.float32),
            "norm1_w": lp["norm1_w"].astype(jnp.float32),
            "norm1_b": lp["norm1_b"].astype(jnp.float32),
            "norm2_w": lp["norm2_w"].astype(jnp.float32),
            "norm2_b": lp["norm2_b"].astype(jnp.float32),
        })
    return prepped


# ---------------------------------------------------------------------------
# Model forward (glue in plain JAX, compute in the kernels above)
# ---------------------------------------------------------------------------

def transformer_encoder_forward(x, prepped, nhead):
    B, S, G = x.shape
    D = prepped["linear_w_t"].shape[1]
    # batch_first=False: seq axis = axis 0 (B), attention-batch axis = axis 1 (S).
    L, N = B, S
    # Rows kept in (n-major, l-minor) order for the whole stack, so every
    # (N*L, .) <-> (N, L, .) change below is a free contiguous reshape; the
    # only real transposes are at the two ends of the model.
    xr = jnp.transpose(x, (1, 0, 2)).reshape(N * L, G)

    # Input linear: (N*L, G) -> (N*L, D), kept f32 (residual / LN path).
    h = linear(xr, prepped["linear_w_t"], prepped["linear_b"])

    for lp in prepped["layers"]:
        # --- Multi-head self-attention ---
        # Fused QKV projection, emitted in bf16 (it only feeds bf16 matmuls).
        qkv = linear(h, lp["in_proj_w_t"], lp["in_proj_b"],
                     out_dtype=jnp.bfloat16)                     # (N*L, 3D) bf16
        a = sdpa(qkv.reshape(N, L, 3 * D), nhead)                # (N, L, D) bf16
        a = a.reshape(N * L, D)

        # --- out_proj + residual + LayerNorm1 (fused) ---
        h1 = proj_add_ln(a, h, lp["out_proj_w_t"], lp["out_proj_b"],
                         lp["norm1_w"], lp["norm1_b"])

        # --- FFN + residual + LayerNorm2 (fused) ---
        h = ffn_add_ln(h1, lp["lin1_w_t"], lp["lin1_b"],
                       lp["lin2_w_t"], lp["lin2_b"],
                       lp["norm2_w"], lp["norm2_b"])

    if "out_linear_w_t" in prepped:
        h = linear(h, prepped["out_linear_w_t"], prepped["out_linear_b"])
        out_dim = h.shape[1]
    else:
        out_dim = D
    return jnp.transpose(h.reshape(N, L, out_dim), (1, 0, 2))


# ---------------------------------------------------------------------------
# Deterministic parameter init + demo run
# ---------------------------------------------------------------------------

if __name__ == "__main__":
    # Module hyperparameters (small, consistent with the forward pass)
    B, S, G = 2, 8, 16          # batch, n_spots, genes (= data_input_size)
    D, H = 32, 4                # transformer_dim, transformer_heads
    NUM_LAYERS = 2              # transformer_encoder_layers
    FF = 2048                   # PyTorch nn.TransformerEncoderLayer default

    key = jax.random.PRNGKey(0)
    keys = iter(jax.random.split(key, 64))

    def w(shape, scale=0.05):
        return (scale * jax.random.normal(next(keys), shape)).astype(jnp.float32)

    params = {
        "linear_w": w((D, G)),          # nn.Linear(input_size, d_model).weight
        "linear_b": w((D,)),
        "out_linear_w": w((G, D)),      # nn.Linear(d_model, input_size).weight
        "out_linear_b": w((G,)),
        "layers": [],
    }
    for _ in range(NUM_LAYERS):
        params["layers"].append({
            "in_proj_w": w((3 * D, D)),
            "in_proj_b": w((3 * D,)),
            "out_proj_w": w((D, D)),
            "out_proj_b": w((D,)),
            "lin1_w": w((FF, D)),
            "lin1_b": w((FF,)),
            "lin2_w": w((D, FF)),
            "lin2_b": w((D,)),
            "norm1_w": jnp.ones((D,), jnp.float32),
            "norm1_b": jnp.zeros((D,), jnp.float32),
            "norm2_w": jnp.ones((D,), jnp.float32),
            "norm2_b": jnp.zeros((D,), jnp.float32),
        })

    prepped = prepare_params(params)
    x = jax.random.normal(next(keys), (B, S, G), dtype=jnp.float32)

    fwd = jax.jit(transformer_encoder_forward, static_argnums=2)
    out = fwd(x, prepped, H)
    out = jax.block_until_ready(out)
    assert out.shape == (B, S, G) and out.dtype == jnp.float32
    print("KERNEL_OK")
</pallas_src>

<mosaic_0001>
module attributes {stable_mosaic.version = 11 : i64} {
  func.func @_linear_kernel(%arg0: i32, %arg1: memref<16x32xf32, #tpu.memory_space<vmem>>, %arg2: memref<32x96xbf16, #tpu.memory_space<vmem>>, %arg3: memref<1x96xf32, #tpu.memory_space<vmem>>, %arg4: memref<16x96xbf16, #tpu.memory_space<vmem>>) attributes {dimension_semantics = [#tpu.dimension_semantics<parallel>], iteration_bounds = array<i64: 1>, scalar_prefetch = 0 : i64, scratch_operands = 0 : i64, tpu.core_type = #tpu.core_type<tc>, window_params = [{transform_indices = @transform_0, window_bounds = array<i64: 16, 32>}, {pipeline_mode = #tpu.pipeline_mode<synchronous>, transform_indices = @transform_1, window_bounds = array<i64: 32, 96>}, {pipeline_mode = #tpu.pipeline_mode<synchronous>, transform_indices = @transform_2, window_bounds = array<i64: 1, 96>}, {transform_indices = @transform_3, window_bounds = array<i64: 16, 96>}]} {
    %c0 = arith.constant 0 : index
    %c0_0 = arith.constant 0 : index
    %0 = vector.load %arg1[%c0, %c0_0] : memref<16x32xf32, #tpu.memory_space<vmem>>, vector<16x32xf32>
    %1 = arith.truncf %0 : vector<16x32xf32> to vector<16x32xbf16>
    %c0_1 = arith.constant 0 : index
    %c0_2 = arith.constant 0 : index
    %2 = vector.load %arg2[%c0_1, %c0_2] : memref<32x96xbf16, #tpu.memory_space<vmem>>, vector<32x96xbf16>
    %cst = arith.constant dense<0.000000e+00> : vector<16x96xf32>
    %3 = tpu.matmul %1, %2, %cst {dimension_numbers = #tpu.dot_dimension_numbers<[1], [0], [0], [1], [0, 0, 1, 1], [], []>} : vector<16x32xbf16>, vector<32x96xbf16>, vector<16x96xf32> -> vector<16x96xf32>
    %c0_3 = arith.constant 0 : index
    %c0_4 = arith.constant 0 : index
    %4 = vector.load %arg3[%c0_3, %c0_4] : memref<1x96xf32, #tpu.memory_space<vmem>>, vector<1x96xf32>
    %5 = vector.broadcast %4 : vector<1x96xf32> to vector<16x96xf32>
    %6 = arith.addf %3, %5 : vector<16x96xf32>
    %7 = arith.truncf %6 : vector<16x96xf32> to vector<16x96xbf16>
    %c0_5 = arith.constant 0 : index
    %c0_6 = arith.constant 0 : index
    %8 = vector.load %arg4[%c0_5, %c0_6] : memref<16x96xbf16, #tpu.memory_space<vmem>>, vector<16x96xbf16>
    tpu.vector_store %arg4[%c0_5, %c0_6], %7 {strides = array<i32>} : memref<16x96xbf16, #tpu.memory_space<vmem>>, vector<16x96xbf16>,
    return
  }
  func.func @transform_0(%arg0: i32) -> (i32, i32) {
    %c0_i32 = arith.constant 0 : i32
    %c0_i32_0 = arith.constant 0 : i32
    return %arg0, %c0_i32 : i32, i32
  }
  func.func @transform_1(%arg0: i32) -> (i32, i32) {
    %c0_i32 = arith.constant 0 : i32
    %c0_i32_0 = arith.constant 0 : i32
    %c0_i32_1 = arith.constant 0 : i32
    return %c0_i32, %c0_i32_0 : i32, i32
  }
  func.func @transform_2(%arg0: i32) -> (i32, i32) {
    %c0_i32 = arith.constant 0 : i32
    %c0_i32_0 = arith.constant 0 : i32
    %c0_i32_1 = arith.constant 0 : i32
    return %c0_i32, %c0_i32_0 : i32, i32
  }
  func.func @transform_3(%arg0: i32) -> (i32, i32) {
    %c0_i32 = arith.constant 0 : i32
    %c0_i32_0 = arith.constant 0 : i32
    return %arg0, %c0_i32 : i32, i32
  }
}

module attributes {stable_mosaic.version = 11 : i64} {
  func.func @_sdpa_kernel(%arg0: i32, %arg1: memref<8x2x96xbf16, #tpu.memory_space<vmem>>, %arg2: memref<8x2x32xbf16, #tpu.memory_space<vmem>>, %arg3: memref<8x2x32xf32, #tpu.memory_space<vmem>>) attributes {dimension_semantics = [#tpu.dimension_semantics<parallel>], iteration_bounds = array<i64: 1>, scalar_prefetch = 0 : i64, scratch_operands = 1 : i64, tpu.core_type = #tpu.core_type<tc>, window_params = [{transform_indices = @transform_0, window_bounds = array<i64: 8, 2, 96>}, {transform_indices = @transform_1, window_bounds = array<i64: 8, 2, 32>}]} {
    %c0 = arith.constant 0 : index
    %c0_0 = arith.constant 0 : index
    %c0_1 = arith.constant 0 : index
    %0 = vector.load %arg1[%c0, %c0_0, %c0_1] : memref<8x2x96xbf16, #tpu.memory_space<vmem>>, vector<8x2x96xbf16>
    %1 = vector.extract_strided_slice %0 {offsets = [0, 0, 0], sizes = [8, 2, 8], strides = [1, 1, 1]} : vector<8x2x96xbf16> to vector<8x2x8xbf16>
    %2 = vector.extract_strided_slice %0 {offsets = [0, 0, 32], sizes = [8, 2, 8], strides = [1, 1, 1]} : vector<8x2x96xbf16> to vector<8x2x8xbf16>
    %3 = vector.extract_strided_slice %0 {offsets = [0, 0, 64], sizes = [8, 2, 8], strides = [1, 1, 1]} : vector<8x2x96xbf16> to vector<8x2x8xbf16>
    %cst = arith.constant dense<0.000000e+00> : vector<8x2x2xf32>
    %4 = tpu.matmul %1, %2, %cst {dimension_numbers = #tpu.dot_dimension_numbers<[2], [2], [1], [1], [0, 0, 0, 1, 1, 1], [0], [0]>} : vector<8x2x8xbf16>, vector<8x2x8xbf16>, vector<8x2x2xf32> -> vector<8x2x2xf32>
    %cst_2 = arith.constant 0.353553385 : f32
    %5 = vector.broadcast %cst_2 : f32 to vector<8x2x2xf32>
    %6 = arith.mulf %4, %5 : vector<8x2x2xf32>
    %cst_3 = arith.constant dense<0xFF800000> : vector<8x2xf32>
    %7 = vector.multi_reduction <maximumf>, %6, %cst_3 [2] : vector<8x2x2xf32> to vector<8x2xf32>
    %8 = vector.shape_cast %7 : vector<8x2xf32> to vector<8x2x1xf32>
    %9 = vector.broadcast %8 : vector<8x2x1xf32> to vector<8x2x2xf32>
    %10 = arith.subf %6, %9 : vector<8x2x2xf32>
    %11 = math.exp %10 : vector<8x2x2xf32>
    %cst_4 = arith.constant dense<0.000000e+00> : vector<8x2xf32>
    %12 = vector.multi_reduction <add>, %11, %cst_4 [2] : vector<8x2x2xf32> to vector<8x2xf32>
    %13 = vector.shape_cast %12 : vector<8x2xf32> to vector<8x2x1xf32>
    %14 = tpu.reciprocal %13 {approx = true} : vector<8x2x1xf32> -> vector<8x2x1xf32>
    %15 = vector.broadcast %14 : vector<8x2x1xf32> to vector<8x2x2xf32>
    %16 = arith.mulf %11, %15 : vector<8x2x2xf32>
    %17 = arith.truncf %16 : vector<8x2x2xf32> to vector<8x2x2xbf16>
    %cst_5 = arith.constant dense<0.000000e+00> : vector<8x2x8xf32>
    %18 = tpu.matmul %17, %3, %cst_5 {dimension_numbers = #tpu.dot_dimension_numbers<[2], [1], [1], [2], [0, 0, 0, 1, 1, 2], [0], [0]>} : vector<8x2x2xbf16>, vector<8x2x8xbf16>, vector<8x2x8xf32> -> vector<8x2x8xf32>
    %c0_6 = arith.constant 0 : index
    %c0_7 = arith.constant 0 : index
    %c0_8 = arith.constant 0 : index
    %19 = vector.load %arg3[%c0_6, %c0_7, %c0_8] : memref<8x2x32xf32, #tpu.memory_space<vmem>>, vector<8x2x8xf32>
    tpu.vector_store %arg3[%c0_6, %c0_7, %c0_8], %18 {strides = array<i32>} : memref<8x2x32xf32, #tpu.memory_space<vmem>>, vector<8x2x8xf32>,
    %20 = vector.extract_strided_slice %0 {offsets = [0, 0, 8], sizes = [8, 2, 8], strides = [1, 1, 1]} : vector<8x2x96xbf16> to vector<8x2x8xbf16>
    %21 = vector.extract_strided_slice %0 {offsets = [0, 0, 40], sizes = [8, 2, 8], strides = [1, 1, 1]} : vector<8x2x96xbf16> to vector<8x2x8xbf16>
    %22 = vector.extract_strided_slice %0 {offsets = [0, 0, 72], sizes = [8, 2, 8], strides = [1, 1, 1]} : vector<8x2x96xbf16> to vector<8x2x8xbf16>
    %cst_9 = arith.constant dense<0.000000e+00> : vector<8x2x2xf32>
    %23 = tpu.matmul %20, %21, %cst_9 {dimension_numbers = #tpu.dot_dimension_numbers<[2], [2], [1], [1], [0, 0, 0, 1, 1, 1], [0], [0]>} : vector<8x2x8xbf16>, vector<8x2x8xbf16>, vector<8x2x2xf32> -> vector<8x2x2xf32>
    %cst_10 = arith.constant 0.353553385 : f32
    %24 = vector.broadcast %cst_10 : f32 to vector<8x2x2xf32>
    %25 = arith.mulf %23, %24 : vector<8x2x2xf32>
    %cst_11 = arith.constant dense<0xFF800000> : vector<8x2xf32>
    %26 = vector.multi_reduction <maximumf>, %25, %cst_11 [2] : vector<8x2x2xf32> to vector<8x2xf32>
    %27 = vector.shape_cast %26 : vector<8x2xf32> to vector<8x2x1xf32>
    %28 = vector.broadcast %27 : vector<8x2x1xf32> to vector<8x2x2xf32>
    %29 = arith.subf %25, %28 : vector<8x2x2xf32>
    %30 = math.exp %29 : vector<8x2x2xf32>
    %cst_12 = arith.constant dense<0.000000e+00> : vector<8x2xf32>
    %31 = vector.multi_reduction <add>, %30, %cst_12 [2] : vector<8x2x2xf32> to vector<8x2xf32>
    %32 = vector.shape_cast %31 : vector<8x2xf32> to vector<8x2x1xf32>
    %33 = tpu.reciprocal %32 {approx = true} : vector<8x2x1xf32> -> vector<8x2x1xf32>
    %34 = vector.broadcast %33 : vector<8x2x1xf32> to vector<8x2x2xf32>
    %35 = arith.mulf %30, %34 : vector<8x2x2xf32>
    %36 = arith.truncf %35 : vector<8x2x2xf32> to vector<8x2x2xbf16>
    %cst_13 = arith.constant dense<0.000000e+00> : vector<8x2x8xf32>
    %37 = tpu.matmul %36, %22, %cst_13 {dimension_numbers = #tpu.dot_dimension_numbers<[2], [1], [1], [2], [0, 0, 0, 1, 1, 2], [0], [0]>} : vector<8x2x2xbf16>, vector<8x2x8xbf16>, vector<8x2x8xf32> -> vector<8x2x8xf32>
    %c0_14 = arith.constant 0 : index
    %c0_15 = arith.constant 0 : index
    %c8 = arith.constant 8 : index
    %38 = vector.load %arg3[%c0_14, %c0_15, %c8] : memref<8x2x32xf32, #tpu.memory_space<vmem>>, vector<8x2x8xf32>
    tpu.vector_store %arg3[%c0_14, %c0_15, %c8], %37 {strides = array<i32>} : memref<8x2x32xf32, #tpu.memory_space<vmem>>, vector<8x2x8xf32>,
    %39 = vector.extract_strided_slice %0 {offsets = [0, 0, 16], sizes = [8, 2, 8], strides = [1, 1, 1]} : vector<8x2x96xbf16> to vector<8x2x8xbf16>
    %40 = vector.extract_strided_slice %0 {offsets = [0, 0, 48], sizes = [8, 2, 8], strides = [1, 1, 1]} : vector<8x2x96xbf16> to vector<8x2x8xbf16>
    %41 = vector.extract_strided_slice %0 {offsets = [0, 0, 80], sizes = [8, 2, 8], strides = [1, 1, 1]} : vector<8x2x96xbf16> to vector<8x2x8xbf16>
    %cst_16 = arith.constant dense<0.000000e+00> : vector<8x2x2xf32>
    %42 = tpu.matmul %39, %40, %cst_16 {dimension_numbers = #tpu.dot_dimension_numbers<[2], [2], [1], [1], [0, 0, 0, 1, 1, 1], [0], [0]>} : vector<8x2x8xbf16>, vector<8x2x8xbf16>, vector<8x2x2xf32> -> vector<8x2x2xf32>
    %cst_17 = arith.constant 0.353553385 : f32
    %43 = vector.broadcast %cst_17 : f32 to vector<8x2x2xf32>
    %44 = arith.mulf %42, %43 : vector<8x2x2xf32>
    %cst_18 = arith.constant dense<0xFF800000> : vector<8x2xf32>
    %45 = vector.multi_reduction <maximumf>, %44, %cst_18 [2] : vector<8x2x2xf32> to vector<8x2xf32>
    %46 = vector.shape_cast %45 : vector<8x2xf32> to vector<8x2x1xf32>
    %47 = vector.broadcast %46 : vector<8x2x1xf32> to vector<8x2x2xf32>
    %48 = arith.subf %44, %47 : vector<8x2x2xf32>
    %49 = math.exp %48 : vector<8x2x2xf32>
    %cst_19 = arith.constant dense<0.000000e+00> : vector<8x2xf32>
    %50 = vector.multi_reduction <add>, %49, %cst_19 [2] : vector<8x2x2xf32> to vector<8x2xf32>
    %51 = vector.shape_cast %50 : vector<8x2xf32> to vector<8x2x1xf32>
    %52 = tpu.reciprocal %51 {approx = true} : vector<8x2x1xf32> -> vector<8x2x1xf32>
    %53 = vector.broadcast %52 : vector<8x2x1xf32> to vector<8x2x2xf32>
    %54 = arith.mulf %49, %53 : vector<8x2x2xf32>
    %55 = arith.truncf %54 : vector<8x2x2xf32> to vector<8x2x2xbf16>
    %cst_20 = arith.constant dense<0.000000e+00> : vector<8x2x8xf32>
    %56 = tpu.matmul %55, %41, %cst_20 {dimension_numbers = #tpu.dot_dimension_numbers<[2], [1], [1], [2], [0, 0, 0, 1, 1, 2], [0], [0]>} : vector<8x2x2xbf16>, vector<8x2x8xbf16>, vector<8x2x8xf32> -> vector<8x2x8xf32>
    %c0_21 = arith.constant 0 : index
    %c0_22 = arith.constant 0 : index
    %c16 = arith.constant 16 : index
    %57 = vector.load %arg3[%c0_21, %c0_22, %c16] : memref<8x2x32xf32, #tpu.memory_space<vmem>>, vector<8x2x8xf32>
    tpu.vector_store %arg3[%c0_21, %c0_22, %c16], %56 {strides = array<i32>} : memref<8x2x32xf32, #tpu.memory_space<vmem>>, vector<8x2x8xf32>,
    %58 = vector.extract_strided_slice %0 {offsets = [0, 0, 24], sizes = [8, 2, 8], strides = [1, 1, 1]} : vector<8x2x96xbf16> to vector<8x2x8xbf16>
    %59 = vector.extract_strided_slice %0 {offsets = [0, 0, 56], sizes = [8, 2, 8], strides = [1, 1, 1]} : vector<8x2x96xbf16> to vector<8x2x8xbf16>
    %60 = vector.extract_strided_slice %0 {offsets = [0, 0, 88], sizes = [8, 2, 8], strides = [1, 1, 1]} : vector<8x2x96xbf16> to vector<8x2x8xbf16>
    %cst_23 = arith.constant dense<0.000000e+00> : vector<8x2x2xf32>
    %61 = tpu.matmul %58, %59, %cst_23 {dimension_numbers = #tpu.dot_dimension_numbers<[2], [2], [1], [1], [0, 0, 0, 1, 1, 1], [0], [0]>} : vector<8x2x8xbf16>, vector<8x2x8xbf16>, vector<8x2x2xf32> -> vector<8x2x2xf32>
    %cst_24 = arith.constant 0.353553385 : f32
    %62 = vector.broadcast %cst_24 : f32 to vector<8x2x2xf32>
    %63 = arith.mulf %61, %62 : vector<8x2x2xf32>
    %cst_25 = arith.constant dense<0xFF800000> : vector<8x2xf32>
    %64 = vector.multi_reduction <maximumf>, %63, %cst_25 [2] : vector<8x2x2xf32> to vector<8x2xf32>
    %65 = vector.shape_cast %64 : vector<8x2xf32> to vector<8x2x1xf32>
    %66 = vector.broadcast %65 : vector<8x2x1xf32> to vector<8x2x2xf32>
    %67 = arith.subf %63, %66 : vector<8x2x2xf32>
    %68 = math.exp %67 : vector<8x2x2xf32>
    %cst_26 = arith.constant dense<0.000000e+00> : vector<8x2xf32>
    %69 = vector.multi_reduction <add>, %68, %cst_26 [2] : vector<8x2x2xf32> to vector<8x2xf32>
    %70 = vector.shape_cast %69 : vector<8x2xf32> to vector<8x2x1xf32>
    %71 = tpu.reciprocal %70 {approx = true} : vector<8x2x1xf32> -> vector<8x2x1xf32>
    %72 = vector.broadcast %71 : vector<8x2x1xf32> to vector<8x2x2xf32>
    %73 = arith.mulf %68, %72 : vector<8x2x2xf32>
    %74 = arith.truncf %73 : vector<8x2x2xf32> to vector<8x2x2xbf16>
    %cst_27 = arith.constant dense<0.000000e+00> : vector<8x2x8xf32>
    %75 = tpu.matmul %74, %60, %cst_27 {dimension_numbers = #tpu.dot_dimension_numbers<[2], [1], [1], [2], [0, 0, 0, 1, 1, 2], [0], [0]>} : vector<8x2x2xbf16>, vector<8x2x8xbf16>, vector<8x2x8xf32> -> vector<8x2x8xf32>
    %c0_28 = arith.constant 0 : index
    %c0_29 = arith.constant 0 : index
    %c24 = arith.constant 24 : index
    %76 = vector.load %arg3[%c0_28, %c0_29, %c24] : memref<8x2x32xf32, #tpu.memory_space<vmem>>, vector<8x2x8xf32>
    tpu.vector_store %arg3[%c0_28, %c0_29, %c24], %75 {strides = array<i32>} : memref<8x2x32xf32, #tpu.memory_space<vmem>>, vector<8x2x8xf32>,
    %c0_30 = arith.constant 0 : index
    %c0_31 = arith.constant 0 : index
    %c0_32 = arith.constant 0 : index
    %77 = vector.load %arg3[%c0_30, %c0_31, %c0_32] : memref<8x2x32xf32, #tpu.memory_space<vmem>>, vector<8x2x32xf32>
    %78 = arith.truncf %77 : vector<8x2x32xf32> to vector<8x2x32xbf16>
    %c0_33 = arith.constant 0 : index
    %c0_34 = arith.constant 0 : index
    %c0_35 = arith.constant 0 : index
    %79 = vector.load %arg2[%c0_33, %c0_34, %c0_35] : memref<8x2x32xbf16, #tpu.memory_space<vmem>>, vector<8x2x32xbf16>
    tpu.vector_store %arg2[%c0_33, %c0_34, %c0_35], %78 {strides = array<i32>} : memref<8x2x32xbf16, #tpu.memory_space<vmem>>, vector<8x2x32xbf16>,
    return
  }
  func.func @transform_0(%arg0: i32) -> (i32, i32, i32) {
    %c0_i32 = arith.constant 0 : i32
    %c0_i32_0 = arith.constant 0 : i32
    %c0_i32_1 = arith.constant 0 : i32
    return %arg0, %c0_i32, %c0_i32_0 : i32, i32, i32
  }
  func.func @transform_1(%arg0: i32) -> (i32, i32, i32) {
    %c0_i32 = arith.constant 0 : i32
    %c0_i32_0 = arith.constant 0 : i32
    %c0_i32_1 = arith.constant 0 : i32
    return %arg0, %c0_i32, %c0_i32_0 : i32, i32, i32
  }
}

module attributes {stable_mosaic.version = 11 : i64} {
  func.func @_linear_kernel(%arg0: i32, %arg1: memref<16x16xf32, #tpu.memory_space<vmem>>, %arg2: memref<16x32xbf16, #tpu.memory_space<vmem>>, %arg3: memref<1x32xf32, #tpu.memory_space<vmem>>, %arg4: memref<16x32xf32, #tpu.memory_space<vmem>>) attributes {dimension_semantics = [#tpu.dimension_semantics<parallel>], iteration_bounds = array<i64: 1>, scalar_prefetch = 0 : i64, scratch_operands = 0 : i64, tpu.core_type = #tpu.core_type<tc>, window_params = [{transform_indices = @transform_0, window_bounds = array<i64: 16, 16>}, {pipeline_mode = #tpu.pipeline_mode<synchronous>, transform_indices = @transform_1, window_bounds = array<i64: 16, 32>}, {pipeline_mode = #tpu.pipeline_mode<synchronous>, transform_indices = @transform_2, window_bounds = array<i64: 1, 32>}, {transform_indices = @transform_3, window_bounds = array<i64: 16, 32>}]} {
    %c0 = arith.constant 0 : index
    %c0_0 = arith.constant 0 : index
    %0 = vector.load %arg1[%c0, %c0_0] : memref<16x16xf32, #tpu.memory_space<vmem>>, vector<16x16xf32>
    %1 = arith.truncf %0 : vector<16x16xf32> to vector<16x16xbf16>
    %c0_1 = arith.constant 0 : index
    %c0_2 = arith.constant 0 : index
    %2 = vector.load %arg2[%c0_1, %c0_2] : memref<16x32xbf16, #tpu.memory_space<vmem>>, vector<16x32xbf16>
    %cst = arith.constant dense<0.000000e+00> : vector<16x32xf32>
    %3 = tpu.matmul %1, %2, %cst {dimension_numbers = #tpu.dot_dimension_numbers<[1], [0], [0], [1], [0, 0, 1, 1], [], []>} : vector<16x16xbf16>, vector<16x32xbf16>, vector<16x32xf32> -> vector<16x32xf32>
    %c0_3 = arith.constant 0 : index
    %c0_4 = arith.constant 0 : index
    %4 = vector.load %arg3[%c0_3, %c0_4] : memref<1x32xf32, #tpu.memory_space<vmem>>, vector<1x32xf32>
    %5 = vector.broadcast %4 : vector<1x32xf32> to vector<16x32xf32>
    %6 = arith.addf %3, %5 : vector<16x32xf32>
    %c0_5 = arith.constant 0 : index
    %c0_6 = arith.constant 0 : index
    %7 = vector.load %arg4[%c0_5, %c0_6] : memref<16x32xf32, #tpu.memory_space<vmem>>, vector<16x32xf32>
    tpu.vector_store %arg4[%c0_5, %c0_6], %6 {strides = array<i32>} : memref<16x32xf32, #tpu.memory_space<vmem>>, vector<16x32xf32>,
    return
  }
  func.func @transform_0(%arg0: i32) -> (i32, i32) {
    %c0_i32 = arith.constant 0 : i32
    %c0_i32_0 = arith.constant 0 : i32
    return %arg0, %c0_i32 : i32, i32
  }
  func.func @transform_1(%arg0: i32) -> (i32, i32) {
    %c0_i32 = arith.constant 0 : i32
    %c0_i32_0 = arith.constant 0 : i32
    %c0_i32_1 = arith.constant 0 : i32
    return %c0_i32, %c0_i32_0 : i32, i32
  }
  func.func @transform_2(%arg0: i32) -> (i32, i32) {
    %c0_i32 = arith.constant 0 : i32
    %c0_i32_0 = arith.constant 0 : i32
    %c0_i32_1 = arith.constant 0 : i32
    return %c0_i32, %c0_i32_0 : i32, i32
  }
  func.func @transform_3(%arg0: i32) -> (i32, i32) {
    %c0_i32 = arith.constant 0 : i32
    %c0_i32_0 = arith.constant 0 : i32
    return %arg0, %c0_i32 : i32, i32
  }
}

module attributes {stable_mosaic.version = 11 : i64} {
  func.func @_proj_add_ln_kernel(%arg0: i32, %arg1: memref<16x32xbf16, #tpu.memory_space<vmem>>, %arg2: memref<16x32xf32, #tpu.memory_space<vmem>>, %arg3: memref<32x32xbf16, #tpu.memory_space<vmem>>, %arg4: memref<1x32xf32, #tpu.memory_space<vmem>>, %arg5: memref<1x32xf32, #tpu.memory_space<vmem>>, %arg6: memref<1x32xf32, #tpu.memory_space<vmem>>, %arg7: memref<16x32xf32, #tpu.memory_space<vmem>>) attributes {dimension_semantics = [#tpu.dimension_semantics<parallel>], iteration_bounds = array<i64: 1>, scalar_prefetch = 0 : i64, scratch_operands = 0 : i64, tpu.core_type = #tpu.core_type<tc>, window_params = [{transform_indices = @transform_0, window_bounds = array<i64: 16, 32>}, {transform_indices = @transform_1, window_bounds = array<i64: 16, 32>}, {pipeline_mode = #tpu.pipeline_mode<synchronous>, transform_indices = @transform_2, window_bounds = array<i64: 32, 32>}, {pipeline_mode = #tpu.pipeline_mode<synchronous>, transform_indices = @transform_3, window_bounds = array<i64: 1, 32>}, {pipeline_mode = #tpu.pipeline_mode<synchronous>, transform_indices = @transform_4, window_bounds = array<i64: 1, 32>}, {pipeline_mode = #tpu.pipeline_mode<synchronous>, transform_indices = @transform_5, window_bounds = array<i64: 1, 32>}, {transform_indices = @transform_6, window_bounds = array<i64: 16, 32>}]} {
    %c0 = arith.constant 0 : index
    %c0_0 = arith.constant 0 : index
    %0 = vector.load %arg1[%c0, %c0_0] : memref<16x32xbf16, #tpu.memory_space<vmem>>, vector<16x32xbf16>
    %c0_1 = arith.constant 0 : index
    %c0_2 = arith.constant 0 : index
    %1 = vector.load %arg3[%c0_1, %c0_2] : memref<32x32xbf16, #tpu.memory_space<vmem>>, vector<32x32xbf16>
    %cst = arith.constant dense<0.000000e+00> : vector<16x32xf32>
    %2 = tpu.matmul %0, %1, %cst {dimension_numbers = #tpu.dot_dimension_numbers<[1], [0], [0], [1], [0, 0, 1, 1], [], []>} : vector<16x32xbf16>, vector<32x32xbf16>, vector<16x32xf32> -> vector<16x32xf32>
    %c0_3 = arith.constant 0 : index
    %c0_4 = arith.constant 0 : index
    %3 = vector.load %arg4[%c0_3, %c0_4] : memref<1x32xf32, #tpu.memory_space<vmem>>, vector<1x32xf32>
    %4 = vector.broadcast %3 : vector<1x32xf32> to vector<16x32xf32>
    %5 = arith.addf %2, %4 : vector<16x32xf32>
    %c0_5 = arith.constant 0 : index
    %c0_6 = arith.constant 0 : index
    %6 = vector.load %arg2[%c0_5, %c0_6] : memref<16x32xf32, #tpu.memory_space<vmem>>, vector<16x32xf32>
    %7 = arith.addf %6, %5 : vector<16x32xf32>
    %cst_7 = arith.constant dense<0.000000e+00> : vector<16xf32>
    %8 = vector.multi_reduction <add>, %7, %cst_7 [1] : vector<16x32xf32> to vector<16xf32>
    %9 = vector.shape_cast %8 : vector<16xf32> to vector<16x1xf32>
    %cst_8 = arith.constant 3.200000e+01 : f32
    %10 = vector.broadcast %cst_8 : f32 to vector<16x1xf32>
    %11 = arith.divf %9, %10 : vector<16x1xf32>
    %12 = vector.broadcast %11 : vector<16x1xf32> to vector<16x32xf32>
    %13 = arith.subf %7, %12 : vector<16x32xf32>
    %14 = arith.mulf %13, %13 : vector<16x32xf32>
    %cst_9 = arith.constant dense<0.000000e+00> : vector<16xf32>
    %15 = vector.multi_reduction <add>, %14, %cst_9 [1] : vector<16x32xf32> to vector<16xf32>
    %16 = vector.shape_cast %15 : vector<16xf32> to vector<16x1xf32>
    %cst_10 = arith.constant 3.200000e+01 : f32
    %17 = vector.broadcast %cst_10 : f32 to vector<16x1xf32>
    %18 = arith.divf %16, %17 : vector<16x1xf32>
    %19 = vector.broadcast %11 : vector<16x1xf32> to vector<16x32xf32>
    %20 = arith.subf %7, %19 : vector<16x32xf32>
    %cst_11 = arith.constant 9.99999974E-6 : f32
    %21 = vector.broadcast %cst_11 : f32 to vector<16x1xf32>
    %22 = arith.addf %18, %21 : vector<16x1xf32>
    %23 = math.rsqrt %22 : vector<16x1xf32>
    %24 = vector.broadcast %23 : vector<16x1xf32> to vector<16x32xf32>
    %25 = arith.mulf %20, %24 : vector<16x32xf32>
    %c0_12 = arith.constant 0 : index
    %c0_13 = arith.constant 0 : index
    %26 = vector.load %arg5[%c0_12, %c0_13] : memref<1x32xf32, #tpu.memory_space<vmem>>, vector<1x32xf32>
    %27 = vector.broadcast %26 : vector<1x32xf32> to vector<16x32xf32>
    %28 = arith.mulf %25, %27 : vector<16x32xf32>
    %c0_14 = arith.constant 0 : index
    %c0_15 = arith.constant 0 : index
    %29 = vector.load %arg6[%c0_14, %c0_15] : memref<1x32xf32, #tpu.memory_space<vmem>>, vector<1x32xf32>
    %30 = vector.broadcast %29 : vector<1x32xf32> to vector<16x32xf32>
    %31 = arith.addf %28, %30 : vector<16x32xf32>
    %c0_16 = arith.constant 0 : index
    %c0_17 = arith.constant 0 : index
    %32 = vector.load %arg7[%c0_16, %c0_17] : memref<16x32xf32, #tpu.memory_space<vmem>>, vector<16x32xf32>
    tpu.vector_store %arg7[%c0_16, %c0_17], %31 {strides = array<i32>} : memref<16x32xf32, #tpu.memory_space<vmem>>, vector<16x32xf32>,
    return
  }
  func.func @transform_0(%arg0: i32) -> (i32, i32) {
    %c0_i32 = arith.constant 0 : i32
    %c0_i32_0 = arith.constant 0 : i32
    return %arg0, %c0_i32 : i32, i32
  }
  func.func @transform_1(%arg0: i32) -> (i32, i32) {
    %c0_i32 = arith.constant 0 : i32
    %c0_i32_0 = arith.constant 0 : i32
    return %arg0, %c0_i32 : i32, i32
  }
  func.func @transform_2(%arg0: i32) -> (i32, i32) {
    %c0_i32 = arith.constant 0 : i32
    %c0_i32_0 = arith.constant 0 : i32
    %c0_i32_1 = arith.constant 0 : i32
    return %c0_i32, %c0_i32_0 : i32, i32
  }
  func.func @transform_3(%arg0: i32) -> (i32, i32) {
    %c0_i32 = arith.constant 0 : i32
    %c0_i32_0 = arith.constant 0 : i32
    %c0_i32_1 = arith.constant 0 : i32
    return %c0_i32, %c0_i32_0 : i32, i32
  }
  func.func @transform_4(%arg0: i32) -> (i32, i32) {
    %c0_i32 = arith.constant 0 : i32
    %c0_i32_0 = arith.constant 0 : i32
    %c0_i32_1 = arith.constant 0 : i32
    return %c0_i32, %c0_i32_0 : i32, i32
  }
  func.func @transform_5(%arg0: i32) -> (i32, i32) {
    %c0_i32 = arith.constant 0 : i32
    %c0_i32_0 = arith.constant 0 : i32
    %c0_i32_1 = arith.constant 0 : i32
    return %c0_i32, %c0_i32_0 : i32, i32
  }
  func.func @transform_6(%arg0: i32) -> (i32, i32) {
    %c0_i32 = arith.constant 0 : i32
    %c0_i32_0 = arith.constant 0 : i32
    return %arg0, %c0_i32 : i32, i32
  }
}

module attributes {stable_mosaic.version = 11 : i64} {
  func.func @_ffn_add_ln_kernel(%arg0: i32, %arg1: memref<16x32xf32, #tpu.memory_space<vmem>>, %arg2: memref<32x2048xbf16, #tpu.memory_space<vmem>>, %arg3: memref<1x2048xf32, #tpu.memory_space<vmem>>, %arg4: memref<2048x32xbf16, #tpu.memory_space<vmem>>, %arg5: memref<1x32xf32, #tpu.memory_space<vmem>>, %arg6: memref<1x32xf32, #tpu.memory_space<vmem>>, %arg7: memref<1x32xf32, #tpu.memory_space<vmem>>, %arg8: memref<16x32xf32, #tpu.memory_space<vmem>>) attributes {dimension_semantics = [#tpu.dimension_semantics<parallel>], iteration_bounds = array<i64: 1>, scalar_prefetch = 0 : i64, scratch_operands = 0 : i64, tpu.core_type = #tpu.core_type<tc>, window_params = [{transform_indices = @transform_0, window_bounds = array<i64: 16, 32>}, {pipeline_mode = #tpu.pipeline_mode<synchronous>, transform_indices = @transform_1, window_bounds = array<i64: 32, 2048>}, {pipeline_mode = #tpu.pipeline_mode<synchronous>, transform_indices = @transform_2, window_bounds = array<i64: 1, 2048>}, {pipeline_mode = #tpu.pipeline_mode<synchronous>, transform_indices = @transform_3, window_bounds = array<i64: 2048, 32>}, {pipeline_mode = #tpu.pipeline_mode<synchronous>, transform_indices = @transform_4, window_bounds = array<i64: 1, 32>}, {pipeline_mode = #tpu.pipeline_mode<synchronous>, transform_indices = @transform_5, window_bounds = array<i64: 1, 32>}, {pipeline_mode = #tpu.pipeline_mode<synchronous>, transform_indices = @transform_6, window_bounds = array<i64: 1, 32>}, {transform_indices = @transform_7, window_bounds = array<i64: 16, 32>}]} {
    %c0 = arith.constant 0 : index
    %c0_0 = arith.constant 0 : index
    %0 = vector.load %arg1[%c0, %c0_0] : memref<16x32xf32, #tpu.memory_space<vmem>>, vector<16x32xf32>
    %1 = arith.truncf %0 : vector<16x32xf32> to vector<16x32xbf16>
    %c0_1 = arith.constant 0 : index
    %c0_2 = arith.constant 0 : index
    %2 = vector.load %arg2[%c0_1, %c0_2] : memref<32x2048xbf16, #tpu.memory_space<vmem>>, vector<32x2048xbf16>
    %cst = arith.constant dense<0.000000e+00> : vector<16x2048xf32>
    %3 = tpu.matmul %1, %2, %cst {dimension_numbers = #tpu.dot_dimension_numbers<[1], [0], [0], [1], [0, 0, 1, 1], [], []>} : vector<16x32xbf16>, vector<32x2048xbf16>, vector<16x2048xf32> -> vector<16x2048xf32>
    %c0_3 = arith.constant 0 : index
    %c0_4 = arith.constant 0 : index
    %4 = vector.load %arg3[%c0_3, %c0_4] : memref<1x2048xf32, #tpu.memory_space<vmem>>, vector<1x2048xf32>
    %5 = vector.broadcast %4 : vector<1x2048xf32> to vector<16x2048xf32>
    %6 = arith.addf %3, %5 : vector<16x2048xf32>
    %cst_5 = arith.constant 0.000000e+00 : f32
    %7 = vector.broadcast %cst_5 : f32 to vector<16x2048xf32>
    %8 = arith.maximumf %6, %7 : vector<16x2048xf32>
    %9 = arith.truncf %8 : vector<16x2048xf32> to vector<16x2048xbf16>
    %c0_6 = arith.constant 0 : index
    %c0_7 = arith.constant 0 : index
    %10 = vector.load %arg4[%c0_6, %c0_7] : memref<2048x32xbf16, #tpu.memory_space<vmem>>, vector<2048x32xbf16>
    %cst_8 = arith.constant dense<0.000000e+00> : vector<16x32xf32>
    %11 = tpu.matmul %9, %10, %cst_8 {dimension_numbers = #tpu.dot_dimension_numbers<[1], [0], [0], [1], [0, 0, 1, 1], [], []>} : vector<16x2048xbf16>, vector<2048x32xbf16>, vector<16x32xf32> -> vector<16x32xf32>
    %c0_9 = arith.constant 0 : index
    %c0_10 = arith.constant 0 : index
    %12 = vector.load %arg5[%c0_9, %c0_10] : memref<1x32xf32, #tpu.memory_space<vmem>>, vector<1x32xf32>
    %13 = vector.broadcast %12 : vector<1x32xf32> to vector<16x32xf32>
    %14 = arith.addf %11, %13 : vector<16x32xf32>
    %15 = arith.addf %0, %14 : vector<16x32xf32>
    %cst_11 = arith.constant dense<0.000000e+00> : vector<16xf32>
    %16 = vector.multi_reduction <add>, %15, %cst_11 [1] : vector<16x32xf32> to vector<16xf32>
    %17 = vector.shape_cast %16 : vector<16xf32> to vector<16x1xf32>
    %cst_12 = arith.constant 3.200000e+01 : f32
    %18 = vector.broadcast %cst_12 : f32 to vector<16x1xf32>
    %19 = arith.divf %17, %18 : vector<16x1xf32>
    %20 = vector.broadcast %19 : vector<16x1xf32> to vector<16x32xf32>
    %21 = arith.subf %15, %20 : vector<16x32xf32>
    %22 = arith.mulf %21, %21 : vector<16x32xf32>
    %cst_13 = arith.constant dense<0.000000e+00> : vector<16xf32>
    %23 = vector.multi_reduction <add>, %22, %cst_13 [1] : vector<16x32xf32> to vector<16xf32>
    %24 = vector.shape_cast %23 : vector<16xf32> to vector<16x1xf32>
    %cst_14 = arith.constant 3.200000e+01 : f32
    %25 = vector.broadcast %cst_14 : f32 to vector<16x1xf32>
    %26 = arith.divf %24, %25 : vector<16x1xf32>
    %27 = vector.broadcast %19 : vector<16x1xf32> to vector<16x32xf32>
    %28 = arith.subf %15, %27 : vector<16x32xf32>
    %cst_15 = arith.constant 9.99999974E-6 : f32
    %29 = vector.broadcast %cst_15 : f32 to vector<16x1xf32>
    %30 = arith.addf %26, %29 : vector<16x1xf32>
    %31 = math.rsqrt %30 : vector<16x1xf32>
    %32 = vector.broadcast %31 : vector<16x1xf32> to vector<16x32xf32>
    %33 = arith.mulf %28, %32 : vector<16x32xf32>
    %c0_16 = arith.constant 0 : index
    %c0_17 = arith.constant 0 : index
    %34 = vector.load %arg6[%c0_16, %c0_17] : memref<1x32xf32, #tpu.memory_space<vmem>>, vector<1x32xf32>
    %35 = vector.broadcast %34 : vector<1x32xf32> to vector<16x32xf32>
    %36 = arith.mulf %33, %35 : vector<16x32xf32>
    %c0_18 = arith.constant 0 : index
    %c0_19 = arith.constant 0 : index
    %37 = vector.load %arg7[%c0_18, %c0_19] : memref<1x32xf32, #tpu.memory_space<vmem>>, vector<1x32xf32>
    %38 = vector.broadcast %37 : vector<1x32xf32> to vector<16x32xf32>
    %39 = arith.addf %36, %38 : vector<16x32xf32>
    %c0_20 = arith.constant 0 : index
    %c0_21 = arith.constant 0 : index
    %40 = vector.load %arg8[%c0_20, %c0_21] : memref<16x32xf32, #tpu.memory_space<vmem>>, vector<16x32xf32>
    tpu.vector_store %arg8[%c0_20, %c0_21], %39 {strides = array<i32>} : memref<16x32xf32, #tpu.memory_space<vmem>>, vector<16x32xf32>,
    return
  }
  func.func @transform_0(%arg0: i32) -> (i32, i32) {
    %c0_i32 = arith.constant 0 : i32
    %c0_i32_0 = arith.constant 0 : i32
    return %arg0, %c0_i32 : i32, i32
  }
  func.func @transform_1(%arg0: i32) -> (i32, i32) {
    %c0_i32 = arith.constant 0 : i32
    %c0_i32_0 = arith.constant 0 : i32
    %c0_i32_1 = arith.constant 0 : i32
    return %c0_i32, %c0_i32_0 : i32, i32
  }
  func.func @transform_2(%arg0: i32) -> (i32, i32) {
    %c0_i32 = arith.constant 0 : i32
    %c0_i32_0 = arith.constant 0 : i32
    %c0_i32_1 = arith.constant 0 : i32
    return %c0_i32, %c0_i32_0 : i32, i32
  }
  func.func @transform_3(%arg0: i32) -> (i32, i32) {
    %c0_i32 = arith.constant 0 : i32
    %c0_i32_0 = arith.constant 0 : i32
    %c0_i32_1 = arith.constant 0 : i32
    return %c0_i32, %c0_i32_0 : i32, i32
  }
  func.func @transform_4(%arg0: i32) -> (i32, i32) {
    %c0_i32 = arith.constant 0 : i32
    %c0_i32_0 = arith.constant 0 : i32
    %c0_i32_1 = arith.constant 0 : i32
    return %c0_i32, %c0_i32_0 : i32, i32
  }
  func.func @transform_5(%arg0: i32) -> (i32, i32) {
    %c0_i32 = arith.constant 0 : i32
    %c0_i32_0 = arith.constant 0 : i32
    %c0_i32_1 = arith.constant 0 : i32
    return %c0_i32, %c0_i32_0 : i32, i32
  }
  func.func @transform_6(%arg0: i32) -> (i32, i32) {
    %c0_i32 = arith.constant 0 : i32
    %c0_i32_0 = arith.constant 0 : i32
    %c0_i32_1 = arith.constant 0 : i32
    return %c0_i32, %c0_i32_0 : i32, i32
  }
  func.func @transform_7(%arg0: i32) -> (i32, i32) {
    %c0_i32 = arith.constant 0 : i32
    %c0_i32_0 = arith.constant 0 : i32
    return %arg0, %c0_i32 : i32, i32
  }
}

module attributes {stable_mosaic.version = 11 : i64} {
  func.func @_linear_kernel(%arg0: i32, %arg1: memref<16x32xf32, #tpu.memory_space<vmem>>, %arg2: memref<32x16xbf16, #tpu.memory_space<vmem>>, %arg3: memref<1x16xf32, #tpu.memory_space<vmem>>, %arg4: memref<16x16xf32, #tpu.memory_space<vmem>>) attributes {dimension_semantics = [#tpu.dimension_semantics<parallel>], iteration_bounds = array<i64: 1>, scalar_prefetch = 0 : i64, scratch_operands = 0 : i64, tpu.core_type = #tpu.core_type<tc>, window_params = [{transform_indices = @transform_0, window_bounds = array<i64: 16, 32>}, {pipeline_mode = #tpu.pipeline_mode<synchronous>, transform_indices = @transform_1, window_bounds = array<i64: 32, 16>}, {pipeline_mode = #tpu.pipeline_mode<synchronous>, transform_indices = @transform_2, window_bounds = array<i64: 1, 16>}, {transform_indices = @transform_3, window_bounds = array<i64: 16, 16>}]} {
    %c0 = arith.constant 0 : index
    %c0_0 = arith.constant 0 : index
    %0 = vector.load %arg1[%c0, %c0_0] : memref<16x32xf32, #tpu.memory_space<vmem>>, vector<16x32xf32>
    %1 = arith.truncf %0 : vector<16x32xf32> to vector<16x32xbf16>
    %c0_1 = arith.constant 0 : index
    %c0_2 = arith.constant 0 : index
    %2 = vector.load %arg2[%c0_1, %c0_2] : memref<32x16xbf16, #tpu.memory_space<vmem>>, vector<32x16xbf16>
    %cst = arith.constant dense<0.000000e+00> : vector<16x16xf32>
    %3 = tpu.matmul %1, %2, %cst {dimension_numbers = #tpu.dot_dimension_numbers<[1], [0], [0], [1], [0, 0, 1, 1], [], []>} : vector<16x32xbf16>, vector<32x16xbf16>, vector<16x16xf32> -> vector<16x16xf32>
    %c0_3 = arith.constant 0 : index
    %c0_4 = arith.constant 0 : index
    %4 = vector.load %arg3[%c0_3, %c0_4] : memref<1x16xf32, #tpu.memory_space<vmem>>, vector<1x16xf32>
    %5 = vector.broadcast %4 : vector<1x16xf32> to vector<16x16xf32>
    %6 = arith.addf %3, %5 : vector<16x16xf32>
    %c0_5 = arith.constant 0 : index
    %c0_6 = arith.constant 0 : index
    %7 = vector.load %arg4[%c0_5, %c0_6] : memref<16x16xf32, #tpu.memory_space<vmem>>, vector<16x16xf32>
    tpu.vector_store %arg4[%c0_5, %c0_6], %6 {strides = array<i32>} : memref<16x16xf32, #tpu.memory_space<vmem>>, vector<16x16xf32>,
    return
  }
  func.func @transform_0(%arg0: i32) -> (i32, i32) {
    %c0_i32 = arith.constant 0 : i32
    %c0_i32_0 = arith.constant 0 : i32
    return %arg0, %c0_i32 : i32, i32
  }
  func.func @transform_1(%arg0: i32) -> (i32, i32) {
    %c0_i32 = arith.constant 0 : i32
    %c0_i32_0 = arith.constant 0 : i32
    %c0_i32_1 = arith.constant 0 : i32
    return %c0_i32, %c0_i32_0 : i32, i32
  }
  func.func @transform_2(%arg0: i32) -> (i32, i32) {
    %c0_i32 = arith.constant 0 : i32
    %c0_i32_0 = arith.constant 0 : i32
    %c0_i32_1 = arith.constant 0 : i32
    return %c0_i32, %c0_i32_0 : i32, i32
  }
  func.func @transform_3(%arg0: i32) -> (i32, i32) {
    %c0_i32 = arith.constant 0 : i32
    %c0_i32_0 = arith.constant 0 : i32
    return %arg0, %c0_i32 : i32, i32
  }
}

</mosaic_0001>

<bundles_post_ra>
// kernel: transformer_encoder_forward.11
= control target key start
LH: loop header
LB: loop body
LE: loop exit
PB: predicated region body
PF: predicated region fallthrough
CT: control target
= control target key end

     0   :  { %v124_v0 = vmov 0.0   ;;  %vm125_vm0 = vmmov 0   ;;  %vm41_vm1 = vcmask 261120   ;;  %vm94_vm2 = vcmask 781312   ;;  %s167_s1 = inlined_call_operand.vmem [shape: bf16[32,96], index: 1, kind: input, shape index: {}]   ;;  %s168_s0 = inlined_call_operand.vmem [shape: f32[16,32], index: 0, kind: input, shape index: {}]   ;;  %s169_s2 = inlined_call_operand.vmem [shape: f32[1,96], index: 2, kind: input, shape index: {}]   ;;  %s170_s3 = inlined_call_operand.vmem [shape: bf16[16,96], index: 3, kind: output, shape index: {}]  }
   0x1   :  { %112 = vmatprep.subr.bf16.mxu0 %v124_v0  ;;  %v122_v1 = vld [vmem:[%s167_s1 + $0x8] sm:$0xff]   ;;  %116 = vmatprep.mubr.msk.bf16.mxu0 %vm125_vm0, %v124_v0  ;;  %v123_v2 = vld [vmem:[%s167_s1] sm:$0xff]  }
   0x2   :  { %113 = vmatpush3.bf16.msra.mxu0 %v122_v1  ;;  %v15_v3 = vld [vmem:[%s168_s0] sm:$0xff]  ;;  %v16_v4 = vld [vmem:[%s168_s0 + $0x8] sm:$0xff] }
   0x3   :  { %114 = vmatprep.subr.bf16.mxu0 %v124_v0  ;;  %v17_v5 = vpack.c.bf16 %v16_v4, %v15_v3  ;;  %v101_v6 = vld [vmem:[%s169_s2] ss:$0 sm:$0xff] }
   0x6   :  { %115 = vmatpush3.bf16.msra.mxu0 %v123_v2 }
   0x9   :  { %117 = vmatmul.mubr.msk.bf16.vlgmr.msra.gmra.mxu0 %vm41_vm1, %v17_v5 }
  0xc9   :  { %v79_v7 = vpop.f32.mrf.mxu0 }
  0xca   :  { %v80_v8 = vadd.f32 %v101_v6, %v79_v7 }
  0xcb   :  { %v118_v9 = vpop.f32.mrf.mxu0 }
  0xcc   :  { %v107_v10 = vpack.c.bf16 %v80_v8, %v80_v8 }
  0xcd   :  { %v82_v11 = vpop.f32.mrf.mxu0 }
  0xce   :  { %95 = vst.msk [vmem:[%s170_s3] sm:$0xf] %vm94_vm2, %v107_v10  ;;  %v83_v12 = vadd.f32 %v101_v6, %v82_v11 }
  0xcf   :  { %v119_v13 = vpop.f32.mrf.mxu0 }
  0xd0   :  { %v108_v14 = vpack.c.bf16 %v83_v12, %v83_v12 }
  0xd2   :  { %96 = vst.msk [vmem:[%s170_s3 + $0x4] sm:$0xf] %vm94_vm2, %v108_v14 }

// kernel: transformer_encoder_forward.10
= control target key start
LH: loop header
LB: loop body
LE: loop exit
PB: predicated region body
PF: predicated region fallthrough
CT: control target
= control target key end

     0   :  { %v99_v0 = vmov 0.0   ;;  %vm100_vm0 = vmmov 0   ;;  %vm33_vm1 = vcmask 130048   ;;  %vm78_vm2 = vcmask 261120   ;;  %s139_s1 = inlined_call_operand.vmem [shape: bf16[16,32], index: 1, kind: input, shape index: {}]   ;;  %s140_s0 = inlined_call_operand.vmem [shape: f32[16,16], index: 0, kind: input, shape index: {}]   ;;  %s141_s2 = inlined_call_operand.vmem [shape: f32[1,32], index: 2, kind: input, shape index: {}]   ;;  %s142_s3 = inlined_call_operand.vmem [shape: f32[16,32], index: 3, kind: output, shape index: {}]  }
   0x1   :  { %90 = vmatprep.subr.bf16.mxu0 %v99_v0  ;;  %v98_v1 = vld [vmem:[%s139_s1] sm:$0xff]   ;;  %92 = vmatprep.mubr.msk.bf16.mxu0 %vm100_vm0, %v99_v0  ;;  %v16_v3 = vld [vmem:[%s140_s0 + $0x8] sm:$0xff] }
   0x2   :  { %v15_v2 = vld [vmem:[%s140_s0] sm:$0xff]  ;;  %91 = vmatpush3.bf16.msra.mxu0 %v98_v1 }
   0x3   :  { %v17_v4 = vpack.c.bf16 %v16_v3, %v15_v2  ;;  %v85_v5 = vld [vmem:[%s141_s2] ss:$0 sm:$0xff] }
   0x5   :  { %93 = vmatmul.mubr.msk.bf16.vlgmr.msra.gmra.mxu0 %vm33_vm1, %v17_v4 }
  0xc5   :  { %v71_v6 = vpop.f32.mrf.mxu0 }
  0xc6   :  { %v72_v7 = vadd.f32 %v85_v5, %v71_v6 }
  0xc7   :  { %v94_v8 = vpop.f32.mrf.mxu0 }
  0xc8   :  { %79 = vst.msk [vmem:[%s142_s3] sm:$0xff] %vm78_vm2, %v72_v7 }
  0xc9   :  { %v74_v9 = vpop.f32.mrf.mxu0 }
  0xca   :  { %v75_v10 = vadd.f32 %v85_v5, %v74_v9 }
  0xcb   :  { %v95_v11 = vpop.f32.mrf.mxu0 }
  0xcc   :  { %80 = vst.msk [vmem:[%s142_s3 + $0x8] sm:$0xff] %vm78_vm2, %v75_v10 }

// kernel: transformer_encoder_forward.13
= control target key start
LH: loop header
LB: loop body
LE: loop exit
PB: predicated region body
PF: predicated region fallthrough
CT: control target
= control target key end

     0   :  { %v181_v0 = vmov 0.0   ;;  %vm182_vm0 = vmmov 0   ;;  %vm54_vm1 = vcmask 261120   ;;  %s255_s2 = inlined_call_operand.vmem [shape: bf16[32,32], index: 2, kind: input, shape index: {}]   ;;  %s256_s0 = inlined_call_operand.vmem [shape: bf16[16,32], index: 0, kind: input, shape index: {}]   ;;  %s257_s3 = inlined_call_operand.vmem [shape: f32[1,32], index: 3, kind: input, shape index: {}]   ;;  %s258_s1 = inlined_call_operand.vmem [shape: f32[16,32], index: 1, kind: input, shape index: {}]   ;;  %s259_s4 = inlined_call_operand.vmem [shape: f32[1,32], index: 4, kind: input, shape index: {}]   ;;  %s260_s5 = inlined_call_operand.vmem [shape: f32[1,32], index: 5, kind: input, shape index: {}]   ;;  %s261_s6 = inlined_call_operand.vmem [shape: f32[16,32], index: 6, kind: output, shape index: {}]  }
   0x1   :  { %164 = vmatprep.subr.bf16.mxu0 %v181_v0  ;;  %v174_v1 = vld [vmem:[%s255_s2 + $0x8] sm:$0xff]   ;;  %168 = vmatprep.mubr.msk.bf16.mxu0 %vm182_vm0, %v181_v0  ;;  %v175_v2 = vld [vmem:[%s255_s2] sm:$0xff]  }
   0x2   :  { %165 = vmatpush3.bf16.msra.mxu0 %v174_v1  ;;  %v176_v3 = vld [vmem:[%s256_s0] sm:$0xff]   ;;  %v100_v11 = vld [vmem:[%s258_s1 + $0x8] sm:$0xff] }
   0x3   :  { %166 = vmatprep.subr.bf16.mxu0 %v181_v0  ;;  %v154_v4 = vld [vmem:[%s257_s3] ss:$0 sm:$0xff] }
   0x4   :  { %v99_v6 = vld [vmem:[%s258_s1] sm:$0xff] }
   0x5   :  { %v159_v34 = vld [vmem:[%s259_s4] ss:$0 sm:$0xff] }
   0x6   :  { %167 = vmatpush3.bf16.msra.mxu0 %v175_v2  ;;  %v160_v36 = vld [vmem:[%s260_s5] ss:$0 sm:$0xff] }
   0x9   :  { %169 = vmatmul.mubr.msk.bf16.vlgmr.msra.gmra.mxu0 %vm54_vm1, %v176_v3 }
  0xc9   :  { %v92_v5 = vpop.f32.mrf.mxu0 }
  0xca   :  { %v93_v7 = vadd.f32 %v154_v4, %v92_v5 }
  0xcb   :  { %v170_v8 = vpop.f32.mrf.mxu0 }
  0xcc   :  { %v101_v9 = vadd.f32 %v99_v6, %v93_v7 }
  0xcd   :  { %v95_v10 = vpop.f32.mrf.mxu0 }
  0xce   :  { %v96_v12 = vadd.f32 %v154_v4, %v95_v10  ;;  %v103_v13 = vsel %vm54_vm1, %v101_v9, 0.0 }
  0xcf   :  { %104 = vadd.xlane.f32.xlu0 %v103_v13  ;;  %v171_v14 = vpop.f32.mrf.mxu0 }
  0xd0   :  { %v102_v15 = vadd.f32 %v100_v11, %v96_v12 }
  0xd2   :  { %v106_v16 = vsel %vm54_vm1, %v102_v15, 0.0 }
  0xd3   :  { %107 = vadd.xlane.f32.xlu0 %v106_v16 }
 0x158   :  { %v105_v17 = vpop.xlane.xlu0 %104 }
 0x159   :  { %v110_v18 = vmul.f32 0.03125, %v105_v17 }
 0x15b   :  { %v112_v19 = vsub.f32 %v101_v9, %v110_v18 }
 0x15c   :  { %v108_v20 = vpop.xlane.xlu0 %107 }
 0x15d   :  { %v111_v21 = vmul.f32 0.03125, %v108_v20  ;;  %v114_v22 = vmul.f32 %v112_v19, %v112_v19 }
 0x15f   :  { %v113_v23 = vsub.f32 %v102_v15, %v111_v21  ;;  %v116_v24 = vsel %vm54_vm1, %v114_v22, 0.0 }
 0x160   :  { %117 = vadd.xlane.f32.xlu1 %v116_v24 }
 0x161   :  { %v115_v25 = vmul.f32 %v113_v23, %v113_v23 }
 0x163   :  { %v119_v26 = vsel %vm54_vm1, %v115_v25, 0.0 }
 0x164   :  { %120 = vadd.xlane.f32.xlu1 %v119_v26 }
 0x1e9   :  { %v118_v27 = vpop.xlane.xlu1 %117 }
 0x1ea   :  { %v122_v28 = vmul.f32 0.03125, %v118_v27 }
 0x1ec   :  { %v124_v29 = vadd.f32 1e-05, %v122_v28 }
 0x1ed   :  { %v121_v30 = vpop.xlane.xlu1 %120 }
 0x1ee   :  { %177 = vrsqrt.f32 %v124_v29  ;;  %v123_v31 = vmul.f32 0.03125, %v121_v30 }
 0x1f0   :  { %v125_v32 = vadd.f32 1e-05, %v123_v31 }
 0x1f2   :  { %179 = vrsqrt.f32 %v125_v32 }
 0x1fb   :  { %v178_v33 = vpop.eup %177 }
 0x1fc   :  { %v128_v35 = vmul.f32 %v178_v33, %v112_v19 }
 0x1fe   :  { %v137_v37 = vmul.f32 %v159_v34, %v128_v35 }
 0x1ff   :  { %v180_v38 = vpop.eup %179 }
 0x200   :  { %v146_v39 = vadd.f32 %v160_v36, %v137_v37  ;;  %v129_v40 = vmul.f32 %v180_v38, %v113_v23 }
 0x202   :  { %148 = vst.msk [vmem:[%s261_s6] sm:$0xff] %vm54_vm1, %v146_v39  ;;  %v138_v41 = vmul.f32 %v159_v34, %v129_v40 }
 0x204   :  { %v147_v42 = vadd.f32 %v160_v36, %v138_v41 }
 0x206   :  { %149 = vst.msk [vmem:[%s261_s6 + $0x8] sm:$0xff] %vm54_vm1, %v147_v42 }

// kernel: transformer_encoder_forward.19
= control target key start
LH: loop header
LB: loop body
LE: loop exit
PB: predicated region body
PF: predicated region fallthrough
CT: control target
= control target key end

     0   :  { %v112_v0 = vmov 0.0   ;;  %vm113_vm0 = vmmov 0   ;;  %vm41_vm1 = vcmask 261120   ;;  %vm86_vm2 = vcmask 130048   ;;  %s155_s1 = inlined_call_operand.vmem [shape: bf16[32,16], index: 1, kind: input, shape index: {}]   ;;  %s156_s0 = inlined_call_operand.vmem [shape: f32[16,32], index: 0, kind: input, shape index: {}]   ;;  %s157_s2 = inlined_call_operand.vmem [shape: f32[1,16], index: 2, kind: input, shape index: {}]   ;;  %s158_s3 = inlined_call_operand.vmem [shape: f32[16,16], index: 3, kind: output, shape index: {}]  }
   0x1   :  { %100 = vmatprep.subr.bf16.mxu0 %v112_v0  ;;  %v110_v1 = vld [vmem:[%s155_s1 + $0x8] sm:$0xff]   ;;  %104 = vmatprep.mubr.msk.bf16.mxu0 %vm113_vm0, %v112_v0  ;;  %v111_v2 = vld [vmem:[%s155_s1] sm:$0xff]  }
   0x2   :  { %101 = vmatpush3.bf16.msra.mxu0 %v110_v1  ;;  %v15_v3 = vld [vmem:[%s156_s0] sm:$0xff]  ;;  %v16_v4 = vld [vmem:[%s156_s0 + $0x8] sm:$0xff] }
   0x3   :  { %102 = vmatprep.subr.bf16.mxu0 %v112_v0  ;;  %v17_v5 = vpack.c.bf16 %v16_v4, %v15_v3  ;;  %v93_v6 = vld [vmem:[%s157_s2] ss:$0 sm:$0xff] }
   0x6   :  { %103 = vmatpush3.bf16.msra.mxu0 %v111_v2 }
   0x9   :  { %105 = vmatmul.mubr.msk.bf16.vlgmr.msra.gmra.mxu0 %vm41_vm1, %v17_v5 }
  0xc9   :  { %v79_v7 = vpop.f32.mrf.mxu0 }
  0xca   :  { %v80_v8 = vadd.f32 %v93_v6, %v79_v7 }
  0xcb   :  { %v106_v9 = vpop.f32.mrf.mxu0 }
  0xcc   :  { %87 = vst.msk [vmem:[%s158_s3] sm:$0xff] %vm86_vm2, %v80_v8 }
  0xcd   :  { %v82_v10 = vpop.f32.mrf.mxu0 }
  0xce   :  { %v83_v11 = vadd.f32 %v93_v6, %v82_v10 }
  0xcf   :  { %v107_v12 = vpop.f32.mrf.mxu0 }
  0xd0   :  { %88 = vst.msk [vmem:[%s158_s3 + $0x8] sm:$0xff] %vm86_vm2, %v83_v11 }

// kernel: transformer_encoder_forward.12
= control target key start
LH: loop header
LB: loop body
LE: loop exit
PB: predicated region body
PF: predicated region fallthrough
CT: control target
= control target key end

     0   :  { %v21_v0 = vlaneseq  ;;  %v4559_v1 = vmov 1966171168   ;;  %v4560_v3 = vmov 0.0   ;;  %vm4561_vm0 = vmmov 0   ;;  %s4562_s18 = smov 96   ;;  %s4564_s23 = smov 88   ;;  %s5440_s0 = inlined_call_operand.vmem [shape: bf16[8,2,96], index: 0, kind: input, shape index: {}]   ;;  %s5441_s1 = inlined_call_operand.vmem [shape: bf16[8,2,32], index: 1, kind: output, shape index: {}]  }
   0x1   :  { %v19_v2 = vunpack.c.l.s4 %v4559_v1  ;;  %4030 = vmatprep.subr.bf16.mxu0 %v4560_v3  ;;  %4036 = vmatprep.subr.bf16.mxu1 %v4560_v3  ;;  %v9_v5 = vld [vmem:[%s5440_s0] sm:$0x1]  ;;  %v10_v7 = vld [vmem:[%s5440_s0 + $0x1] sm:$0x1]  ;;  %v4597_v8 = vld [vmem:[%s5440_s0 + $0x2] sm:$0x1] }
   0x2   :  { %v22_v4 = vshrl.u32 %v21_v0, 7  ;;  %v4602_v9 = vld [vmem:[%s5440_s0 + $0x3] sm:$0x1]  ;;  %4032 = vmatprep.mubr.msk.bf16.mxu0 %vm4561_vm0, %v4560_v3  ;;  %4038 = vmatprep.mubr.msk.bf16.mxu1 %vm4561_vm0, %v4560_v3  ;;  %v4613_v15 = vld [vmem:[%s5440_s0 + $0x4] sm:$0x1]  ;;  %vm34_vm1 = vcmask 64512  }
   0x3   :  { %v20_v6 = vunpack.c.0.s8 %v19_v2  ;;  %v4618_v16 = vld [vmem:[%s5440_s0 + $0x5] sm:$0x1]  ;;  %v4635_v23 = vld [vmem:[%s5440_s0 + $0x6] sm:$0x1]  ;;  %v4640_v24 = vld [vmem:[%s5440_s0 + $0x7] sm:$0x1] }
   0x4   :  { %s4563_s0 = smov 64   ;;  %vm633_vm2 = vcmask 1040384   ;;  %vm530_vm3 = vcmask 9216   ;;  %s4565_s24 = smov 120   ;;  %vm629_vm4 = vcmask 15360   ;;  %vm1013_vm5 = vcmask 58368  }
   0x5   :  { %v23_v10 = vsub.s32 %v20_v6, %v22_v4  ;;  %s4566_s25 = smov 56   ;;  %s4567_s26 = smov 80   ;;  %vm1942_vm6 = vcmask 123968   ;;  %vm2871_vm7 = vcmask 189568   ;;  %vm3800_vm8 = vcmask 255168  }
   0x6   :  { %s4568_s27 = smov 112   ;;  %s4569_s28 = smov 48   ;;  %vm3825_vm9 = vcmask 253952  }
   0x7   :  { %v24_v11 = vrot.slane %v9_v5, %v23_v10  ;;  %v88_v12 = vrot.slane %v10_v7, %v23_v10  ;;  %v151_v13 = vrot.slane %v4597_v8, %v23_v10  ;;  %v214_v14 = vrot.slane %v4602_v9, %v23_v10  ;;  %s4570_s29 = smov 72   ;;  %s4571_s30 = smov 104  }
   0x8   :  { %v277_v19 = vrot.slane %v4613_v15, %v23_v10  ;;  %v340_v22 = vrot.slane %v4618_v16, %v23_v10  ;;  %v403_v25 = vrot.slane %v4635_v23, %v23_v10  ;;  %v466_v28 = vrot.slane %v4640_v24, %v23_v10  ;;  %s4572_s2 = smov 40   ;;  %s4573_s3 = smov 8  }
   0x9   :  { %v4620_v17 = vrot.slane %v24_v11, %v23_v10  ;;  %v4622_v18 = vrot.slane %v151_v13, %v23_v10  ;;  %v4626_v20 = vrot.slane %v88_v12, %v23_v10  ;;  %v4629_v21 = vrot.slane %v214_v14, %v23_v10  ;;  %s4574_s4 = smov 16   ;;  %s4575_s5 = smov 24  }
   0xa   :  { %v4645_v26 = vrot.slane %v277_v19, %v23_v10  ;;  %v4647_v27 = vrot.slane %v340_v22, %v23_v10  ;;  %v4652_v29 = vrot.slane %v403_v25, %v23_v10  ;;  %v4654_v30 = vrot.slane %v466_v28, %v23_v10 }
   0xb   :  { %32 = vrot.lane.b32.xlu0 %v4620_v17, %s4562_s18  ;;  %159 = vrot.lane.b32.xlu1 %v4622_v18, %s4562_s18 }
   0xf   :  { %96 = vrot.lane.b32.xlu0 %v4626_v20, %s4562_s18  ;;  %222 = vrot.lane.b32.xlu1 %v4629_v21, %s4562_s18 }
  0x13   :  { %285 = vrot.lane.b32.xlu0 %v4645_v26, %s4562_s18  ;;  %348 = vrot.lane.b32.xlu1 %v4647_v27, %s4562_s18 }
  0x17   :  { %411 = vrot.lane.b32.xlu0 %v4652_v29, %s4562_s18  ;;  %474 = vrot.lane.b32.xlu1 %v4654_v30, %s4562_s18 }
  0x1b   :  { %627 = vrot.lane.b32.xlu1 %v4620_v17, %s4563_s0  ;;  %677 = vrot.lane.b32.xlu0 %v4626_v20, %s4563_s0 }
  0x1f   :  { %725 = vrot.lane.b32.xlu1 %v4622_v18, %s4563_s0 }
  0x23   :  { %773 = vrot.lane.b32.xlu1 %v4629_v21, %s4563_s0 }
  0x7d   :  { %v33_v31 = vpop.permute.xlu0 %32  ;;  %v160_v33 = vpop.permute.xlu1 %159 }
  0x7e   :  { %v39_v32 = vsel %vm34_vm1, %v33_v31, 0  ;;  %v165_v36 = vsel %vm34_vm1, %v160_v33, 0 }
  0x7f   :  { %4031 = vmatpush3.bf16.xpose.msra.mxu0 %v39_v32 }
  0x80   :  { %4042 = vmatprep.subr.bf16.mxu0 %v4560_v3 }
  0x81   :  { %v97_v34 = vpop.permute.xlu0 %96  ;;  %v223_v37 = vpop.permute.xlu1 %222 }
  0x82   :  { %v102_v35 = vsel %vm34_vm1, %v97_v34, 0  ;;  %v228_v38 = vsel %vm34_vm1, %v223_v37, 0 }
  0x83   :  { %4037 = vmatpush3.bf16.xpose.msra.mxu1 %v102_v35 }
  0x84   :  { %4048 = vmatprep.subr.bf16.mxu1 %v4560_v3 }
  0x85   :  { %v286_v39 = vpop.permute.xlu0 %285  ;;  %v349_v41 = vpop.permute.xlu1 %348 }
  0x86   :  { %4033 = vmatmul.mubr.msk.bf16.vlgmr.msra.gmra.mxu0 %vm34_vm1, %v9_v5  ;;  %v291_v40 = vsel %vm34_vm1, %v286_v39, 0  ;;  %v354_v42 = vsel %vm34_vm1, %v349_v41, 0 }
  0x87   :  { %4043 = vmatpush3.bf16.xpose.msra.mxu0 %v165_v36  ;;  %4044 = vmatprep.mubr.msk.bf16.mxu0 %vm4561_vm0, %v4560_v3 }
  0x88   :  { %4054 = vmatprep.subr.bf16.mxu0 %v4560_v3 }
  0x89   :  { %v412_v43 = vpop.permute.xlu0 %411  ;;  %v475_v45 = vpop.permute.xlu1 %474 }
  0x8a   :  { %4039 = vmatmul.mubr.msk.bf16.vlgmr.msra.gmra.mxu1 %vm34_vm1, %v10_v7  ;;  %v417_v44 = vsel %vm34_vm1, %v412_v43, 0  ;;  %v480_v46 = vsel %vm34_vm1, %v475_v45, 0 }
  0x8b   :  { %4049 = vmatpush3.bf16.xpose.msra.mxu1 %v228_v38  ;;  %4050 = vmatprep.mubr.msk.bf16.mxu1 %vm4561_vm0, %v4560_v3 }
  0x8c   :  { %4060 = vmatprep.subr.bf16.mxu1 %v4560_v3 }
  0x8d   :  { %v628_v47 = vpop.permute.xlu1 %627  ;;  %v678_v48 = vpop.permute.xlu0 %677 }
  0x8e   :  { %4045 = vmatmul.mubr.msk.bf16.vlgmr.msra.gmra.mxu0 %vm34_vm1, %v4597_v8  ;;  %v635_v49 = vsel %vm633_vm2, %v628_v47, 0  ;;  %v683_v50 = vsel %vm633_vm2, %v678_v48, 0 }
  0x8f   :  { %4055 = vmatpush3.bf16.xpose.msra.mxu0 %v291_v40  ;;  %4056 = vmatprep.mubr.msk.bf16.mxu0 %vm4561_vm0, %v4560_v3 }
  0x90   :  { %4066 = vmatprep.subr.bf16.mxu0 %v4560_v3 }
  0x92   :  { %4051 = vmatmul.mubr.msk.bf16.vlgmr.msra.gmra.mxu1 %vm34_vm1, %v4602_v9 }
  0x93   :  { %4061 = vmatpush3.bf16.xpose.msra.mxu1 %v354_v42  ;;  %4062 = vmatprep.mubr.msk.bf16.mxu1 %vm4561_vm0, %v4560_v3 }
  0x94   :  { %4072 = vmatprep.subr.bf16.mxu1 %v4560_v3 }
  0x96   :  { %4057 = vmatmul.mubr.msk.bf16.vlgmr.msra.gmra.mxu0 %vm34_vm1, %v4613_v15 }
  0x97   :  { %4067 = vmatpush3.bf16.xpose.msra.mxu0 %v417_v44  ;;  %4068 = vmatprep.mubr.msk.bf16.mxu0 %vm4561_vm0, %v4560_v3  ;;  %v4731_v44 = vpop.permute.xlu1 %725 }
  0x98   :  { %4078 = vmatprep.subr.bf16.mxu0 %v4560_v3 }
  0x9a   :  { %4063 = vmatmul.mubr.msk.bf16.vlgmr.msra.gmra.mxu1 %vm34_vm1, %v4618_v16 }
  0x9b   :  { %4073 = vmatpush3.bf16.xpose.msra.mxu1 %v480_v46  ;;  %4074 = vmatprep.mubr.msk.bf16.mxu1 %vm4561_vm0, %v4560_v3  ;;  %v4733_v45 = vpop.permute.xlu1 %773 }
  0x9c   :  { %4084 = vmatprep.subr.bf16.mxu1 %v4560_v3 }
  0x9e   :  { %4069 = vmatmul.mubr.msk.bf16.vlgmr.msra.gmra.mxu0 %vm34_vm1, %v4635_v23 }
  0x9f   :  { %4080 = vmatprep.mubr.msk.bf16.mxu0 %vm4561_vm0, %v4560_v3  ;;  %4079 = vmatpush3.bf16.msra.mxu0 %v635_v49 }
  0xa0   :  { %4090 = vmatprep.subr.bf16.mxu0 %v4560_v3 }
  0xa2   :  { %4075 = vmatmul.mubr.msk.bf16.vlgmr.msra.gmra.mxu1 %vm34_vm1, %v4640_v24 }
  0xa3   :  { %4086 = vmatprep.mubr.msk.bf16.mxu1 %vm4561_vm0, %v4560_v3  ;;  %4085 = vmatpush3.bf16.msra.mxu1 %v683_v50 }
  0xa4   :  { %4096 = vmatprep.subr.bf16.mxu1 %v4560_v3 }
 0x146   :  { %v75_v51 = vpop.f32.mrf.mxu0 }
 0x147   :  { %v522_v52 = vmul.f32 0.35355338, %v75_v51 }
 0x148   :  { %v4034_v53 = vpop.f32.mrf.mxu0 }
 0x149   :  { %v531_v54 = vsel %vm530_vm3, %v522_v52, -inf }
 0x14a   :  { %532 = vmax.xlane.f32.xlu0 %v531_v54  ;;  %v78_v55 = vpop.f32.mrf.mxu0  ;;  %v138_v56 = vpop.f32.mrf.mxu1 }
 0x14b   :  { %v523_v57 = vmul.f32 0.35355338, %v138_v56 }
 0x14c   :  { %v4035_v58 = vpop.f32.mrf.mxu0  ;;  %v4040_v59 = vpop.f32.mrf.mxu1 }
 0x14d   :  { %v534_v60 = vsel %vm530_vm3, %v523_v57, -inf }
 0x14e   :  { %v201_v61 = vpop.f32.mrf.mxu0  ;;  %535 = vmax.xlane.f32.xlu1 %v534_v60  ;;  %v141_v62 = vpop.f32.mrf.mxu1 }
 0x14f   :  { %v524_v63 = vmul.f32 0.35355338, %v201_v61 }
 0x150   :  { %v4041_v0 = vpop.f32.mrf.mxu1  ;;  %v4046_v1 = vpop.f32.mrf.mxu0 }
 0x151   :  { %v537_v2 = vsel %vm530_vm3, %v524_v63, -inf }
 0x152   :  { %538 = vmax.xlane.f32.xlu0 %v537_v2  ;;  %v204_v4 = vpop.f32.mrf.mxu0  ;;  %v264_v5 = vpop.f32.mrf.mxu1 }
 0x153   :  { %v525_v6 = vmul.f32 0.35355338, %v264_v5 }
 0x154   :  { %v4047_v7 = vpop.f32.mrf.mxu0  ;;  %v4052_v8 = vpop.f32.mrf.mxu1 }
 0x155   :  { %v540_v9 = vsel %vm530_vm3, %v525_v6, -inf }
 0x156   :  { %541 = vmax.xlane.f32.xlu0 %v540_v9  ;;  %v267_v10 = vpop.f32.mrf.mxu1  ;;  %v327_v11 = vpop.f32.mrf.mxu0 }
 0x157   :  { %v526_v12 = vmul.f32 0.35355338, %v327_v11 }
 0x158   :  { %v4053_v13 = vpop.f32.mrf.mxu1  ;;  %v4058_v14 = vpop.f32.mrf.mxu0 }
 0x159   :  { %v543_v15 = vsel %vm530_vm3, %v526_v12, -inf }
 0x15a   :  { %v390_v16 = vpop.f32.mrf.mxu1  ;;  %544 = vmax.xlane.f32.xlu1 %v543_v15  ;;  %v330_v19 = vpop.f32.mrf.mxu0 }
 0x15b   :  { %v527_v22 = vmul.f32 0.35355338, %v390_v16 }
 0x15c   :  { %v4059_v23 = vpop.f32.mrf.mxu0  ;;  %v4064_v24 = vpop.f32.mrf.mxu1 }
 0x15d   :  { %v546_v25 = vsel %vm530_vm3, %v527_v22, -inf }
 0x15e   :  { %547 = vmax.xlane.f32.xlu0 %v546_v25  ;;  %v393_v28 = vpop.f32.mrf.mxu1  ;;  %v453_v31 = vpop.f32.mrf.mxu0 }
 0x15f   :  { %v4722_v32 = vmul.f32 0.35355338, %v453_v31 }
 0x160   :  { %v4065_v33 = vpop.f32.mrf.mxu1  ;;  %v4070_v34 = vpop.f32.mrf.mxu0 }
 0x161   :  { %v549_v35 = vsel %vm530_vm3, %v4722_v32, -inf }
 0x162   :  { %v516_v36 = vpop.f32.mrf.mxu1  ;;  %550 = vmax.xlane.f32.xlu1 %v549_v35  ;;  %v456_v37 = vpop.f32.mrf.mxu0 }
 0x163   :  { %v529_v38 = vmul.f32 0.35355338, %v516_v36 }
 0x164   :  { %v4071_v39 = vpop.f32.mrf.mxu0  ;;  %v4076_v40 = vpop.f32.mrf.mxu1 }
 0x165   :  { %v552_v41 = vsel %vm530_vm3, %v529_v38, -inf }
 0x166   :  { %553 = vmax.xlane.f32.xlu0 %v552_v41  ;;  %v519_v42 = vpop.f32.mrf.mxu1 }
 0x167   :  { %v731_v42 = vsel %vm633_vm2, %v4731_v44, 0 }
 0x168   :  { %v4077_v43 = vpop.f32.mrf.mxu1 }
 0x173   :  { %869 = vrot.lane.b32.xlu1 %v4647_v27, %s4563_s0 }
 0x17c   :  { %821 = vrot.lane.b32.xlu0 %v4645_v26, %s4563_s0 }
 0x1d3   :  { %v533_v46 = vpop.xlane.xlu0 %532 }
 0x1d4   :  { %v555_v47 = vsub.f32 %v522_v52, %v533_v46 }
 0x1d6   :  { %v563_v48 = vmul.f32 1.442695, %v555_v47 }
 0x1d7   :  { %v536_v49 = vpop.xlane.xlu1 %535 }
 0x1d8   :  { %4431 = vpow2.f32 %v563_v48  ;;  %v556_v50 = vsub.f32 %v523_v57, %v536_v49  ;;  %v779_v49 = vsel %vm633_vm2, %v4733_v45, 0 }
 0x1da   :  { %v565_v51 = vmul.f32 1.442695, %v556_v50 }
 0x1db   :  { %v539_v53 = vpop.xlane.xlu0 %538 }
 0x1dc   :  { %4433 = vpow2.f32 %v565_v51  ;;  %v557_v54 = vsub.f32 %v524_v63, %v539_v53 }
 0x1de   :  { %v567_v55 = vmul.f32 1.442695, %v557_v54 }
 0x1df   :  { %v542_v56 = vpop.xlane.xlu0 %541 }
 0x1e0   :  { %4435 = vpow2.f32 %v567_v55  ;;  %v558_v58 = vsub.f32 %v525_v6, %v542_v56 }
 0x1e2   :  { %v569_v59 = vmul.f32 1.442695, %v558_v58 }
 0x1e3   :  { %v545_v60 = vpop.xlane.xlu1 %544 }
 0x1e4   :  { %4437 = vpow2.f32 %v569_v59  ;;  %v559_v61 = vsub.f32 %v526_v12, %v545_v60 }
 0x1e5   :  { %v4735_v62 = vpop.eup %4431 }
 0x1e6   :  { %v571_v0 = vmul.f32 1.442695, %v559_v61  ;;  %v579_v52 = vsel %vm530_vm3, %v4735_v62, 0.0 }
 0x1e7   :  { %580 = vadd.xlane.f32.xlu1 %v579_v52  ;;  %v548_v57 = vpop.xlane.xlu0 %547 }
 0x1e8   :  { %4439 = vpow2.f32 %v571_v0  ;;  %v560_v1 = vsub.f32 %v527_v22, %v548_v57 }
 0x1e9   :  { %v4739_v2 = vpop.eup %4433 }
 0x1ea   :  { %v573_v63 = vmul.f32 1.442695, %v560_v1  ;;  %v582_v4 = vsel %vm530_vm3, %v4739_v2, 0.0 }
 0x1eb   :  { %583 = vadd.xlane.f32.xlu0 %v582_v4  ;;  %v551_v13 = vpop.xlane.xlu1 %550 }
 0x1ec   :  { %4441 = vpow2.f32 %v573_v63  ;;  %v561_v14 = vsub.f32 %v4722_v32, %v551_v13 }
 0x1ed   :  { %v4743_v5 = vpop.eup %4435 }
 0x1ee   :  { %v585_v6 = vsel %vm530_vm3, %v4743_v5, 0.0  ;;  %v575_v16 = vmul.f32 1.442695, %v561_v14 }
 0x1ef   :  { %586 = vadd.xlane.f32.xlu1 %v585_v6  ;;  %v554_v15 = vpop.xlane.xlu0 %553  ;;  %v870_v31 = vpop.permute.xlu1 %869 }
 0x1f0   :  { %v562_v19 = vsub.f32 %v529_v38, %v554_v15  ;;  %4443 = vpow2.f32 %v575_v16  ;;  %v875_v56 = vsel %vm633_vm2, %v870_v31, 0 }
 0x1f1   :  { %v4747_v7 = vpop.eup %4437 }
 0x1f2   :  { %v588_v8 = vsel %vm530_vm3, %v4747_v7, 0.0  ;;  %v577_v22 = vmul.f32 1.442695, %v562_v19 }
 0x1f3   :  { %589 = vadd.xlane.f32.xlu0 %v588_v8  ;;  %v822_v32 = vpop.permute.xlu0 %821 }
 0x1f4   :  { %4445 = vpow2.f32 %v577_v22  ;;  %v827_v53 = vsel %vm633_vm2, %v822_v32, 0 }
 0x1f5   :  { %v4751_v9 = vpop.eup %4439 }
 0x1f6   :  { %v591_v10 = vsel %vm530_vm3, %v4751_v9, 0.0 }
 0x1f7   :  { %592 = vadd.xlane.f32.xlu1 %v591_v10 }
 0x1f9   :  { %v4755_v11 = vpop.eup %4441 }
 0x1fa   :  { %v594_v12 = vsel %vm530_vm3, %v4755_v11, 0.0 }
 0x1fb   :  { %595 = vadd.xlane.f32.xlu0 %v594_v12 }
 0x1fd   :  { %v4764_v23 = vpop.eup %4443 }
 0x1fe   :  { %v597_v24 = vsel %vm530_vm3, %v4764_v23, 0.0 }
 0x201   :  { %v4768_v25 = vpop.eup %4445 }
 0x202   :  { %v600_v28 = vsel %vm530_vm3, %v4768_v25, 0.0 }
 0x208   :  { %965 = vrot.lane.b32.xlu1 %v4654_v30, %s4563_s0 }
 0x211   :  { %917 = vrot.lane.b32.xlu0 %v4652_v29, %s4563_s0 }
 0x22c   :  { %598 = vadd.xlane.f32.xlu1 %v597_v24 }
 0x230   :  { %601 = vadd.xlane.f32.xlu0 %v600_v28 }
 0x23d   :  { %1074 = vrot.lane.b32.xlu1 %v4626_v20, %s4564_s23 }
 0x241   :  { %1072 = vrot.lane.b32.xlu1 %v4626_v20, %s4565_s24 }
 0x245   :  { %1174 = vrot.lane.b32.xlu1 %v4629_v21, %s4564_s23 }
 0x246   :  { %1024 = vrot.lane.b32.xlu0 %v4620_v17, %s4564_s23 }
 0x249   :  { %1172 = vrot.lane.b32.xlu1 %v4629_v21, %s4565_s24 }
 0x24a   :  { %1022 = vrot.lane.b32.xlu0 %v4620_v17, %s4565_s24 }
 0x24d   :  { %1274 = vrot.lane.b32.xlu1 %v4647_v27, %s4564_s23 }
 0x24e   :  { %1124 = vrot.lane.b32.xlu0 %v4622_v18, %s4564_s23 }
 0x251   :  { %1272 = vrot.lane.b32.xlu1 %v4647_v27, %s4565_s24 }
 0x252   :  { %1122 = vrot.lane.b32.xlu0 %v4622_v18, %s4565_s24 }
 0x255   :  { %1374 = vrot.lane.b32.xlu1 %v4654_v30, %s4564_s23 }
 0x256   :  { %1224 = vrot.lane.b32.xlu0 %v4645_v26, %s4564_s23 }
 0x259   :  { %1372 = vrot.lane.b32.xlu1 %v4654_v30, %s4565_s24 }
 0x25a   :  { %1222 = vrot.lane.b32.xlu0 %v4645_v26, %s4565_s24 }
 0x25d   :  { %1526 = vrot.lane.b32.xlu1 %v4620_v17, %s4566_s25 }
 0x25e   :  { %1324 = vrot.lane.b32.xlu0 %v4652_v29, %s4564_s23 }
 0x261   :  { %1622 = vrot.lane.b32.xlu1 %v4622_v18, %s4566_s25 }
 0x262   :  { %1322 = vrot.lane.b32.xlu0 %v4652_v29, %s4565_s24 }
 0x265   :  { %1670 = vrot.lane.b32.xlu1 %v4629_v21, %s4566_s25 }
 0x266   :  { %1574 = vrot.lane.b32.xlu0 %v4626_v20, %s4566_s25 }
 0x270   :  { %v581_v33 = vpop.xlane.xlu1 %580 }
 0x271   :  { %4447 = vrcp.f32 %v581_v33 }
 0x274   :  { %v584_v34 = vpop.xlane.xlu0 %583 }
 0x275   :  { %4449 = vrcp.f32 %v584_v34 }
 0x278   :  { %v587_v35 = vpop.xlane.xlu1 %586 }
 0x279   :  { %4451 = vrcp.f32 %v587_v35 }
 0x27c   :  { %v590_v36 = vpop.xlane.xlu0 %589 }
 0x27d   :  { %4453 = vrcp.f32 %v590_v36 }
 0x27e   :  { %v4448_v37 = vpop.eup %4447 }
 0x27f   :  { %v611_v38 = vmul.f32 %v4448_v37, %v4735_v62 }
 0x280   :  { %v593_v39 = vpop.xlane.xlu1 %592 }
 0x281   :  { %4455 = vrcp.f32 %v593_v39  ;;  %v619_v40 = vpack.c.bf16 %v611_v38, %v611_v38 }
 0x282   :  { %v4450_v41 = vpop.eup %4449 }
 0x283   :  { %4081 = vmatmul.mubr.msk.bf16.vlgmr.msra.gmra.mxu0 %vm629_vm4, %v619_v40  ;;  %v612_v43 = vmul.f32 %v4450_v41, %v4739_v2 }
 0x284   :  { %4091 = vmatpush3.bf16.msra.mxu0 %v731_v42  ;;  %v596_v46 = vpop.xlane.xlu0 %595  ;;  %4092 = vmatprep.mubr.msk.bf16.mxu0 %vm4561_vm0, %v4560_v3  ;;  %v966_v52 = vpop.permute.xlu1 %965 }
 0x285   :  { %4457 = vrcp.f32 %v596_v46  ;;  %v620_v47 = vpack.c.bf16 %v612_v43, %v612_v43  ;;  %4102 = vmatprep.subr.bf16.mxu0 %v4560_v3  ;;  %v971_v1 = vsel %vm633_vm2, %v966_v52, 0 }
 0x286   :  { %v4452_v48 = vpop.eup %4451 }
 0x287   :  { %4087 = vmatmul.mubr.msk.bf16.vlgmr.msra.gmra.mxu1 %vm629_vm4, %v620_v47  ;;  %v613_v44 = vmul.f32 %v4452_v48, %v4743_v5 }
 0x288   :  { %4097 = vmatpush3.bf16.msra.mxu1 %v779_v49  ;;  %4098 = vmatprep.mubr.msk.bf16.mxu1 %vm4561_vm0, %v4560_v3  ;;  %v918_v59 = vpop.permute.xlu0 %917 }
 0x289   :  { %v621_v50 = vpack.c.bf16 %v613_v44, %v613_v44  ;;  %4108 = vmatprep.subr.bf16.mxu1 %v4560_v3  ;;  %v923_v62 = vsel %vm633_vm2, %v918_v59, 0 }
 0x28a   :  { %v4454_v51 = vpop.eup %4453 }
 0x28b   :  { %4093 = vmatmul.mubr.msk.bf16.vlgmr.msra.gmra.mxu0 %vm629_vm4, %v621_v50  ;;  %v614_v54 = vmul.f32 %v4454_v51, %v4747_v7 }
 0x28c   :  { %4103 = vmatpush3.bf16.msra.mxu0 %v827_v53  ;;  %4104 = vmatprep.mubr.msk.bf16.mxu0 %vm4561_vm0, %v4560_v3 }
 0x28d   :  { %v622_v45 = vpack.c.bf16 %v614_v54, %v614_v54  ;;  %4114 = vmatprep.subr.bf16.mxu0 %v4560_v3 }
 0x28e   :  { %v4456_v55 = vpop.eup %4455 }
 0x28f   :  { %4099 = vmatmul.mubr.msk.bf16.vlgmr.msra.gmra.mxu1 %vm629_vm4, %v622_v45  ;;  %v615_v58 = vmul.f32 %v4456_v55, %v4751_v9 }
 0x290   :  { %4109 = vmatpush3.bf16.msra.mxu1 %v875_v56  ;;  %4110 = vmatprep.mubr.msk.bf16.mxu1 %vm4561_vm0, %v4560_v3 }
 0x291   :  { %v623_v60 = vpack.c.bf16 %v615_v58, %v615_v58  ;;  %4120 = vmatprep.subr.bf16.mxu1 %v4560_v3 }
 0x292   :  { %v4458_v61 = vpop.eup %4457 }
 0x293   :  { %4105 = vmatmul.mubr.msk.bf16.vlgmr.msra.gmra.mxu0 %vm629_vm4, %v623_v60  ;;  %v616_v0 = vmul.f32 %v4458_v61, %v4755_v11 }
 0x294   :  { %4115 = vmatpush3.bf16.msra.mxu0 %v923_v62  ;;  %4116 = vmatprep.mubr.msk.bf16.mxu0 %vm4561_vm0, %v4560_v3 }
 0x295   :  { %v624_v57 = vpack.c.bf16 %v616_v0, %v616_v0  ;;  %4126 = vmatprep.subr.bf16.mxu0 %v4560_v3 }
 0x297   :  { %4111 = vmatmul.mubr.msk.bf16.vlgmr.msra.gmra.mxu1 %vm629_vm4, %v624_v57 }
 0x298   :  { %4121 = vmatpush3.bf16.msra.mxu1 %v971_v1  ;;  %4122 = vmatprep.mubr.msk.bf16.mxu1 %vm4561_vm0, %v4560_v3 }
 0x299   :  { %4132 = vmatprep.subr.bf16.mxu1 %v4560_v3 }
 0x2b5   :  { %v599_v2 = vpop.xlane.xlu1 %598 }
 0x2b6   :  { %4459 = vrcp.f32 %v599_v2 }
 0x2b9   :  { %v602_v63 = vpop.xlane.xlu0 %601  ;;  %v1075_v4 = vpop.permute.xlu1 %1074 }
 0x2ba   :  { %4461 = vrcp.f32 %v602_v63  ;;  %v1080_v19 = vsel %vm34_vm1, %v1075_v4, 0 }
 0x2bd   :  { %v1025_v5 = vpop.permute.xlu0 %1024  ;;  %v1073_v7 = vpop.permute.xlu1 %1072 }
 0x2be   :  { %v1030_v11 = vsel %vm34_vm1, %v1025_v5, 0 }
 0x2c1   :  { %v1023_v6 = vpop.permute.xlu0 %1022  ;;  %v1175_v14 = vpop.permute.xlu1 %1174 }
 0x2c2   :  { %v1180_v28 = vsel %vm34_vm1, %v1175_v14, 0 }
 0x2c3   :  { %v4460_v8 = vpop.eup %4459 }
 0x2c4   :  { %v617_v9 = vmul.f32 %v4460_v8, %v4764_v23 }
 0x2c5   :  { %v1125_v10 = vpop.permute.xlu0 %1124  ;;  %v1173_v23 = vpop.permute.xlu1 %1172 }
 0x2c6   :  { %v625_v12 = vpack.c.bf16 %v617_v9, %v617_v9  ;;  %v1130_v24 = vsel %vm34_vm1, %v1125_v10, 0 }
 0x2c7   :  { %v4462_v13 = vpop.eup %4461 }
 0x2c8   :  { %4117 = vmatmul.mubr.msk.bf16.vlgmr.msra.gmra.mxu0 %vm629_vm4, %v625_v12  ;;  %v618_v15 = vmul.f32 %v4462_v13, %v4768_v25 }
 0x2c9   :  { %4127 = vmatpush3.bf16.xpose.msra.mxu0 %v1030_v11  ;;  %4128 = vmatprep.mubr.msk.bf16.mxu0 %vm4561_vm0, %v4560_v3  ;;  %v1123_v16 = vpop.permute.xlu0 %1122  ;;  %v1275_v31 = vpop.permute.xlu1 %1274 }
 0x2ca   :  { %v626_v22 = vpack.c.bf16 %v618_v15, %v618_v15  ;;  %4138 = vmatprep.subr.bf16.mxu0 %v4560_v3  ;;  %v1280_v35 = vsel %vm34_vm1, %v1275_v31, 0 }
 0x2cc   :  { %4123 = vmatmul.mubr.msk.bf16.vlgmr.msra.gmra.mxu1 %vm629_vm4, %v626_v22 }
 0x2cd   :  { %4133 = vmatpush3.bf16.xpose.msra.mxu1 %v1080_v19  ;;  %4134 = vmatprep.mubr.msk.bf16.mxu1 %vm4561_vm0, %v4560_v3  ;;  %v1225_v25 = vpop.permute.xlu0 %1224  ;;  %v1273_v34 = vpop.permute.xlu1 %1272 }
 0x2ce   :  { %4144 = vmatprep.subr.bf16.mxu1 %v4560_v3  ;;  %v1230_v33 = vsel %vm34_vm1, %v1225_v25, 0 }
 0x2d0   :  { %4129 = vmatmul.mubr.msk.bf16.vlgmr.msra.gmra.mxu0 %vm34_vm1, %v1023_v6 }
 0x2d1   :  { %4139 = vmatpush3.bf16.xpose.msra.mxu0 %v1130_v24  ;;  %4140 = vmatprep.mubr.msk.bf16.mxu0 %vm4561_vm0, %v4560_v3  ;;  %v1223_v32 = vpop.permute.xlu0 %1222  ;;  %v1375_v38 = vpop.permute.xlu1 %1374 }
 0x2d2   :  { %4150 = vmatprep.subr.bf16.mxu0 %v4560_v3  ;;  %v1380_v39 = vsel %vm34_vm1, %v1375_v38, 0 }
 0x2d4   :  { %4135 = vmatmul.mubr.msk.bf16.vlgmr.msra.gmra.mxu1 %vm34_vm1, %v1073_v7 }
 0x2d5   :  { %4145 = vmatpush3.bf16.xpose.msra.mxu1 %v1180_v28  ;;  %4146 = vmatprep.mubr.msk.bf16.mxu1 %vm4561_vm0, %v4560_v3  ;;  %v1325_v36 = vpop.permute.xlu0 %1324  ;;  %v1373_v41 = vpop.permute.xlu1 %1372 }
 0x2d6   :  { %4156 = vmatprep.subr.bf16.mxu1 %v4560_v3  ;;  %v1330_v37 = vsel %vm34_vm1, %v1325_v36, 0 }
 0x2d8   :  { %4141 = vmatmul.mubr.msk.bf16.vlgmr.msra.gmra.mxu0 %vm34_vm1, %v1123_v16 }
 0x2d9   :  { %4151 = vmatpush3.bf16.xpose.msra.mxu0 %v1230_v33  ;;  %4152 = vmatprep.mubr.msk.bf16.mxu0 %vm4561_vm0, %v4560_v3  ;;  %v1323_v40 = vpop.permute.xlu0 %1322  ;;  %v1527_v55 = vpop.permute.xlu1 %1526 }
 0x2da   :  { %4162 = vmatprep.subr.bf16.mxu0 %v4560_v3  ;;  %v1532_v59 = vsel %vm633_vm2, %v1527_v55, 0 }
 0x2dc   :  { %4147 = vmatmul.mubr.msk.bf16.vlgmr.msra.gmra.mxu1 %vm34_vm1, %v1173_v23 }
 0x2dd   :  { %4157 = vmatpush3.bf16.xpose.msra.mxu1 %v1280_v35  ;;  %4158 = vmatprep.mubr.msk.bf16.mxu1 %vm4561_vm0, %v4560_v3  ;;  %v1575_v60 = vpop.permute.xlu0 %1574 }
 0x2de   :  { %4168 = vmatprep.subr.bf16.mxu1 %v4560_v3  ;;  %v1580_v0 = vsel %vm633_vm2, %v1575_v60, 0 }
 0x2e0   :  { %4153 = vmatmul.mubr.msk.bf16.vlgmr.msra.gmra.mxu0 %vm34_vm1, %v1223_v32 }
 0x2e1   :  { %4163 = vmatpush3.bf16.xpose.msra.mxu0 %v1330_v37  ;;  %4164 = vmatprep.mubr.msk.bf16.mxu0 %vm4561_vm0, %v4560_v3 }
 0x2e2   :  { %4174 = vmatprep.subr.bf16.mxu0 %v4560_v3 }
 0x2e4   :  { %4159 = vmatmul.mubr.msk.bf16.vlgmr.msra.gmra.mxu1 %vm34_vm1, %v1273_v34 }
 0x2e5   :  { %4169 = vmatpush3.bf16.xpose.msra.mxu1 %v1380_v39  ;;  %4170 = vmatprep.mubr.msk.bf16.mxu1 %vm4561_vm0, %v4560_v3 }
 0x2e6   :  { %4180 = vmatprep.subr.bf16.mxu1 %v4560_v3 }
 0x2e8   :  { %4165 = vmatmul.mubr.msk.bf16.vlgmr.msra.gmra.mxu0 %vm34_vm1, %v1323_v40 }
 0x2e9   :  { %4176 = vmatprep.mubr.msk.bf16.mxu0 %vm4561_vm0, %v4560_v3  ;;  %4175 = vmatpush3.bf16.msra.mxu0 %v1532_v59 }
 0x2ea   :  { %4186 = vmatprep.subr.bf16.mxu0 %v4560_v3 }
 0x2ec   :  { %4171 = vmatmul.mubr.msk.bf16.vlgmr.msra.gmra.mxu1 %vm34_vm1, %v1373_v41 }
 0x2ed   :  { %4182 = vmatprep.mubr.msk.bf16.mxu1 %vm4561_vm0, %v4560_v3  ;;  %4181 = vmatpush3.bf16.msra.mxu1 %v1580_v0 }
 0x2ee   :  { %4192 = vmatprep.subr.bf16.mxu1 %v4560_v3 }
 0x343   :  { %v671_v42 = vpop.f32.mrf.mxu0 }
 0x344   :  { %1014 = vst.msk [vmem:[#allocation2] sm:$0x3] %vm1013_vm5, %v671_v42 }
 0x345   :  { %v4082_v43 = vpop.f32.mrf.mxu0 }
 0x347   :  { %v674_v46 = vpop.f32.mrf.mxu0  ;;  %v719_v47 = vpop.f32.mrf.mxu1 }
 0x348   :  { %1015 = vst.msk [vmem:[#allocation2 + $0x2] sm:$0x3] %vm1013_vm5, %v719_v47 }
 0x349   :  { %v4083_v48 = vpop.f32.mrf.mxu0  ;;  %v4088_v49 = vpop.f32.mrf.mxu1 }
 0x34b   :  { %v722_v44 = vpop.f32.mrf.mxu1  ;;  %v767_v50 = vpop.f32.mrf.mxu0 }
 0x34c   :  { %1016 = vst.msk [vmem:[#allocation2 + $0x4] sm:$0x3] %vm1013_vm5, %v767_v50 }
 0x34d   :  { %v4089_v51 = vpop.f32.mrf.mxu1  ;;  %v4094_v53 = vpop.f32.mrf.mxu0 }
 0x34f   :  { %v770_v54 = vpop.f32.mrf.mxu0  ;;  %v815_v45 = vpop.f32.mrf.mxu1 }
 0x350   :  { %1017 = vst.msk [vmem:[#allocation2 + $0x6] sm:$0x3] %vm1013_vm5, %v815_v45 }
 0x351   :  { %v4095_v56 = vpop.f32.mrf.mxu0  ;;  %v4100_v58 = vpop.f32.mrf.mxu1 }
 0x353   :  { %v818_v61 = vpop.f32.mrf.mxu1  ;;  %v863_v62 = vpop.f32.mrf.mxu0 }
 0x354   :  { %1018 = vst.msk [vmem:[#allocation2 + $0x8] sm:$0x3] %vm1013_vm5, %v863_v62 }
 0x355   :  { %v4101_v52 = vpop.f32.mrf.mxu1  ;;  %v4106_v57 = vpop.f32.mrf.mxu0 }
 0x357   :  { %v866_v1 = vpop.f32.mrf.mxu0  ;;  %v911_v2 = vpop.f32.mrf.mxu1 }
 0x358   :  { %1019 = vst.msk [vmem:[#allocation2 + $0xa] sm:$0x3] %vm1013_vm5, %v911_v2 }
 0x359   :  { %v4107_v63 = vpop.f32.mrf.mxu0  ;;  %v4112_v4 = vpop.f32.mrf.mxu1 }
 0x35b   :  { %v914_v5 = vpop.f32.mrf.mxu1 }
 0x35d   :  { %v4113_v6 = vpop.f32.mrf.mxu1 }
 0x388   :  { %v959_v7 = vpop.f32.mrf.mxu0 }
 0x389   :  { %1020 = vst.msk [vmem:[#allocation2 + $0xc] sm:$0x3] %vm1013_vm5, %v959_v7 }
 0x38a   :  { %v4118_v8 = vpop.f32.mrf.mxu0 }
 0x38b   :  { %v4909_v8 = vpop.permute.xlu1 %1622 }
 0x38c   :  { %v962_v9 = vpop.f32.mrf.mxu0  ;;  %v1007_v10 = vpop.f32.mrf.mxu1 }
 0x38d   :  { %1021 = vst.msk [vmem:[#allocation2 + $0xe] sm:$0x3] %vm1013_vm5, %v1007_v10 }
 0x38e   :  { %v4119_v11 = vpop.f32.mrf.mxu0  ;;  %v4124_v12 = vpop.f32.mrf.mxu1 }
 0x38f   :  { %v4911_v9 = vpop.permute.xlu1 %1670 }
 0x390   :  { %v1010_v13 = vpop.f32.mrf.mxu1  ;;  %v1066_v14 = vpop.f32.mrf.mxu0 }
 0x391   :  { %v1422_v15 = vmul.f32 0.35355338, %v1066_v14 }
 0x392   :  { %v4125_v16 = vpop.f32.mrf.mxu1  ;;  %v4130_v19 = vpop.f32.mrf.mxu0 }
 0x393   :  { %v1430_v22 = vsel %vm530_vm3, %v1422_v15, -inf }
 0x394   :  { %v1116_v23 = vpop.f32.mrf.mxu1  ;;  %1431 = vmax.xlane.f32.xlu0 %v1430_v22  ;;  %v1069_v24 = vpop.f32.mrf.mxu0 }
 0x395   :  { %v1423_v25 = vmul.f32 0.35355338, %v1116_v23 }
 0x396   :  { %v4131_v28 = vpop.f32.mrf.mxu0  ;;  %v4136_v31 = vpop.f32.mrf.mxu1 }
 0x397   :  { %v1433_v32 = vsel %vm530_vm3, %v1423_v25, -inf }
 0x398   :  { %1434 = vmax.xlane.f32.xlu1 %v1433_v32  ;;  %v1119_v33 = vpop.f32.mrf.mxu1  ;;  %v1166_v34 = vpop.f32.mrf.mxu0 }
 0x399   :  { %v1424_v35 = vmul.f32 0.35355338, %v1166_v34 }
 0x39a   :  { %v4137_v36 = vpop.f32.mrf.mxu1  ;;  %v4142_v37 = vpop.f32.mrf.mxu0 }
 0x39b   :  { %v1436_v38 = vsel %vm530_vm3, %v1424_v35, -inf }
 0x39c   :  { %v1216_v39 = vpop.f32.mrf.mxu1  ;;  %1437 = vmax.xlane.f32.xlu0 %v1436_v38  ;;  %v1169_v40 = vpop.f32.mrf.mxu0 }
 0x39d   :  { %v1425_v41 = vmul.f32 0.35355338, %v1216_v39 }
 0x39e   :  { %v4143_v42 = vpop.f32.mrf.mxu0  ;;  %v4148_v43 = vpop.f32.mrf.mxu1 }
 0x39f   :  { %v1439_v46 = vsel %vm530_vm3, %v1425_v41, -inf }
 0x3a0   :  { %v1219_v47 = vpop.f32.mrf.mxu1  ;;  %1440 = vmax.xlane.f32.xlu0 %v1439_v46  ;;  %v1266_v48 = vpop.f32.mrf.mxu0 }
 0x3a1   :  { %v1426_v49 = vmul.f32 0.35355338, %v1266_v48 }
 0x3a2   :  { %v4149_v44 = vpop.f32.mrf.mxu1  ;;  %v4154_v50 = vpop.f32.mrf.mxu0 }
 0x3a3   :  { %v1442_v51 = vsel %vm530_vm3, %v1426_v49, -inf }
 0x3a4   :  { %v1316_v53 = vpop.f32.mrf.mxu1  ;;  %1443 = vmax.xlane.f32.xlu1 %v1442_v51  ;;  %v1269_v54 = vpop.f32.mrf.mxu0 }
 0x3a5   :  { %v1427_v45 = vmul.f32 0.35355338, %v1316_v53 }
 0x3a6   :  { %v4155_v55 = vpop.f32.mrf.mxu0  ;;  %v4160_v56 = vpop.f32.mrf.mxu1 }
 0x3a7   :  { %v1445_v58 = vsel %vm530_vm3, %v1427_v45, -inf }
 0x3a8   :  { %v1319_v59 = vpop.f32.mrf.mxu1  ;;  %1446 = vmax.xlane.f32.xlu0 %v1445_v58  ;;  %v1366_v60 = vpop.f32.mrf.mxu0 }
 0x3a9   :  { %v4900_v61 = vmul.f32 0.35355338, %v1366_v60 }
 0x3aa   :  { %v4161_v62 = vpop.f32.mrf.mxu1  ;;  %v4166_v0 = vpop.f32.mrf.mxu0 }
 0x3ab   :  { %v1448_v52 = vsel %vm530_vm3, %v4900_v61, -inf }
 0x3ac   :  { %v1416_v57 = vpop.f32.mrf.mxu1  ;;  %1449 = vmax.xlane.f32.xlu1 %v1448_v52  ;;  %v1369_v1 = vpop.f32.mrf.mxu0 }
 0x3ad   :  { %v1429_v2 = vmul.f32 0.35355338, %v1416_v57 }
 0x3ae   :  { %v4167_v63 = vpop.f32.mrf.mxu0  ;;  %v4172_v4 = vpop.f32.mrf.mxu1 }
 0x3af   :  { %v1451_v5 = vsel %vm530_vm3, %v1429_v2, -inf }
 0x3b0   :  { %1452 = vmax.xlane.f32.xlu0 %v1451_v5  ;;  %v1419_v6 = vpop.f32.mrf.mxu1 }
 0x3b1   :  { %v1628_v6 = vsel %vm633_vm2, %v4909_v8, 0 }
 0x3b2   :  { %v4173_v7 = vpop.f32.mrf.mxu1 }
 0x3bd   :  { %1766 = vrot.lane.b32.xlu1 %v4647_v27, %s4566_s25 }
 0x3c6   :  { %1718 = vrot.lane.b32.xlu0 %v4645_v26, %s4566_s25 }
 0x41d   :  { %v1432_v10 = vpop.xlane.xlu0 %1431 }
 0x41e   :  { %v1454_v11 = vsub.f32 %v1422_v15, %v1432_v10 }
 0x420   :  { %v1462_v12 = vmul.f32 1.442695, %v1454_v11 }
 0x421   :  { %v1435_v13 = vpop.xlane.xlu1 %1434 }
 0x422   :  { %4463 = vpow2.f32 %v1462_v12  ;;  %v1455_v14 = vsub.f32 %v1423_v25, %v1435_v13  ;;  %v1676_v13 = vsel %vm633_vm2, %v4911_v9, 0 }
 0x424   :  { %v1464_v16 = vmul.f32 1.442695, %v1455_v14 }
 0x425   :  { %v1438_v19 = vpop.xlane.xlu0 %1437 }
 0x426   :  { %4465 = vpow2.f32 %v1464_v16  ;;  %v1456_v22 = vsub.f32 %v1424_v35, %v1438_v19 }
 0x428   :  { %v1466_v23 = vmul.f32 1.442695, %v1456_v22 }
 0x429   :  { %v1441_v24 = vpop.xlane.xlu0 %1440 }
 0x42a   :  { %4467 = vpow2.f32 %v1466_v23  ;;  %v1457_v28 = vsub.f32 %v1425_v41, %v1441_v24 }
 0x42c   :  { %v1468_v31 = vmul.f32 1.442695, %v1457_v28 }
 0x42d   :  { %v1444_v32 = vpop.xlane.xlu1 %1443 }
 0x42e   :  { %4469 = vpow2.f32 %v1468_v31  ;;  %v1458_v33 = vsub.f32 %v1426_v49, %v1444_v32 }
 0x42f   :  { %v4913_v34 = vpop.eup %4463 }
 0x430   :  { %v1470_v36 = vmul.f32 1.442695, %v1458_v33  ;;  %v1478_v15 = vsel %vm530_vm3, %v4913_v34, 0.0 }
 0x431   :  { %1479 = vadd.xlane.f32.xlu1 %v1478_v15  ;;  %v1447_v25 = vpop.xlane.xlu0 %1446 }
 0x432   :  { %4471 = vpow2.f32 %v1470_v36  ;;  %v1459_v37 = vsub.f32 %v1427_v45, %v1447_v25 }
 0x433   :  { %v4917_v38 = vpop.eup %4465 }
 0x434   :  { %v1472_v35 = vmul.f32 1.442695, %v1459_v37  ;;  %v1481_v39 = vsel %vm530_vm3, %v4917_v38, 0.0 }
 0x435   :  { %1482 = vadd.xlane.f32.xlu0 %v1481_v39  ;;  %v1450_v44 = vpop.xlane.xlu1 %1449 }
 0x436   :  { %4473 = vpow2.f32 %v1472_v35  ;;  %v1460_v50 = vsub.f32 %v4900_v61, %v1450_v44 }
 0x437   :  { %v4921_v40 = vpop.eup %4467 }
 0x438   :  { %v1484_v41 = vsel %vm530_vm3, %v4921_v40, 0.0  ;;  %v1474_v53 = vmul.f32 1.442695, %v1460_v50 }
 0x439   :  { %1485 = vadd.xlane.f32.xlu1 %v1484_v41  ;;  %v1453_v51 = vpop.xlane.xlu0 %1452  ;;  %v1767_v60 = vpop.permute.xlu1 %1766 }
 0x43a   :  { %v1461_v54 = vsub.f32 %v1429_v2, %v1453_v51  ;;  %4475 = vpow2.f32 %v1474_v53  ;;  %v1772_v24 = vsel %vm633_vm2, %v1767_v60, 0 }
 0x43b   :  { %v4925_v42 = vpop.eup %4469 }
 0x43c   :  { %v1487_v43 = vsel %vm530_vm3, %v4925_v42, 0.0  ;;  %v1476_v45 = vmul.f32 1.442695, %v1461_v54 }
 0x43d   :  { %1488 = vadd.xlane.f32.xlu0 %v1487_v43  ;;  %v1719_v61 = vpop.permute.xlu0 %1718 }
 0x43e   :  { %4477 = vpow2.f32 %v1476_v45  ;;  %v1724_v19 = vsel %vm633_vm2, %v1719_v61, 0 }
 0x43f   :  { %v4929_v46 = vpop.eup %4471 }
 0x440   :  { %v1490_v47 = vsel %vm530_vm3, %v4929_v46, 0.0 }
 0x441   :  { %1491 = vadd.xlane.f32.xlu1 %v1490_v47 }
 0x443   :  { %v4933_v48 = vpop.eup %4473 }
 0x444   :  { %v1493_v49 = vsel %vm530_vm3, %v4933_v48, 0.0 }
 0x445   :  { %1494 = vadd.xlane.f32.xlu0 %v1493_v49 }
 0x447   :  { %v4942_v55 = vpop.eup %4475 }
 0x448   :  { %v1496_v56 = vsel %vm530_vm3, %v4942_v55, 0.0 }
 0x44b   :  { %v4946_v58 = vpop.eup %4477 }
 0x44c   :  { %v1499_v59 = vsel %vm530_vm3, %v4946_v58, 0.0 }
 0x452   :  { %1862 = vrot.lane.b32.xlu1 %v4654_v30, %s4566_s25 }
 0x45b   :  { %1814 = vrot.lane.b32.xlu0 %v4652_v29, %s4566_s25 }
 0x476   :  { %1497 = vadd.xlane.f32.xlu1 %v1496_v56 }
 0x47a   :  { %1500 = vadd.xlane.f32.xlu0 %v1499_v59 }
 0x487   :  { %2003 = vrot.lane.b32.xlu1 %v4626_v20, %s4567_s26 }
 0x48b   :  { %2001 = vrot.lane.b32.xlu1 %v4626_v20, %s4568_s27 }
 0x48f   :  { %2103 = vrot.lane.b32.xlu1 %v4629_v21, %s4567_s26 }
 0x490   :  { %1953 = vrot.lane.b32.xlu0 %v4620_v17, %s4567_s26 }
 0x493   :  { %2101 = vrot.lane.b32.xlu1 %v4629_v21, %s4568_s27 }
 0x494   :  { %1951 = vrot.lane.b32.xlu0 %v4620_v17, %s4568_s27 }
 0x497   :  { %2203 = vrot.lane.b32.xlu1 %v4647_v27, %s4567_s26 }
 0x498   :  { %2053 = vrot.lane.b32.xlu0 %v4622_v18, %s4567_s26 }
 0x49b   :  { %2201 = vrot.lane.b32.xlu1 %v4647_v27, %s4568_s27 }
 0x49c   :  { %2051 = vrot.lane.b32.xlu0 %v4622_v18, %s4568_s27 }
 0x49f   :  { %2303 = vrot.lane.b32.xlu1 %v4654_v30, %s4567_s26 }
 0x4a0   :  { %2153 = vrot.lane.b32.xlu0 %v4645_v26, %s4567_s26 }
 0x4a3   :  { %2301 = vrot.lane.b32.xlu1 %v4654_v30, %s4568_s27 }
 0x4a4   :  { %2151 = vrot.lane.b32.xlu0 %v4645_v26, %s4568_s27 }
 0x4a7   :  { %2455 = vrot.lane.b32.xlu1 %v4620_v17, %s4569_s28 }
 0x4a8   :  { %2253 = vrot.lane.b32.xlu0 %v4652_v29, %s4567_s26 }
 0x4ab   :  { %2551 = vrot.lane.b32.xlu1 %v4622_v18, %s4569_s28 }
 0x4ac   :  { %2251 = vrot.lane.b32.xlu0 %v4652_v29, %s4568_s27 }
 0x4af   :  { %2599 = vrot.lane.b32.xlu1 %v4629_v21, %s4569_s28 }
 0x4b0   :  { %2503 = vrot.lane.b32.xlu0 %v4626_v20, %s4569_s28 }
 0x4ba   :  { %v1480_v62 = vpop.xlane.xlu1 %1479 }
 0x4bb   :  { %4479 = vrcp.f32 %v1480_v62 }
 0x4be   :  { %v1483_v0 = vpop.xlane.xlu0 %1482 }
 0x4bf   :  { %4481 = vrcp.f32 %v1483_v0 }
 0x4c2   :  { %v1486_v52 = vpop.xlane.xlu1 %1485 }
 0x4c3   :  { %4483 = vrcp.f32 %v1486_v52 }
 0x4c6   :  { %v1489_v57 = vpop.xlane.xlu0 %1488 }
 0x4c7   :  { %4485 = vrcp.f32 %v1489_v57 }
 0x4c8   :  { %v4480_v1 = vpop.eup %4479 }
 0x4c9   :  { %v1510_v2 = vmul.f32 %v4480_v1, %v4913_v34 }
 0x4ca   :  { %v1492_v63 = vpop.xlane.xlu1 %1491 }
 0x4cb   :  { %4487 = vrcp.f32 %v1492_v63  ;;  %v1518_v4 = vpack.c.bf16 %v1510_v2, %v1510_v2 }
 0x4cc   :  { %v4482_v5 = vpop.eup %4481 }
 0x4cd   :  { %4177 = vmatmul.mubr.msk.bf16.vlgmr.msra.gmra.mxu0 %vm629_vm4, %v1518_v4  ;;  %v1511_v7 = vmul.f32 %v4482_v5, %v4917_v38 }
 0x4ce   :  { %4187 = vmatpush3.bf16.msra.mxu0 %v1628_v6  ;;  %v1495_v10 = vpop.xlane.xlu0 %1494  ;;  %4188 = vmatprep.mubr.msk.bf16.mxu0 %vm4561_vm0, %v4560_v3  ;;  %v1863_v15 = vpop.permute.xlu1 %1862 }
 0x4cf   :  { %4489 = vrcp.f32 %v1495_v10  ;;  %v1519_v11 = vpack.c.bf16 %v1511_v7, %v1511_v7  ;;  %4198 = vmatprep.subr.bf16.mxu0 %v4560_v3  ;;  %v1868_v37 = vsel %vm633_vm2, %v1863_v15, 0 }
 0x4d0   :  { %v4484_v12 = vpop.eup %4483 }
 0x4d1   :  { %4183 = vmatmul.mubr.msk.bf16.vlgmr.msra.gmra.mxu1 %vm629_vm4, %v1519_v11  ;;  %v1512_v8 = vmul.f32 %v4484_v12, %v4921_v40 }
 0x4d2   :  { %4193 = vmatpush3.bf16.msra.mxu1 %v1676_v13  ;;  %4194 = vmatprep.mubr.msk.bf16.mxu1 %vm4561_vm0, %v4560_v3  ;;  %v1815_v31 = vpop.permute.xlu0 %1814 }
 0x4d3   :  { %v1520_v14 = vpack.c.bf16 %v1512_v8, %v1512_v8  ;;  %4204 = vmatprep.subr.bf16.mxu1 %v4560_v3  ;;  %v1820_v34 = vsel %vm633_vm2, %v1815_v31, 0 }
 0x4d4   :  { %v4486_v16 = vpop.eup %4485 }
 0x4d5   :  { %4189 = vmatmul.mubr.msk.bf16.vlgmr.msra.gmra.mxu0 %vm629_vm4, %v1520_v14  ;;  %v1513_v22 = vmul.f32 %v4486_v16, %v4925_v42 }
 0x4d6   :  { %4199 = vmatpush3.bf16.msra.mxu0 %v1724_v19  ;;  %4200 = vmatprep.mubr.msk.bf16.mxu0 %vm4561_vm0, %v4560_v3 }
 0x4d7   :  { %v1521_v9 = vpack.c.bf16 %v1513_v22, %v1513_v22  ;;  %4210 = vmatprep.subr.bf16.mxu0 %v4560_v3 }
 0x4d8   :  { %v4488_v23 = vpop.eup %4487 }
 0x4d9   :  { %4195 = vmatmul.mubr.msk.bf16.vlgmr.msra.gmra.mxu1 %vm629_vm4, %v1521_v9  ;;  %v1514_v28 = vmul.f32 %v4488_v23, %v4929_v46 }
 0x4da   :  { %4205 = vmatpush3.bf16.msra.mxu1 %v1772_v24  ;;  %4206 = vmatprep.mubr.msk.bf16.mxu1 %vm4561_vm0, %v4560_v3 }
 0x4db   :  { %v1522_v32 = vpack.c.bf16 %v1514_v28, %v1514_v28  ;;  %4216 = vmatprep.subr.bf16.mxu1 %v4560_v3 }
 0x4dc   :  { %v4490_v33 = vpop.eup %4489 }
 0x4dd   :  { %4201 = vmatmul.mubr.msk.bf16.vlgmr.msra.gmra.mxu0 %vm629_vm4, %v1522_v32  ;;  %v1515_v36 = vmul.f32 %v4490_v33, %v4933_v48 }
 0x4de   :  { %4211 = vmatpush3.bf16.msra.mxu0 %v1820_v34  ;;  %4212 = vmatprep.mubr.msk.bf16.mxu0 %vm4561_vm0, %v4560_v3 }
 0x4df   :  { %v1523_v25 = vpack.c.bf16 %v1515_v36, %v1515_v36  ;;  %4222 = vmatprep.subr.bf16.mxu0 %v4560_v3 }
 0x4e1   :  { %4207 = vmatmul.mubr.msk.bf16.vlgmr.msra.gmra.mxu1 %vm629_vm4, %v1523_v25 }
 0x4e2   :  { %4217 = vmatpush3.bf16.msra.mxu1 %v1868_v37  ;;  %4218 = vmatprep.mubr.msk.bf16.mxu1 %vm4561_vm0, %v4560_v3 }
 0x4e3   :  { %4228 = vmatprep.subr.bf16.mxu1 %v4560_v3 }
 0x4ff   :  { %v1498_v38 = vpop.xlane.xlu1 %1497 }
 0x500   :  { %4491 = vrcp.f32 %v1498_v38 }
 0x503   :  { %v1501_v35 = vpop.xlane.xlu0 %1500  ;;  %v2004_v39 = vpop.permute.xlu1 %2003 }
 0x504   :  { %4493 = vrcp.f32 %v1501_v35  ;;  %v2009_v54 = vsel %vm34_vm1, %v2004_v39, 0 }
 0x507   :  { %v1954_v40 = vpop.permute.xlu0 %1953  ;;  %v2002_v42 = vpop.permute.xlu1 %2001 }
 0x508   :  { %v1959_v48 = vsel %vm34_vm1, %v1954_v40, 0 }
 0x50b   :  { %v1952_v41 = vpop.permute.xlu0 %1951  ;;  %v2104_v50 = vpop.permute.xlu1 %2103 }
 0x50c   :  { %v2109_v59 = vsel %vm34_vm1, %v2104_v50, 0 }
 0x50d   :  { %v4492_v43 = vpop.eup %4491 }
 0x50e   :  { %v1516_v46 = vmul.f32 %v4492_v43, %v4942_v55 }
 0x50f   :  { %v2054_v47 = vpop.permute.xlu0 %2053  ;;  %v2102_v55 = vpop.permute.xlu1 %2101 }
 0x510   :  { %v1524_v49 = vpack.c.bf16 %v1516_v46, %v1516_v46  ;;  %v2059_v56 = vsel %vm34_vm1, %v2054_v47, 0 }
 0x511   :  { %v4494_v44 = vpop.eup %4493 }
 0x512   :  { %4213 = vmatmul.mubr.msk.bf16.vlgmr.msra.gmra.mxu0 %vm629_vm4, %v1524_v49  ;;  %v1517_v51 = vmul.f32 %v4494_v44, %v4946_v58 }
 0x513   :  { %4223 = vmatpush3.bf16.xpose.msra.mxu0 %v1959_v48  ;;  %4224 = vmatprep.mubr.msk.bf16.mxu0 %vm4561_vm0, %v4560_v3  ;;  %v2052_v53 = vpop.permute.xlu0 %2051  ;;  %v2204_v60 = vpop.permute.xlu1 %2203 }
 0x514   :  { %v1525_v45 = vpack.c.bf16 %v1517_v51, %v1517_v51  ;;  %4234 = vmatprep.subr.bf16.mxu0 %v4560_v3  ;;  %v2209_v52 = vsel %vm34_vm1, %v2204_v60, 0 }
 0x516   :  { %4219 = vmatmul.mubr.msk.bf16.vlgmr.msra.gmra.mxu1 %vm629_vm4, %v1525_v45 }
 0x517   :  { %4229 = vmatpush3.bf16.xpose.msra.mxu1 %v2009_v54  ;;  %4230 = vmatprep.mubr.msk.bf16.mxu1 %vm4561_vm0, %v4560_v3  ;;  %v2154_v58 = vpop.permute.xlu0 %2153  ;;  %v2202_v0 = vpop.permute.xlu1 %2201 }
 0x518   :  { %4240 = vmatprep.subr.bf16.mxu1 %v4560_v3  ;;  %v2159_v62 = vsel %vm34_vm1, %v2154_v58, 0 }
 0x51a   :  { %4225 = vmatmul.mubr.msk.bf16.vlgmr.msra.gmra.mxu0 %vm34_vm1, %v1952_v41 }
 0x51b   :  { %4235 = vmatpush3.bf16.xpose.msra.mxu0 %v2059_v56  ;;  %4236 = vmatprep.mubr.msk.bf16.mxu0 %vm4561_vm0, %v4560_v3  ;;  %v2152_v61 = vpop.permute.xlu0 %2151  ;;  %v2304_v2 = vpop.permute.xlu1 %2303 }
 0x51c   :  { %4246 = vmatprep.subr.bf16.mxu0 %v4560_v3  ;;  %v2309_v63 = vsel %vm34_vm1, %v2304_v2, 0 }
 0x51e   :  { %4231 = vmatmul.mubr.msk.bf16.vlgmr.msra.gmra.mxu1 %vm34_vm1, %v2002_v42 }
 0x51f   :  { %4241 = vmatpush3.bf16.xpose.msra.mxu1 %v2109_v59  ;;  %4242 = vmatprep.mubr.msk.bf16.mxu1 %vm4561_vm0, %v4560_v3  ;;  %v2254_v57 = vpop.permute.xlu0 %2253  ;;  %v2302_v5 = vpop.permute.xlu1 %2301 }
 0x520   :  { %4252 = vmatprep.subr.bf16.mxu1 %v4560_v3  ;;  %v2259_v1 = vsel %vm34_vm1, %v2254_v57, 0 }
 0x522   :  { %4237 = vmatmul.mubr.msk.bf16.vlgmr.msra.gmra.mxu0 %vm34_vm1, %v2052_v53 }
 0x523   :  { %4247 = vmatpush3.bf16.xpose.msra.mxu0 %v2159_v62  ;;  %4248 = vmatprep.mubr.msk.bf16.mxu0 %vm4561_vm0, %v4560_v3  ;;  %v2252_v4 = vpop.permute.xlu0 %2251  ;;  %v2456_v23 = vpop.permute.xlu1 %2455 }
 0x524   :  { %4258 = vmatprep.subr.bf16.mxu0 %v4560_v3  ;;  %v2461_v31 = vsel %vm633_vm2, %v2456_v23, 0 }
 0x526   :  { %4243 = vmatmul.mubr.msk.bf16.vlgmr.msra.gmra.mxu1 %vm34_vm1, %v2102_v55 }
 0x527   :  { %4253 = vmatpush3.bf16.xpose.msra.mxu1 %v2209_v52  ;;  %4254 = vmatprep.mubr.msk.bf16.mxu1 %vm4561_vm0, %v4560_v3  ;;  %v2504_v32 = vpop.permute.xlu0 %2503 }
 0x528   :  { %4264 = vmatprep.subr.bf16.mxu1 %v4560_v3  ;;  %v2509_v36 = vsel %vm633_vm2, %v2504_v32, 0 }
 0x52a   :  { %4249 = vmatmul.mubr.msk.bf16.vlgmr.msra.gmra.mxu0 %vm34_vm1, %v2152_v61 }
 0x52b   :  { %4259 = vmatpush3.bf16.xpose.msra.mxu0 %v2259_v1  ;;  %4260 = vmatprep.mubr.msk.bf16.mxu0 %vm4561_vm0, %v4560_v3 }
 0x52c   :  { %4270 = vmatprep.subr.bf16.mxu0 %v4560_v3 }
 0x52e   :  { %4255 = vmatmul.mubr.msk.bf16.vlgmr.msra.gmra.mxu1 %vm34_vm1, %v2202_v0 }
 0x52f   :  { %4265 = vmatpush3.bf16.xpose.msra.mxu1 %v2309_v63  ;;  %4266 = vmatprep.mubr.msk.bf16.mxu1 %vm4561_vm0, %v4560_v3 }
 0x530   :  { %4276 = vmatprep.subr.bf16.mxu1 %v4560_v3 }
 0x532   :  { %4261 = vmatmul.mubr.msk.bf16.vlgmr.msra.gmra.mxu0 %vm34_vm1, %v2252_v4 }
 0x533   :  { %4272 = vmatprep.mubr.msk.bf16.mxu0 %vm4561_vm0, %v4560_v3  ;;  %4271 = vmatpush3.bf16.msra.mxu0 %v2461_v31 }
 0x534   :  { %4282 = vmatprep.subr.bf16.mxu0 %v4560_v3 }
 0x536   :  { %4267 = vmatmul.mubr.msk.bf16.vlgmr.msra.gmra.mxu1 %vm34_vm1, %v2302_v5 }
 0x537   :  { %4278 = vmatprep.mubr.msk.bf16.mxu1 %vm4561_vm0, %v4560_v3  ;;  %4277 = vmatpush3.bf16.msra.mxu1 %v2509_v36 }
 0x538   :  { %4288 = vmatprep.subr.bf16.mxu1 %v4560_v3 }
 0x58d   :  { %v5060_v6 = vpop.f32.mrf.mxu0 }
 0x58f   :  { %v4178_v7 = vpop.f32.mrf.mxu0 }
 0x591   :  { %v1571_v10 = vpop.f32.mrf.mxu0  ;;  %v5062_v11 = vpop.f32.mrf.mxu1 }
 0x593   :  { %v4179_v12 = vpop.f32.mrf.mxu0  ;;  %v4184_v13 = vpop.f32.mrf.mxu1 }
 0x595   :  { %v1619_v8 = vpop.f32.mrf.mxu1  ;;  %v5064_v14 = vpop.f32.mrf.mxu0 }
 0x597   :  { %v4185_v16 = vpop.f32.mrf.mxu1  ;;  %v4190_v19 = vpop.f32.mrf.mxu0 }
 0x599   :  { %v1667_v22 = vpop.f32.mrf.mxu0  ;;  %v5066_v9 = vpop.f32.mrf.mxu1 }
 0x59b   :  { %v4191_v24 = vpop.f32.mrf.mxu0  ;;  %v4196_v28 = vpop.f32.mrf.mxu1 }
 0x59d   :  { %v1715_v33 = vpop.f32.mrf.mxu1  ;;  %v5069_v34 = vpop.f32.mrf.mxu0 }
 0x59f   :  { %v4197_v15 = vpop.f32.mrf.mxu1  ;;  %v4202_v25 = vpop.f32.mrf.mxu0 }
 0x5a1   :  { %v1763_v37 = vpop.f32.mrf.mxu0  ;;  %v5074_v38 = vpop.f32.mrf.mxu1 }
 0x5a3   :  { %v4203_v35 = vpop.f32.mrf.mxu0  ;;  %v4208_v39 = vpop.f32.mrf.mxu1 }
 0x5a5   :  { %v1811_v40 = vpop.f32.mrf.mxu1 }
 0x5a7   :  { %v4209_v41 = vpop.f32.mrf.mxu1 }
 0x5d2   :  { %v5076_v42 = vpop.f32.mrf.mxu0 }
 0x5d4   :  { %v4214_v43 = vpop.f32.mrf.mxu0 }
 0x5d6   :  { %v1859_v46 = vpop.f32.mrf.mxu0  ;;  %v5078_v47 = vpop.f32.mrf.mxu1 }
 0x5d8   :  { %v4215_v48 = vpop.f32.mrf.mxu0  ;;  %v4220_v49 = vpop.f32.mrf.mxu1 }
 0x5da   :  { %v1907_v44 = vpop.f32.mrf.mxu1  ;;  %v1995_v50 = vpop.f32.mrf.mxu0 }
 0x5db   :  { %v2351_v51 = vmul.f32 0.35355338, %v1995_v50 }
 0x5dc   :  { %v4221_v53 = vpop.f32.mrf.mxu1  ;;  %v4226_v54 = vpop.f32.mrf.mxu0 }
 0x5dd   :  { %v2359_v45 = vsel %vm530_vm3, %v2351_v51, -inf  ;;  %v5095_v54 = vpop.permute.xlu1 %2551 }
 0x5de   :  { %v2045_v55 = vpop.f32.mrf.mxu1  ;;  %2360 = vmax.xlane.f32.xlu0 %v2359_v45  ;;  %v1998_v56 = vpop.f32.mrf.mxu0 }
 0x5df   :  { %v2352_v58 = vmul.f32 0.35355338, %v2045_v55 }
 0x5e0   :  { %v4227_v59 = vpop.f32.mrf.mxu0  ;;  %v4232_v60 = vpop.f32.mrf.mxu1 }
 0x5e1   :  { %v2362_v61 = vsel %vm530_vm3, %v2352_v58, -inf  ;;  %v5097_v45 = vpop.permute.xlu1 %2599 }
 0x5e2   :  { %2363 = vmax.xlane.f32.xlu1 %v2362_v61  ;;  %v2048_v62 = vpop.f32.mrf.mxu1  ;;  %v2095_v0 = vpop.f32.mrf.mxu0 }
 0x5e3   :  { %v2353_v52 = vmul.f32 0.35355338, %v2095_v0 }
 0x5e4   :  { %v4233_v57 = vpop.f32.mrf.mxu1  ;;  %v4238_v1 = vpop.f32.mrf.mxu0 }
 0x5e5   :  { %v2365_v2 = vsel %vm530_vm3, %v2353_v52, -inf }
 0x5e6   :  { %v2145_v63 = vpop.f32.mrf.mxu1  ;;  %2366 = vmax.xlane.f32.xlu0 %v2365_v2  ;;  %v2098_v4 = vpop.f32.mrf.mxu0 }
 0x5e7   :  { %v2354_v5 = vmul.f32 0.35355338, %v2145_v63 }
 0x5e8   :  { %v4239_v7 = vpop.f32.mrf.mxu0  ;;  %v4244_v10 = vpop.f32.mrf.mxu1 }
 0x5e9   :  { %v2368_v12 = vsel %vm530_vm3, %v2354_v5, -inf }
 0x5ea   :  { %v2148_v13 = vpop.f32.mrf.mxu1  ;;  %2369 = vmax.xlane.f32.xlu0 %v2368_v12  ;;  %v2195_v8 = vpop.f32.mrf.mxu0 }
 0x5eb   :  { %v2355_v16 = vmul.f32 0.35355338, %v2195_v8 }
 0x5ec   :  { %v4245_v19 = vpop.f32.mrf.mxu1  ;;  %v4250_v22 = vpop.f32.mrf.mxu0 }
 0x5ed   :  { %v2371_v23 = vsel %vm530_vm3, %v2355_v16, -inf }
 0x5ee   :  { %v2245_v24 = vpop.f32.mrf.mxu1  ;;  %2372 = vmax.xlane.f32.xlu1 %v2371_v23  ;;  %v2198_v28 = vpop.f32.mrf.mxu0 }
 0x5ef   :  { %v2356_v31 = vmul.f32 0.35355338, %v2245_v24 }
 0x5f0   :  { %v4251_v32 = vpop.f32.mrf.mxu0  ;;  %v4256_v33 = vpop.f32.mrf.mxu1 }
 0x5f1   :  { %v2374_v36 = vsel %vm530_vm3, %v2356_v31, -inf }
 0x5f2   :  { %v2248_v15 = vpop.f32.mrf.mxu1  ;;  %2375 = vmax.xlane.f32.xlu0 %v2374_v36  ;;  %v2295_v25 = vpop.f32.mrf.mxu0 }
 0x5f3   :  { %v5086_v37 = vmul.f32 0.35355338, %v2295_v25 }
 0x5f4   :  { %v4257_v35 = vpop.f32.mrf.mxu1  ;;  %v4262_v39 = vpop.f32.mrf.mxu0 }
 0x5f5   :  { %v2377_v40 = vsel %vm530_vm3, %v5086_v37, -inf }
 0x5f6   :  { %v2345_v41 = vpop.f32.mrf.mxu1  ;;  %2378 = vmax.xlane.f32.xlu1 %v2377_v40  ;;  %v2298_v43 = vpop.f32.mrf.mxu0 }
 0x5f7   :  { %v2358_v46 = vmul.f32 0.35355338, %v2345_v41 }
 0x5f8   :  { %v4263_v48 = vpop.f32.mrf.mxu0  ;;  %v4268_v49 = vpop.f32.mrf.mxu1 }
 0x5f9   :  { %v2380_v44 = vsel %vm530_vm3, %v2358_v46, -inf }
 0x5fa   :  { %2381 = vmax.xlane.f32.xlu0 %v2380_v44  ;;  %v2348_v50 = vpop.f32.mrf.mxu1 }
 0x5fc   :  { %v4269_v53 = vpop.f32.mrf.mxu1 }
 0x607   :  { %2695 = vrot.lane.b32.xlu1 %v4647_v27, %s4569_s28 }
 0x610   :  { %2647 = vrot.lane.b32.xlu0 %v4645_v26, %s4569_s28 }
 0x667   :  { %v2361_v55 = vpop.xlane.xlu0 %2360 }
 0x668   :  { %v2383_v56 = vsub.f32 %v2351_v51, %v2361_v55 }
 0x66a   :  { %v2391_v59 = vmul.f32 1.442695, %v2383_v56 }
 0x66b   :  { %v2364_v60 = vpop.xlane.xlu1 %2363 }
 0x66c   :  { %4495 = vpow2.f32 %v2391_v59  ;;  %v2384_v61 = vsub.f32 %v2352_v58, %v2364_v60 }
 0x66e   :  { %v2393_v62 = vmul.f32 1.442695, %v2384_v61 }
 0x66f   :  { %v2367_v0 = vpop.xlane.xlu0 %2366 }
 0x670   :  { %4497 = vpow2.f32 %v2393_v62  ;;  %v2385_v57 = vsub.f32 %v2353_v52, %v2367_v0  ;;  %v2557_v0 = vsel %vm633_vm2, %v5095_v54, 0 }
 0x672   :  { %v2395_v1 = vmul.f32 1.442695, %v2385_v57 }
 0x673   :  { %v2370_v2 = vpop.xlane.xlu0 %2369 }
 0x674   :  { %4499 = vpow2.f32 %v2395_v1  ;;  %v2386_v63 = vsub.f32 %v2354_v5, %v2370_v2 }
 0x676   :  { %v2397_v4 = vmul.f32 1.442695, %v2386_v63 }
 0x677   :  { %v2373_v7 = vpop.xlane.xlu1 %2372 }
 0x678   :  { %4501 = vpow2.f32 %v2397_v4  ;;  %v2387_v10 = vsub.f32 %v2355_v16, %v2373_v7  ;;  %v2605_v4 = vsel %vm633_vm2, %v5097_v45, 0 }
 0x679   :  { %v5099_v12 = vpop.eup %4495 }
 0x67a   :  { %v2399_v13 = vmul.f32 1.442695, %v2387_v10  ;;  %v2407_v51 = vsel %vm530_vm3, %v5099_v12, 0.0 }
 0x67b   :  { %2408 = vadd.xlane.f32.xlu1 %v2407_v51  ;;  %v2376_v58 = vpop.xlane.xlu0 %2375 }
 0x67c   :  { %4503 = vpow2.f32 %v2399_v13  ;;  %v2388_v8 = vsub.f32 %v2356_v31, %v2376_v58 }
 0x67d   :  { %v5103_v19 = vpop.eup %4497 }
 0x67e   :  { %v2401_v52 = vmul.f32 1.442695, %v2388_v8  ;;  %v2410_v5 = vsel %vm530_vm3, %v5103_v19, 0.0 }
 0x67f   :  { %2411 = vadd.xlane.f32.xlu0 %v2410_v5  ;;  %v2379_v36 = vpop.xlane.xlu1 %2378 }
 0x680   :  { %4505 = vpow2.f32 %v2401_v52  ;;  %v2389_v15 = vsub.f32 %v5086_v37, %v2379_v36 }
 0x681   :  { %v5107_v22 = vpop.eup %4499 }
 0x682   :  { %v2413_v16 = vsel %vm530_vm3, %v5107_v22, 0.0  ;;  %v2403_v35 = vmul.f32 1.442695, %v2389_v15 }
 0x683   :  { %2414 = vadd.xlane.f32.xlu1 %v2413_v16  ;;  %v2382_v25 = vpop.xlane.xlu0 %2381  ;;  %v2696_v37 = vpop.permute.xlu1 %2695 }
 0x684   :  { %v2390_v39 = vsub.f32 %v2358_v46, %v2382_v25  ;;  %4507 = vpow2.f32 %v2403_v35  ;;  %v2701_v58 = vsel %vm633_vm2, %v2696_v37, 0 }
 0x685   :  { %v5111_v23 = vpop.eup %4501 }
 0x686   :  { %v2416_v24 = vsel %vm530_vm3, %v5111_v23, 0.0  ;;  %v2405_v40 = vmul.f32 1.442695, %v2390_v39 }
 0x687   :  { %2417 = vadd.xlane.f32.xlu0 %v2416_v24  ;;  %v2648_v46 = vpop.permute.xlu0 %2647 }
 0x688   :  { %4509 = vpow2.f32 %v2405_v40 }
 0x689   :  { %v5115_v28 = vpop.eup %4503 }
 0x68a   :  { %v2419_v31 = vsel %vm530_vm3, %v5115_v28, 0.0 }
 0x68b   :  { %2420 = vadd.xlane.f32.xlu1 %v2419_v31 }
 0x68d   :  { %v5119_v32 = vpop.eup %4505 }
 0x68e   :  { %v2422_v33 = vsel %vm530_vm3, %v5119_v32, 0.0 }
 0x68f   :  { %2423 = vadd.xlane.f32.xlu0 %v2422_v33 }
 0x691   :  { %v5128_v41 = vpop.eup %4507 }
 0x692   :  { %v2425_v43 = vsel %vm530_vm3, %v5128_v41, 0.0 }
 0x695   :  { %v5132_v48 = vpop.eup %4509 }
 0x696   :  { %v2428_v49 = vsel %vm530_vm3, %v5132_v48, 0.0 }
 0x69c   :  { %2791 = vrot.lane.b32.xlu1 %v4654_v30, %s4569_s28 }
 0x6a5   :  { %2743 = vrot.lane.b32.xlu0 %v4652_v29, %s4569_s28 }
 0x6c0   :  { %2426 = vadd.xlane.f32.xlu1 %v2425_v43 }
 0x6c4   :  { %2429 = vadd.xlane.f32.xlu0 %v2428_v49 }
 0x6d1   :  { %2932 = vrot.lane.b32.xlu1 %v4626_v20, %s4570_s29 }
 0x6d5   :  { %2930 = vrot.lane.b32.xlu1 %v4626_v20, %s4571_s30 }
 0x6d9   :  { %3032 = vrot.lane.b32.xlu1 %v4629_v21, %s4570_s29 }
 0x6da   :  { %2882 = vrot.lane.b32.xlu0 %v4620_v17, %s4570_s29 }
 0x6dd   :  { %3030 = vrot.lane.b32.xlu1 %v4629_v21, %s4571_s30 }
 0x6de   :  { %2880 = vrot.lane.b32.xlu0 %v4620_v17, %s4571_s30 }
 0x6e1   :  { %3132 = vrot.lane.b32.xlu1 %v4647_v27, %s4570_s29 }
 0x6e2   :  { %2982 = vrot.lane.b32.xlu0 %v4622_v18, %s4570_s29 }
 0x6e5   :  { %3130 = vrot.lane.b32.xlu1 %v4647_v27, %s4571_s30 }
 0x6e6   :  { %2980 = vrot.lane.b32.xlu0 %v4622_v18, %s4571_s30 }
 0x6e9   :  { %3232 = vrot.lane.b32.xlu1 %v4654_v30, %s4570_s29 }
 0x6ea   :  { %3082 = vrot.lane.b32.xlu0 %v4645_v26, %s4570_s29 }
 0x6ed   :  { %3230 = vrot.lane.b32.xlu1 %v4654_v30, %s4571_s30 }
 0x6ee   :  { %3080 = vrot.lane.b32.xlu0 %v4645_v26, %s4571_s30 }
 0x6f1   :  { %3384 = vrot.lane.b32.xlu1 %v4620_v17, %s4572_s2 }
 0x6f2   :  { %3182 = vrot.lane.b32.xlu0 %v4652_v29, %s4570_s29 }
 0x6f6   :  { %3180 = vrot.lane.b32.xlu0 %v4652_v29, %s4571_s30 }
 0x704   :  { %v2409_v44 = vpop.xlane.xlu1 %2408 }
 0x705   :  { %4511 = vrcp.f32 %v2409_v44 }
 0x708   :  { %v2412_v50 = vpop.xlane.xlu0 %2411 }
 0x709   :  { %4513 = vrcp.f32 %v2412_v50 }
 0x70c   :  { %v2415_v53 = vpop.xlane.xlu1 %2414 }
 0x70d   :  { %4515 = vrcp.f32 %v2415_v53 }
 0x710   :  { %v2418_v55 = vpop.xlane.xlu0 %2417 }
 0x711   :  { %4517 = vrcp.f32 %v2418_v55 }
 0x712   :  { %v4512_v56 = vpop.eup %4511 }
 0x713   :  { %v2439_v59 = vmul.f32 %v4512_v56, %v5099_v12  ;;  %v2653_v12 = vsel %vm633_vm2, %v2648_v46, 0 }
 0x714   :  { %v2421_v60 = vpop.xlane.xlu1 %2420 }
 0x715   :  { %4519 = vrcp.f32 %v2421_v60  ;;  %v2447_v61 = vpack.c.bf16 %v2439_v59, %v2439_v59 }
 0x716   :  { %v4514_v62 = vpop.eup %4513 }
 0x717   :  { %4273 = vmatmul.mubr.msk.bf16.vlgmr.msra.gmra.mxu0 %vm629_vm4, %v2447_v61  ;;  %v2440_v57 = vmul.f32 %v4514_v62, %v5103_v19 }
 0x718   :  { %4283 = vmatpush3.bf16.msra.mxu0 %v2557_v0  ;;  %v2424_v1 = vpop.xlane.xlu0 %2423  ;;  %4284 = vmatprep.mubr.msk.bf16.mxu0 %vm4561_vm0, %v4560_v3 }
 0x719   :  { %4521 = vrcp.f32 %v2424_v1  ;;  %v2448_v2 = vpack.c.bf16 %v2440_v57, %v2440_v57  ;;  %4294 = vmatprep.subr.bf16.mxu0 %v4560_v3 }
 0x71a   :  { %v4516_v63 = vpop.eup %4515 }
 0x71b   :  { %4279 = vmatmul.mubr.msk.bf16.vlgmr.msra.gmra.mxu1 %vm629_vm4, %v2448_v2  ;;  %v2441_v54 = vmul.f32 %v4516_v63, %v5107_v22 }
 0x71c   :  { %4289 = vmatpush3.bf16.msra.mxu1 %v2605_v4  ;;  %4290 = vmatprep.mubr.msk.bf16.mxu1 %vm4561_vm0, %v4560_v3  ;;  %v2744_v19 = vpop.permute.xlu0 %2743 }
 0x71d   :  { %v2449_v7 = vpack.c.bf16 %v2441_v54, %v2441_v54  ;;  %4300 = vmatprep.subr.bf16.mxu1 %v4560_v3  ;;  %v2749_v22 = vsel %vm633_vm2, %v2744_v19, 0 }
 0x71e   :  { %v4518_v10 = vpop.eup %4517 }
 0x71f   :  { %4285 = vmatmul.mubr.msk.bf16.vlgmr.msra.gmra.mxu0 %vm629_vm4, %v2449_v7  ;;  %v2442_v13 = vmul.f32 %v4518_v10, %v5111_v23  ;;  %v2792_v23 = vpop.permute.xlu1 %2791 }
 0x720   :  { %4295 = vmatpush3.bf16.msra.mxu0 %v2653_v12  ;;  %4296 = vmatprep.mubr.msk.bf16.mxu0 %vm4561_vm0, %v4560_v3 }
 0x721   :  { %v2450_v45 = vpack.c.bf16 %v2442_v13, %v2442_v13  ;;  %4306 = vmatprep.subr.bf16.mxu0 %v4560_v3 }
 0x722   :  { %v4520_v51 = vpop.eup %4519 }
 0x723   :  { %4291 = vmatmul.mubr.msk.bf16.vlgmr.msra.gmra.mxu1 %vm629_vm4, %v2450_v45  ;;  %v2443_v8 = vmul.f32 %v4520_v51, %v5115_v28  ;;  %v2797_v28 = vsel %vm633_vm2, %v2792_v23, 0 }
 0x724   :  { %4301 = vmatpush3.bf16.msra.mxu1 %v2701_v58  ;;  %4302 = vmatprep.mubr.msk.bf16.mxu1 %vm4561_vm0, %v4560_v3 }
 0x725   :  { %v2451_v52 = vpack.c.bf16 %v2443_v8, %v2443_v8  ;;  %4312 = vmatprep.subr.bf16.mxu1 %v4560_v3 }
 0x726   :  { %v4522_v5 = vpop.eup %4521 }
 0x727   :  { %4297 = vmatmul.mubr.msk.bf16.vlgmr.msra.gmra.mxu0 %vm629_vm4, %v2451_v52  ;;  %v2444_v16 = vmul.f32 %v4522_v5, %v5119_v32 }
 0x728   :  { %4307 = vmatpush3.bf16.msra.mxu0 %v2749_v22  ;;  %4308 = vmatprep.mubr.msk.bf16.mxu0 %vm4561_vm0, %v4560_v3 }
 0x729   :  { %v2452_v24 = vpack.c.bf16 %v2444_v16, %v2444_v16  ;;  %4318 = vmatprep.subr.bf16.mxu0 %v4560_v3 }
 0x72b   :  { %4303 = vmatmul.mubr.msk.bf16.vlgmr.msra.gmra.mxu1 %vm629_vm4, %v2452_v24 }
 0x72c   :  { %4313 = vmatpush3.bf16.msra.mxu1 %v2797_v28  ;;  %4314 = vmatprep.mubr.msk.bf16.mxu1 %vm4561_vm0, %v4560_v3 }
 0x72d   :  { %4324 = vmatprep.subr.bf16.mxu1 %v4560_v3 }
 0x749   :  { %v2427_v31 = vpop.xlane.xlu1 %2426 }
 0x74a   :  { %4523 = vrcp.f32 %v2427_v31 }
 0x74d   :  { %v2430_v32 = vpop.xlane.xlu0 %2429  ;;  %v2933_v33 = vpop.permute.xlu1 %2932 }
 0x74e   :  { %4525 = vrcp.f32 %v2430_v32  ;;  %v2938_v53 = vsel %vm34_vm1, %v2933_v33, 0 }
 0x751   :  { %v2883_v36 = vpop.permute.xlu0 %2882  ;;  %v2931_v25 = vpop.permute.xlu1 %2930 }
 0x752   :  { %v2888_v43 = vsel %vm34_vm1, %v2883_v36, 0 }
 0x755   :  { %v2881_v15 = vpop.permute.xlu0 %2880  ;;  %v3033_v46 = vpop.permute.xlu1 %3032 }
 0x756   :  { %v3038_v59 = vsel %vm34_vm1, %v3033_v46, 0 }
 0x757   :  { %v4524_v35 = vpop.eup %4523 }
 0x758   :  { %v2445_v39 = vmul.f32 %v4524_v35, %v5128_v41 }
 0x759   :  { %v2983_v40 = vpop.permute.xlu0 %2982  ;;  %v3031_v41 = vpop.permute.xlu1 %3030 }
 0x75a   :  { %v2453_v49 = vpack.c.bf16 %v2445_v39, %v2445_v39  ;;  %v2988_v56 = vsel %vm34_vm1, %v2983_v40, 0 }
 0x75b   :  { %v4526_v37 = vpop.eup %4525 }
 0x75c   :  { %4309 = vmatmul.mubr.msk.bf16.vlgmr.msra.gmra.mxu0 %vm629_vm4, %v2453_v49  ;;  %v2446_v44 = vmul.f32 %v4526_v37, %v5132_v48 }
 0x75d   :  { %4319 = vmatpush3.bf16.xpose.msra.mxu0 %v2888_v43  ;;  %4320 = vmatprep.mubr.msk.bf16.mxu0 %vm4561_vm0, %v4560_v3  ;;  %v2981_v50 = vpop.permute.xlu0 %2980  ;;  %v3133_v60 = vpop.permute.xlu1 %3132 }
 0x75e   :  { %v2454_v55 = vpack.c.bf16 %v2446_v44, %v2446_v44  ;;  %4330 = vmatprep.subr.bf16.mxu0 %v4560_v3  ;;  %v3138_v57 = vsel %vm34_vm1, %v3133_v60, 0 }
 0x760   :  { %4315 = vmatmul.mubr.msk.bf16.vlgmr.msra.gmra.mxu1 %vm629_vm4, %v2454_v55 }
 0x761   :  { %4325 = vmatpush3.bf16.xpose.msra.mxu1 %v2938_v53  ;;  %4326 = vmatprep.mubr.msk.bf16.mxu1 %vm4561_vm0, %v4560_v3  ;;  %v3083_v48 = vpop.permute.xlu0 %3082  ;;  %v3131_v0 = vpop.permute.xlu1 %3130 }
 0x762   :  { %4336 = vmatprep.subr.bf16.mxu1 %v4560_v3  ;;  %v3088_v62 = vsel %vm34_vm1, %v3083_v48, 0 }
 0x764   :  { %4321 = vmatmul.mubr.msk.bf16.vlgmr.msra.gmra.mxu0 %vm34_vm1, %v2881_v15 }
 0x765   :  { %4331 = vmatpush3.bf16.xpose.msra.mxu0 %v2988_v56  ;;  %4332 = vmatprep.mubr.msk.bf16.mxu0 %vm4561_vm0, %v4560_v3  ;;  %v3081_v61 = vpop.permute.xlu0 %3080  ;;  %v3233_v63 = vpop.permute.xlu1 %3232 }
 0x766   :  { %4342 = vmatprep.subr.bf16.mxu0 %v4560_v3  ;;  %v3238_v4 = vsel %vm34_vm1, %v3233_v63, 0 }
 0x768   :  { %4327 = vmatmul.mubr.msk.bf16.vlgmr.msra.gmra.mxu1 %vm34_vm1, %v2931_v25 }
 0x769   :  { %4337 = vmatpush3.bf16.xpose.msra.mxu1 %v3038_v59  ;;  %4338 = vmatprep.mubr.msk.bf16.mxu1 %vm4561_vm0, %v4560_v3  ;;  %v3183_v1 = vpop.permute.xlu0 %3182  ;;  %v3231_v17 = vpop.permute.xlu1 %3230 }
 0x76a   :  { %4348 = vmatprep.subr.bf16.mxu1 %v4560_v3  ;;  %v3188_v2 = vsel %vm34_vm1, %v3183_v1, 0 }
 0x76c   :  { %4333 = vmatmul.mubr.msk.bf16.vlgmr.msra.gmra.mxu0 %vm34_vm1, %v2981_v50 }
 0x76d   :  { %4343 = vmatpush3.bf16.xpose.msra.mxu0 %v3088_v62  ;;  %4344 = vmatprep.mubr.msk.bf16.mxu0 %vm4561_vm0, %v4560_v3  ;;  %v3181_v54 = vpop.permute.xlu0 %3180  ;;  %v3385_v16 = vpop.permute.xlu1 %3384 }
 0x76e   :  { %4354 = vmatprep.subr.bf16.mxu0 %v4560_v3  ;;  %v3390_v28 = vsel %vm633_vm2, %v3385_v16, 0 }
 0x770   :  { %4339 = vmatmul.mubr.msk.bf16.vlgmr.msra.gmra.mxu1 %vm34_vm1, %v3031_v41 }
 0x771   :  { %4349 = vmatpush3.bf16.xpose.msra.mxu1 %v3138_v57  ;;  %4350 = vmatprep.mubr.msk.bf16.mxu1 %vm4561_vm0, %v4560_v3 }
 0x772   :  { %4360 = vmatprep.subr.bf16.mxu1 %v4560_v3 }
 0x774   :  { %4345 = vmatmul.mubr.msk.bf16.vlgmr.msra.gmra.mxu0 %vm34_vm1, %v3081_v61 }
 0x775   :  { %4355 = vmatpush3.bf16.xpose.msra.mxu0 %v3188_v2  ;;  %4356 = vmatprep.mubr.msk.bf16.mxu0 %vm4561_vm0, %v4560_v3 }
 0x776   :  { %4366 = vmatprep.subr.bf16.mxu0 %v4560_v3 }
 0x778   :  { %4351 = vmatmul.mubr.msk.bf16.vlgmr.msra.gmra.mxu1 %vm34_vm1, %v3131_v0 }
 0x779   :  { %4361 = vmatpush3.bf16.xpose.msra.mxu1 %v3238_v4  ;;  %4362 = vmatprep.mubr.msk.bf16.mxu1 %vm4561_vm0, %v4560_v3 }
 0x77a   :  { %4372 = vmatprep.subr.bf16.mxu1 %v4560_v3 }
 0x77c   :  { %4357 = vmatmul.mubr.msk.bf16.vlgmr.msra.gmra.mxu0 %vm34_vm1, %v3181_v54 }
 0x77d   :  { %4368 = vmatprep.mubr.msk.bf16.mxu0 %vm4561_vm0, %v4560_v3  ;;  %4367 = vmatpush3.bf16.msra.mxu0 %v3390_v28 }
 0x77e   :  { %4378 = vmatprep.subr.bf16.mxu0 %v4560_v3 }
 0x780   :  { %4363 = vmatmul.mubr.msk.bf16.vlgmr.msra.gmra.mxu1 %vm34_vm1, %v3231_v17 }
 0x781   :  { %4374 = vmatprep.mubr.msk.bf16.mxu1 %vm4561_vm0, %v4560_v3 }
 0x7d7   :  { %v5240_v7 = vpop.f32.mrf.mxu0 }
 0x7d9   :  { %v4274_v10 = vpop.f32.mrf.mxu0 }
 0x7db   :  { %v2500_v12 = vpop.f32.mrf.mxu0  ;;  %v5242_v13 = vpop.f32.mrf.mxu1 }
 0x7dd   :  { %v4275_v45 = vpop.f32.mrf.mxu0  ;;  %v4280_v51 = vpop.f32.mrf.mxu1 }
 0x7df   :  { %v2548_v58 = vpop.f32.mrf.mxu1  ;;  %v5244_v8 = vpop.f32.mrf.mxu0 }
 0x7e1   :  { %v4281_v19 = vpop.f32.mrf.mxu1  ;;  %v4286_v52 = vpop.f32.mrf.mxu0 }
 0x7e3   :  { %v2596_v5 = vpop.f32.mrf.mxu0  ;;  %v5246_v22 = vpop.f32.mrf.mxu1 }
 0x7e5   :  { %v4287_v23 = vpop.f32.mrf.mxu0  ;;  %v4292_v24 = vpop.f32.mrf.mxu1 }
 0x7e7   :  { %v2644_v31 = vpop.f32.mrf.mxu1  ;;  %v5249_v32 = vpop.f32.mrf.mxu0 }
 0x7e9   :  { %v4293_v33 = vpop.f32.mrf.mxu1  ;;  %v4298_v36 = vpop.f32.mrf.mxu0 }
 0x7eb   :  { %v2692_v15 = vpop.f32.mrf.mxu0  ;;  %v5252_v25 = vpop.f32.mrf.mxu1 }
 0x7ed   :  { %v4299_v35 = vpop.f32.mrf.mxu0  ;;  %v4304_v39 = vpop.f32.mrf.mxu1 }
 0x7ef   :  { %v2740_v40 = vpop.f32.mrf.mxu1 }
 0x7f1   :  { %v4305_v43 = vpop.f32.mrf.mxu1 }
 0x81c   :  { %v5254_v49 = vpop.f32.mrf.mxu0 }
 0x81e   :  { %v4310_v37 = vpop.f32.mrf.mxu0 }
 0x820   :  { %v2788_v46 = vpop.f32.mrf.mxu0  ;;  %v5256_v44 = vpop.f32.mrf.mxu1 }
 0x822   :  { %v4311_v50 = vpop.f32.mrf.mxu0  ;;  %v4316_v53 = vpop.f32.mrf.mxu1 }
 0x824   :  { %v2836_v55 = vpop.f32.mrf.mxu1  ;;  %v2924_v41 = vpop.f32.mrf.mxu0 }
 0x825   :  { %v3280_v56 = vmul.f32 0.35355338, %v2924_v41 }
 0x826   :  { %v4317_v48 = vpop.f32.mrf.mxu1  ;;  %v4322_v59 = vpop.f32.mrf.mxu0 }
 0x827   :  { %v3288_v60 = vsel %vm530_vm3, %v3280_v56, -inf }
 0x828   :  { %v2974_v61 = vpop.f32.mrf.mxu1  ;;  %3289 = vmax.xlane.f32.xlu0 %v3288_v60  ;;  %v2927_v62 = vpop.f32.mrf.mxu0 }
 0x829   :  { %v3281_v0 = vmul.f32 0.35355338, %v2974_v61 }
 0x82a   :  { %v4323_v57 = vpop.f32.mrf.mxu0  ;;  %v4328_v1 = vpop.f32.mrf.mxu1 }
 0x82b   :  { %v3291_v2 = vsel %vm530_vm3, %v3281_v0, -inf }
 0x82c   :  { %3292 = vmax.xlane.f32.xlu1 %v3291_v2  ;;  %v2977_v63 = vpop.f32.mrf.mxu1  ;;  %v3024_v4 = vpop.f32.mrf.mxu0 }
 0x82d   :  { %v3282_v54 = vmul.f32 0.35355338, %v3024_v4 }
 0x82e   :  { %v4329_v17 = vpop.f32.mrf.mxu1  ;;  %v4334_v10 = vpop.f32.mrf.mxu0 }
 0x82f   :  { %v3294_v12 = vsel %vm530_vm3, %v3282_v54, -inf }
 0x830   :  { %v3074_v45 = vpop.f32.mrf.mxu1  ;;  %3295 = vmax.xlane.f32.xlu0 %v3294_v12  ;;  %v3027_v51 = vpop.f32.mrf.mxu0 }
 0x831   :  { %v3283_v58 = vmul.f32 0.35355338, %v3074_v45 }
 0x832   :  { %v4335_v19 = vpop.f32.mrf.mxu0  ;;  %v4340_v52 = vpop.f32.mrf.mxu1 }
 0x833   :  { %v3297_v5 = vsel %vm530_vm3, %v3283_v58, -inf }
 0x834   :  { %v3077_v16 = vpop.f32.mrf.mxu1  ;;  %3298 = vmax.xlane.f32.xlu0 %v3297_v5  ;;  %v3124_v23 = vpop.f32.mrf.mxu0 }
 0x835   :  { %v5262_v24 = vmul.f32 0.35355338, %v3124_v23 }
 0x836   :  { %v4341_v28 = vpop.f32.mrf.mxu1  ;;  %v4346_v31 = vpop.f32.mrf.mxu0 }
 0x837   :  { %v3300_v33 = vsel %vm530_vm3, %v5262_v24, -inf }
 0x838   :  { %v3174_v36 = vpop.f32.mrf.mxu1  ;;  %3301 = vmax.xlane.f32.xlu1 %v3300_v33  ;;  %v3127_v15 = vpop.f32.mrf.mxu0 }
 0x839   :  { %v5266_v35 = vmul.f32 0.35355338, %v3174_v36 }
 0x83a   :  { %v4347_v39 = vpop.f32.mrf.mxu0  ;;  %v4352_v40 = vpop.f32.mrf.mxu1 }
 0x83b   :  { %v3303_v43 = vsel %vm530_vm3, %v5266_v35, -inf }
 0x83c   :  { %v3177_v37 = vpop.f32.mrf.mxu1  ;;  %3304 = vmax.xlane.f32.xlu0 %v3303_v43  ;;  %v3224_v46 = vpop.f32.mrf.mxu0 }
 0x83d   :  { %v3286_v50 = vmul.f32 0.35355338, %v3224_v46 }
 0x83e   :  { %v4353_v53 = vpop.f32.mrf.mxu1  ;;  %v4358_v55 = vpop.f32.mrf.mxu0 }
 0x83f   :  { %v3306_v41 = vsel %vm530_vm3, %v3286_v50, -inf }
 0x840   :  { %v3274_v48 = vpop.f32.mrf.mxu1  ;;  %3307 = vmax.xlane.f32.xlu1 %v3306_v41  ;;  %v3227_v59 = vpop.f32.mrf.mxu0 }
 0x841   :  { %v3287_v60 = vmul.f32 0.35355338, %v3274_v48 }
 0x842   :  { %v4364_v61 = vpop.f32.mrf.mxu1  ;;  %v4359_v62 = vpop.f32.mrf.mxu0 }
 0x843   :  { %v3309_v57 = vsel %vm530_vm3, %v3287_v60, -inf }
 0x844   :  { %3310 = vmax.xlane.f32.xlu0 %v3309_v57  ;;  %v3277_v1 = vpop.f32.mrf.mxu1 }
 0x846   :  { %v4365_v2 = vpop.f32.mrf.mxu1 }
 0x851   :  { %3480 = vrot.lane.b32.xlu1 %v4622_v18, %s4572_s2 }
 0x855   :  { %3528 = vrot.lane.b32.xlu1 %v4629_v21, %s4572_s2 }
 0x85a   :  { %3432 = vrot.lane.b32.xlu0 %v4626_v20, %s4572_s2 }
 0x8b1   :  { %v3290_v63 = vpop.xlane.xlu0 %3289 }
 0x8b2   :  { %v3312_v4 = vsub.f32 %v3280_v56, %v3290_v63 }
 0x8b4   :  { %v3320_v17 = vmul.f32 1.442695, %v3312_v4 }
 0x8b5   :  { %v3293_v10 = vpop.xlane.xlu1 %3292 }
 0x8b6   :  { %4527 = vpow2.f32 %v3320_v17  ;;  %v3313_v12 = vsub.f32 %v3281_v0, %v3293_v10 }
 0x8b8   :  { %v3322_v45 = vmul.f32 1.442695, %v3313_v12 }
 0x8b9   :  { %v3296_v51 = vpop.xlane.xlu0 %3295 }
 0x8ba   :  { %4529 = vpow2.f32 %v3322_v45  ;;  %v3314_v19 = vsub.f32 %v3282_v54, %v3296_v51 }
 0x8bc   :  { %v3324_v52 = vmul.f32 1.442695, %v3314_v19 }
 0x8bd   :  { %v3299_v5 = vpop.xlane.xlu0 %3298 }
 0x8be   :  { %4531 = vpow2.f32 %v3324_v52  ;;  %v3315_v18 = vsub.f32 %v3283_v58, %v3299_v5 }
 0x8c0   :  { %v3326_v16 = vmul.f32 1.442695, %v3315_v18 }
 0x8c1   :  { %v3302_v39 = vpop.xlane.xlu1 %3301 }
 0x8c2   :  { %4533 = vpow2.f32 %v3326_v16  ;;  %v3316_v40 = vsub.f32 %v5262_v24, %v3302_v39 }
 0x8c3   :  { %v5278_v21 = vpop.eup %4527 }
 0x8c4   :  { %v3336_v20 = vsel %vm530_vm3, %v5278_v21, 0.0  ;;  %v3328_v46 = vmul.f32 1.442695, %v3316_v40 }
 0x8c5   :  { %3337 = vadd.xlane.f32.xlu1 %v3336_v20  ;;  %v3305_v23 = vpop.xlane.xlu0 %3304 }
 0x8c6   :  { %v3317_v37 = vsub.f32 %v5266_v35, %v3305_v23  ;;  %4535 = vpow2.f32 %v3328_v46 }
 0x8c7   :  { %v5282_v56 = vpop.eup %4529 }
 0x8c8   :  { %v3339_v0 = vsel %vm530_vm3, %v5282_v56, 0.0  ;;  %v3330_v55 = vmul.f32 1.442695, %v3317_v37 }
 0x8c9   :  { %3340 = vadd.xlane.f32.xlu0 %v3339_v0  ;;  %v3308_v43 = vpop.xlane.xlu1 %3307 }
 0x8ca   :  { %v3318_v53 = vsub.f32 %v3286_v50, %v3308_v43  ;;  %4537 = vpow2.f32 %v3330_v55 }
 0x8cb   :  { %v5286_v54 = vpop.eup %4531 }
 0x8cc   :  { %v3342_v58 = vsel %vm530_vm3, %v5286_v54, 0.0  ;;  %v3332_v41 = vmul.f32 1.442695, %v3318_v53 }
 0x8cd   :  { %3343 = vadd.xlane.f32.xlu1 %v3342_v58  ;;  %v3311_v28 = vpop.xlane.xlu0 %3310 }
 0x8ce   :  { %v3319_v48 = vsub.f32 %v3287_v60, %v3311_v28  ;;  %4539 = vpow2.f32 %v3332_v41 }
 0x8cf   :  { %v5290_v31 = vpop.eup %4533 }
 0x8d0   :  { %v3345_v33 = vsel %vm530_vm3, %v5290_v31, 0.0  ;;  %v3334_v59 = vmul.f32 1.442695, %v3319_v48 }
 0x8d1   :  { %3346 = vadd.xlane.f32.xlu0 %v3345_v33  ;;  %v3433_v36 = vpop.permute.xlu0 %3432 }
 0x8d2   :  { %v3438_v15 = vsel %vm633_vm2, %v3433_v36, 0  ;;  %4541 = vpow2.f32 %v3334_v59 }
 0x8d3   :  { %4373 = vmatpush3.bf16.msra.mxu1 %v3438_v15 }
 0x8d4   :  { %4384 = vmatprep.subr.bf16.mxu1 %v4560_v3 }
 0x8de   :  { %3624 = vrot.lane.b32.xlu1 %v4647_v27, %s4572_s2  ;;  %v5302_v27 = vpop.eup %4535 }
 0x8df   :  { %v5304_v61 = vpop.eup %4537 }
 0x8e0   :  { %v5308_v24 = vpop.eup %4539  ;;  %v3351_v50 = vsel %vm530_vm3, %v5304_v61, 0.0 }
 0x8e1   :  { %v3354_v35 = vsel %vm530_vm3, %v5308_v24, 0.0  ;;  %v5314_v60 = vpop.eup %4541 }
 0x8e2   :  { %v3357_v62 = vsel %vm530_vm3, %v5314_v60, 0.0 }
 0x8e7   :  { %3576 = vrot.lane.b32.xlu0 %v4645_v26, %s4572_s2  ;;  %v3348_v26 = vsel %vm530_vm3, %v5302_v27, 0.0 }
 0x902   :  { %3349 = vadd.xlane.f32.xlu1 %v3348_v26 }
 0x906   :  { %3355 = vadd.xlane.f32.xlu1 %v3354_v35  ;;  %3352 = vadd.xlane.f32.xlu0 %v3351_v50 }
 0x90a   :  { %3358 = vadd.xlane.f32.xlu0 %v3357_v62 }
 0x917   :  { %3720 = vrot.lane.b32.xlu1 %v4654_v30, %s4572_s2 }
 0x91b   :  { %1920 = vrot.lane.b32.xlu1 %v5062_v11, %s4573_s3 }
 0x91f   :  { %1924 = vrot.lane.b32.xlu1 %v5066_v9, %s4573_s3 }
 0x920   :  { %3672 = vrot.lane.b32.xlu0 %v4652_v29, %s4572_s2  ;;  %v3481_v29 = vpop.permute.xlu1 %3480 }
 0x923   :  { %1928 = vrot.lane.b32.xlu1 %v5074_v38, %s4573_s3 }
 0x924   :  { %1918 = vrot.lane.b32.xlu0 %v5060_v6, %s4573_s3  ;;  %v3529_v30 = vpop.permute.xlu1 %3528 }
 0x927   :  { %1932 = vrot.lane.b32.xlu1 %v5078_v47, %s4573_s3 }
 0x928   :  { %1922 = vrot.lane.b32.xlu0 %v5064_v14, %s4573_s3 }
 0x92b   :  { %2849 = vrot.lane.b32.xlu1 %v5242_v13, %s4574_s4 }
 0x92c   :  { %1926 = vrot.lane.b32.xlu0 %v5069_v34, %s4573_s3 }
 0x92f   :  { %2853 = vrot.lane.b32.xlu1 %v5246_v22, %s4574_s4 }
 0x930   :  { %1930 = vrot.lane.b32.xlu0 %v5076_v42, %s4573_s3 }
 0x933   :  { %2857 = vrot.lane.b32.xlu1 %v5252_v25, %s4574_s4 }
 0x934   :  { %2847 = vrot.lane.b32.xlu0 %v5240_v7, %s4574_s4  ;;  %v3486_v7 = vsel %vm633_vm2, %v3481_v29, 0 }
 0x937   :  { %2861 = vrot.lane.b32.xlu1 %v5256_v44, %s4574_s4 }
 0x938   :  { %2851 = vrot.lane.b32.xlu0 %v5244_v8, %s4574_s4 }
 0x93c   :  { %2855 = vrot.lane.b32.xlu0 %v5249_v32, %s4574_s4  ;;  %v3534_v32 = vsel %vm633_vm2, %v3529_v30, 0 }
 0x940   :  { %2859 = vrot.lane.b32.xlu0 %v5254_v49, %s4574_s4 }
 0x94e   :  { %v3338_v6 = vpop.xlane.xlu1 %3337 }
 0x94f   :  { %4543 = vrcp.f32 %v3338_v6 }
 0x952   :  { %v3341_v11 = vpop.xlane.xlu0 %3340 }
 0x953   :  { %4545 = vrcp.f32 %v3341_v11 }
 0x956   :  { %v3344_v14 = vpop.xlane.xlu1 %3343 }
 0x957   :  { %4547 = vrcp.f32 %v3344_v14 }
 0x95a   :  { %v3347_v9 = vpop.xlane.xlu0 %3346  ;;  %v3625_v63 = vpop.permute.xlu1 %3624 }
 0x95b   :  { %4549 = vrcp.f32 %v3347_v9  ;;  %v3630_v17 = vsel %vm633_vm2, %v3625_v63, 0 }
 0x95c   :  { %v4544_v34 = vpop.eup %4543 }
 0x95d   :  { %v3368_v38 = vmul.f32 %v4544_v34, %v5278_v21 }
 0x95e   :  { %v3577_v49 = vpop.permute.xlu0 %3576 }
 0x95f   :  { %v3376_v42 = vpack.c.bf16 %v3368_v38, %v3368_v38  ;;  %v3582_v2 = vsel %vm633_vm2, %v3577_v49, 0 }
 0x960   :  { %v4546_v47 = vpop.eup %4545 }
 0x961   :  { %v3369_v13 = vmul.f32 %v4546_v47, %v5282_v56  ;;  %4369 = vmatmul.mubr.msk.bf16.vlgmr.msra.gmra.mxu0 %vm629_vm4, %v3376_v42 }
 0x962   :  { %4379 = vmatpush3.bf16.msra.mxu0 %v3486_v7  ;;  %4380 = vmatprep.mubr.msk.bf16.mxu0 %vm4561_vm0, %v4560_v3 }
 0x963   :  { %v3377_v8 = vpack.c.bf16 %v3369_v13, %v3369_v13  ;;  %4390 = vmatprep.subr.bf16.mxu0 %v4560_v3 }
 0x964   :  { %v4548_v22 = vpop.eup %4547 }
 0x965   :  { %v3370_v25 = vmul.f32 %v4548_v22, %v5286_v54  ;;  %4375 = vmatmul.mubr.msk.bf16.vlgmr.msra.gmra.mxu1 %vm629_vm4, %v3377_v8 }
 0x966   :  { %4385 = vmatpush3.bf16.msra.mxu1 %v3534_v32  ;;  %4386 = vmatprep.mubr.msk.bf16.mxu1 %vm4561_vm0, %v4560_v3 }
 0x967   :  { %v3378_v44 = vpack.c.bf16 %v3370_v25, %v3370_v25  ;;  %4396 = vmatprep.subr.bf16.mxu1 %v4560_v3 }
 0x968   :  { %v4550_v57 = vpop.eup %4549 }
 0x969   :  { %v3371_v1 = vmul.f32 %v4550_v57, %v5290_v31  ;;  %4381 = vmatmul.mubr.msk.bf16.vlgmr.msra.gmra.mxu0 %vm629_vm4, %v3378_v44 }
 0x96a   :  { %4391 = vmatpush3.bf16.msra.mxu0 %v3582_v2  ;;  %4392 = vmatprep.mubr.msk.bf16.mxu0 %vm4561_vm0, %v4560_v3 }
 0x96b   :  { %v3379_v4 = vpack.c.bf16 %v3371_v1, %v3371_v1  ;;  %4402 = vmatprep.subr.bf16.mxu0 %v4560_v3 }
 0x96d   :  { %4387 = vmatmul.mubr.msk.bf16.vlgmr.msra.gmra.mxu1 %vm629_vm4, %v3379_v4 }
 0x96e   :  { %4397 = vmatpush3.bf16.msra.mxu1 %v3630_v17  ;;  %4398 = vmatprep.mubr.msk.bf16.mxu1 %vm4561_vm0, %v4560_v3 }
 0x96f   :  { %4408 = vmatprep.subr.bf16.mxu1 %v4560_v3 }
 0x98b   :  { %v3350_v10 = vpop.xlane.xlu1 %3349 }
 0x98c   :  { %4551 = vrcp.f32 %v3350_v10 }
 0x98f   :  { %v3356_v12 = vpop.xlane.xlu1 %3355  ;;  %v3353_v45 = vpop.xlane.xlu0 %3352 }
 0x990   :  { %4553 = vrcp.f32 %v3356_v12 }
 0x991   :  { %4555 = vrcp.f32 %v3353_v45 }
 0x993   :  { %v3721_v51 = vpop.permute.xlu1 %3720  ;;  %v3359_v19 = vpop.xlane.xlu0 %3358 }
 0x994   :  { %4557 = vrcp.f32 %v3359_v19  ;;  %v3726_v15 = vsel %vm633_vm2, %v3721_v51, 0 }
 0x997   :  { %v1921_v52 = vpop.permute.xlu1 %1920  ;;  %v3673_v5 = vpop.permute.xlu0 %3672 }
 0x998   :  { %1944 = vst.msk [vmem:[#allocation2 + $0x2] sm:$0x3] %vm1942_vm6, %v1921_v52  ;;  %v3678_v0 = vsel %vm633_vm2, %v3673_v5, 0 }
 0x999   :  { %v4552_v18 = vpop.eup %4551 }
 0x99a   :  { %v3372_v16 = vmul.f32 %v4552_v18, %v5302_v27 }
 0x99b   :  { %v1925_v21 = vpop.permute.xlu1 %1924  ;;  %v1919_v20 = vpop.permute.xlu0 %1918 }
 0x99c   :  { %v3380_v56 = vpack.c.bf16 %v3372_v16, %v3372_v16  ;;  %1946 = vst.msk [vmem:[#allocation2 + $0x6] sm:$0x3] %vm1942_vm6, %v1925_v21  ;;  %1943 = vst.msk [vmem:[#allocation2] sm:$0x3] %vm1942_vm6, %v1919_v20 }
 0x99d   :  { %v4554_v23 = vpop.eup %4553 }
 0x99e   :  { %v4556_v54 = vpop.eup %4555  ;;  %4393 = vmatmul.mubr.msk.bf16.vlgmr.msra.gmra.mxu0 %vm629_vm4, %v3380_v56  ;;  %v3374_v33 = vmul.f32 %v4554_v23, %v5308_v24 }
 0x99f   :  { %v3373_v58 = vmul.f32 %v4556_v54, %v5304_v61  ;;  %v1929_v28 = vpop.permute.xlu1 %1928  ;;  %v1923_v31 = vpop.permute.xlu0 %1922  ;;  %4403 = vmatpush3.bf16.msra.mxu0 %v3678_v0  ;;  %4404 = vmatprep.mubr.msk.bf16.mxu0 %vm4561_vm0, %v4560_v3 }
 0x9a0   :  { %1948 = vst.msk [vmem:[#allocation2 + $0xa] sm:$0x3] %vm1942_vm6, %v1929_v28  ;;  %1945 = vst.msk [vmem:[#allocation2 + $0x4] sm:$0x3] %vm1942_vm6, %v1923_v31  ;;  %v3382_v37 = vpack.c.bf16 %v3374_v33, %v3374_v33 }
 0x9a1   :  { %v3381_v36 = vpack.c.bf16 %v3373_v58, %v3373_v58  ;;  %v4558_v39 = vpop.eup %4557 }
 0x9a2   :  { %v3375_v46 = vmul.f32 %v4558_v39, %v5314_v60 }
 0x9a3   :  { %4399 = vmatmul.mubr.msk.bf16.vlgmr.msra.gmra.mxu1 %vm629_vm4, %v3381_v36  ;;  %v1933_v40 = vpop.permute.xlu1 %1932  ;;  %v1927_v43 = vpop.permute.xlu0 %1926 }
 0x9a4   :  { %1950 = vst.msk [vmem:[#allocation2 + $0xe] sm:$0x3] %vm1942_vm6, %v1933_v40  ;;  %4409 = vmatpush3.bf16.msra.mxu1 %v3726_v15  ;;  %1947 = vst.msk [vmem:[#allocation2 + $0x8] sm:$0x3] %vm1942_vm6, %v1927_v43  ;;  %4410 = vmatprep.mubr.msk.bf16.mxu1 %vm4561_vm0, %v4560_v3  ;;  %v3383_v41 = vpack.c.bf16 %v3375_v46, %v3375_v46 }
 0x9a6   :  { %4405 = vmatmul.mubr.msk.bf16.vlgmr.msra.gmra.mxu0 %vm629_vm4, %v3382_v37 }
 0x9a7   :  { %v2850_v53 = vpop.permute.xlu1 %2849  ;;  %v1931_v55 = vpop.permute.xlu0 %1930 }
 0x9a8   :  { %2873 = vst.msk [vmem:[#allocation2 + $0x2] sm:$0x3] %vm2871_vm7, %v2850_v53 }
 0x9a9   :  { %1949 = vst.msk [vmem:[#allocation2 + $0xc] sm:$0x3] %vm1942_vm6, %v1931_v55 }
 0x9ab   :  { %4411 = vmatmul.mubr.msk.bf16.vlgmr.msra.gmra.mxu1 %vm629_vm4, %v3383_v41  ;;  %v2854_v48 = vpop.permute.xlu1 %2853  ;;  %v2848_v59 = vpop.permute.xlu0 %2847 }
 0x9ac   :  { %2875 = vst.msk [vmem:[#allocation2 + $0x6] sm:$0x3] %vm2871_vm7, %v2854_v48  ;;  %2872 = vst.msk [vmem:[#allocation2] sm:$0x3] %vm2871_vm7, %v2848_v59 }
 0x9af   :  { %v2858_v3 = vpop.permute.xlu1 %2857  ;;  %v2852_v27 = vpop.permute.xlu0 %2851 }
 0x9b0   :  { %2877 = vst.msk [vmem:[#allocation2 + $0xa] sm:$0x3] %vm2871_vm7, %v2858_v3  ;;  %2874 = vst.msk [vmem:[#allocation2 + $0x4] sm:$0x3] %vm2871_vm7, %v2852_v27 }
 0x9b3   :  { %v2862_v61 = vpop.permute.xlu1 %2861  ;;  %v2856_v26 = vpop.permute.xlu0 %2855 }
 0x9b4   :  { %2879 = vst.msk [vmem:[#allocation2 + $0xe] sm:$0x3] %vm2871_vm7, %v2862_v61  ;;  %2876 = vst.msk [vmem:[#allocation2 + $0x8] sm:$0x3] %vm2871_vm7, %v2856_v26 }
 0x9b7   :  { %v2860_v24 = vpop.permute.xlu0 %2859 }
 0x9b8   :  { %2878 = vst.msk [vmem:[#allocation2 + $0xc] sm:$0x3] %vm2871_vm7, %v2860_v24 }
 0xa21   :  { %v3426_v35 = vpop.f32.mrf.mxu0 }
 0xa22   :  { %3776 = vrot.lane.b32.xlu0 %v3426_v35, %s4575_s5 }
 0xa23   :  { %v4370_v50 = vpop.f32.mrf.mxu0 }
 0xa25   :  { %v3429_v60 = vpop.f32.mrf.mxu0  ;;  %v3474_v62 = vpop.f32.mrf.mxu1 }
 0xa26   :  { %3778 = vrot.lane.b32.xlu1 %v3474_v62, %s4575_s5 }
 0xa27   :  { %v4371_v29 = vpop.f32.mrf.mxu0  ;;  %v4376_v30 = vpop.f32.mrf.mxu1 }
 0xa29   :  { %v3477_v6 = vpop.f32.mrf.mxu1  ;;  %v3522_v11 = vpop.f32.mrf.mxu0 }
 0xa2a   :  { %3780 = vrot.lane.b32.xlu0 %v3522_v11, %s4575_s5 }
 0xa2b   :  { %v4377_v14 = vpop.f32.mrf.mxu1  ;;  %v4382_v9 = vpop.f32.mrf.mxu0 }
 0xa2d   :  { %v3525_v34 = vpop.f32.mrf.mxu0  ;;  %v3570_v38 = vpop.f32.mrf.mxu1 }
 0xa2e   :  { %3782 = vrot.lane.b32.xlu1 %v3570_v38, %s4575_s5 }
 0xa2f   :  { %v4383_v42 = vpop.f32.mrf.mxu0  ;;  %v4388_v47 = vpop.f32.mrf.mxu1 }
 0xa31   :  { %v3573_v7 = vpop.f32.mrf.mxu1 }
 0xa33   :  { %v4389_v13 = vpop.f32.mrf.mxu1 }
 0xa5e   :  { %v3618_v8 = vpop.f32.mrf.mxu0 }
 0xa5f   :  { %3784 = vrot.lane.b32.xlu0 %v3618_v8, %s4575_s5 }
 0xa60   :  { %v4394_v22 = vpop.f32.mrf.mxu0 }
 0xa62   :  { %v3621_v32 = vpop.f32.mrf.mxu0 }
 0xa63   :  { %v3666_v25 = vpop.f32.mrf.mxu1 }
 0xa64   :  { %3786 = vrot.lane.b32.xlu1 %v3666_v25, %s4575_s5  ;;  %v4395_v49 = vpop.f32.mrf.mxu0 }
 0xa65   :  { %v4400_v44 = vpop.f32.mrf.mxu1 }
 0xa66   :  { %v3714_v57 = vpop.f32.mrf.mxu0 }
 0xa67   :  { %v3669_v1 = vpop.f32.mrf.mxu1  ;;  %3788 = vrot.lane.b32.xlu0 %v3714_v57, %s4575_s5 }
 0xa68   :  { %v4406_v2 = vpop.f32.mrf.mxu0 }
 0xa69   :  { %v4401_v63 = vpop.f32.mrf.mxu1 }
 0xa6a   :  { %v3717_v4 = vpop.f32.mrf.mxu0 }
 0xa6b   :  { %v3762_v17 = vpop.f32.mrf.mxu1 }
 0xa6c   :  { %3790 = vrot.lane.b32.xlu1 %v3762_v17, %s4575_s5  ;;  %v4407_v10 = vpop.f32.mrf.mxu0 }
 0xa6d   :  { %v4412_v12 = vpop.f32.mrf.mxu1 }
 0xa6f   :  { %v3765_v45 = vpop.f32.mrf.mxu1 }
 0xa71   :  { %v4413_v51 = vpop.f32.mrf.mxu1 }
 0xa94   :  { %v3777_v19 = vpop.permute.xlu0 %3776 }
 0xa95   :  { %3801 = vst.msk [vmem:[#allocation2] sm:$0x3] %vm3800_vm8, %v3777_v19 }
 0xa98   :  { %v3779_v52 = vpop.permute.xlu1 %3778 }
 0xa99   :  { %3802 = vst.msk [vmem:[#allocation2 + $0x2] sm:$0x3] %vm3800_vm8, %v3779_v52 }
 0xa9c   :  { %v3809_v5 = vld [vmem:[#allocation2] sm:$0x3]  ;;  %v3781_v18 = vpop.permute.xlu0 %3780 }
 0xa9d   :  { %v3817_v16 = vpack.c.bf16 %v3809_v5, %v3809_v5  ;;  %3803 = vst.msk [vmem:[#allocation2 + $0x4] sm:$0x3] %vm3800_vm8, %v3781_v18 }
 0xa9f   :  { %3826 = vst.msk [vmem:[%s5441_s1] sm:$0x1] %vm3825_vm9, %v3817_v16 }
 0xaa0   :  { %v3810_v21 = vld [vmem:[#allocation2 + $0x2] sm:$0x3]  ;;  %v3783_v20 = vpop.permute.xlu1 %3782 }
 0xaa1   :  { %v3818_v56 = vpack.c.bf16 %v3810_v21, %v3810_v21  ;;  %3804 = vst.msk [vmem:[#allocation2 + $0x6] sm:$0x3] %vm3800_vm8, %v3783_v20 }
 0xaa3   :  { %3827 = vst.msk [vmem:[%s5441_s1 + $0x1] sm:$0x1] %vm3825_vm9, %v3818_v56 }
 0xaa4   :  { %v3811_v0 = vld [vmem:[#allocation2 + $0x4] sm:$0x3] }
 0xaa5   :  { %v3819_v23 = vpack.c.bf16 %v3811_v0, %v3811_v0 }
 0xaa7   :  { %3828 = vst.msk [vmem:[%s5441_s1 + $0x2] sm:$0x1] %vm3825_vm9, %v3819_v23 }
 0xaa8   :  { %v3812_v54 = vld [vmem:[#allocation2 + $0x6] sm:$0x3] }
 0xaa9   :  { %v3820_v58 = vpack.c.bf16 %v3812_v54, %v3812_v54 }
 0xaab   :  { %3829 = vst.msk [vmem:[%s5441_s1 + $0x3] sm:$0x1] %vm3825_vm9, %v3820_v58 }
 0xad1   :  { %v3785_v28 = vpop.permute.xlu0 %3784 }
 0xad2   :  { %3805 = vst.msk [vmem:[#allocation2 + $0x8] sm:$0x3] %vm3800_vm8, %v3785_v28 }
 0xad6   :  { %v3787_v31 = vpop.permute.xlu1 %3786 }
 0xad7   :  { %3806 = vst.msk [vmem:[#allocation2 + $0xa] sm:$0x3] %vm3800_vm8, %v3787_v31 }
 0xad9   :  { %v3813_v33 = vld [vmem:[#allocation2 + $0x8] sm:$0x3]  ;;  %v3789_v36 = vpop.permute.xlu0 %3788 }
 0xada   :  { %v3821_v15 = vpack.c.bf16 %v3813_v33, %v3813_v33  ;;  %3807 = vst.msk [vmem:[#allocation2 + $0xc] sm:$0x3] %vm3800_vm8, %v3789_v36 }
 0xadc   :  { %3830 = vst.msk [vmem:[%s5441_s1 + $0x4] sm:$0x1] %vm3825_vm9, %v3821_v15 }
 0xade   :  { %v3814_v39 = vld [vmem:[#allocation2 + $0xa] sm:$0x3]  ;;  %v3791_v40 = vpop.permute.xlu1 %3790 }
 0xadf   :  { %v3822_v43 = vpack.c.bf16 %v3814_v39, %v3814_v39  ;;  %3808 = vst.msk [vmem:[#allocation2 + $0xe] sm:$0x3] %vm3800_vm8, %v3791_v40 }
 0xae1   :  { %3831 = vst.msk [vmem:[%s5441_s1 + $0x5] sm:$0x1] %vm3825_vm9, %v3822_v43  ;;  %v3815_v37 = vld [vmem:[#allocation2 + $0xc] sm:$0x3] }
 0xae2   :  { %v3823_v46 = vpack.c.bf16 %v3815_v37, %v3815_v37 }
 0xae4   :  { %3832 = vst.msk [vmem:[%s5441_s1 + $0x6] sm:$0x1] %vm3825_vm9, %v3823_v46 }
 0xae6   :  { %v3816_v53 = vld [vmem:[#allocation2 + $0xe] sm:$0x3] }
 0xae7   :  { %v3824_v55 = vpack.c.bf16 %v3816_v53, %v3816_v53 }
 0xae9   :  { %3833 = vst.msk [vmem:[%s5441_s1 + $0x7] sm:$0x1] %vm3825_vm9, %v3824_v55 }

// kernel: transformer_encoder_forward.14
= control target key start
LH: loop header
LB: loop body
LE: loop exit
PB: predicated region body
PF: predicated region fallthrough
CT: control target
= control target key end

     0   :  { %v2596_v3 = vmov 0   ;;  %vm306_vm0 = vcmask 261120   ;;  %s3280_s1 = inlined_call_operand.vmem [shape: bf16[32,2048], index: 1, kind: input, shape index: {}]   ;;  %s3281_s0 = inlined_call_operand.vmem [shape: f32[16,32], index: 0, kind: input, shape index: {}]   ;;  %s3282_s3 = inlined_call_operand.vmem [shape: bf16[2048,32], index: 3, kind: input, shape index: {}]   ;;  %s3283_s2 = inlined_call_operand.vmem [shape: f32[1,2048], index: 2, kind: input, shape index: {}]   ;;  %s3284_s4 = inlined_call_operand.vmem [shape: f32[1,32], index: 4, kind: input, shape index: {}]   ;;  %s3285_s5 = inlined_call_operand.vmem [shape: f32[1,32], index: 5, kind: input, shape index: {}]   ;;  %s3286_s6 = inlined_call_operand.vmem [shape: f32[1,32], index: 6, kind: input, shape index: {}]   ;;  %s3287_s7 = inlined_call_operand.vmem [shape: f32[16,32], index: 7, kind: output, shape index: {}]  }
   0x1   :  { %v46_v0 = vld [vmem:[%s3280_s1 + $0x80] sm:$0xff]  ;;  %v47_v2 = vld [vmem:[%s3280_s1 + $0x88] sm:$0xff]  ;;  %342 = vmatprep.mubr.bf16.mxu0 %v2596_v3  ;;  %385 = vmatprep.mubr.bf16.mxu1 %v2596_v3  ;;  %v48_v16 = vld [vmem:[%s3280_s1 + $0x90] sm:$0xff] }
   0x2   :  { %v54_v1 = vld [vmem:[%s3280_s1 + $0xc0] sm:$0xff]  ;;  %v55_v5 = vld [vmem:[%s3280_s1 + $0xc8] sm:$0xff]  ;;  %v56_v17 = vld [vmem:[%s3280_s1 + $0xd0] sm:$0xff] }
   0x3   :  { %v2131_v4 = vcombine.high %v46_v0, %v54_v1  ;;  %v2130_v6 = vcombine.low %v46_v0, %v54_v1  ;;  %v30_v7 = vld [vmem:[%s3280_s1] sm:$0xff]  ;;  %v2133_v9 = vcombine.high %v47_v2, %v55_v5  ;;  %v2132_v10 = vcombine.low %v47_v2, %v55_v5  ;;  %v31_v12 = vld [vmem:[%s3280_s1 + $0x8] sm:$0xff]  ;;  %v49_v20 = vld [vmem:[%s3280_s1 + $0x98] sm:$0xff] }
   0x4   :  { %v38_v8 = vld [vmem:[%s3280_s1 + $0x40] sm:$0xff]  ;;  %v39_v13 = vld [vmem:[%s3280_s1 + $0x48] sm:$0xff]  ;;  %v57_v21 = vld [vmem:[%s3280_s1 + $0xd8] sm:$0xff]  ;;  %v2135_v23 = vcombine.high %v48_v16, %v56_v17  ;;  %v2134_v30 = vcombine.low %v48_v16, %v56_v17 }
   0x5   :  { %v2115_v11 = vcombine.high %v30_v7, %v38_v8  ;;  %322 = vmatprep.subr.bf16.mxu0 %v2131_v4  ;;  %v2117_v14 = vcombine.high %v31_v12, %v39_v13  ;;  %v27_v15 = vld [vmem:[%s3281_s0] sm:$0xff]  ;;  %365 = vmatprep.subr.bf16.mxu1 %v2133_v9  ;;  %v2114_v18 = vcombine.low %v30_v7, %v38_v8  ;;  %v28_v19 = vld [vmem:[%s3281_s0 + $0x8] sm:$0xff]  ;;  %v32_v25 = vld [vmem:[%s3280_s1 + $0x10] sm:$0xff] }
   0x6   :  { %323 = vmatpush1.bf16.msra.mxu0 %v2130_v6  ;;  %366 = vmatpush1.bf16.msra.mxu1 %v2132_v10  ;;  %v2116_v22 = vcombine.low %v31_v12, %v39_v13  ;;  %v2137_v24 = vcombine.high %v49_v20, %v57_v21  ;;  %v40_v26 = vld [vmem:[%s3280_s1 + $0x50] sm:$0xff]  ;;  %v2687_v27 = vpack.c.bf16 %v28_v19, %v27_v15  ;;  %v33_v28 = vld [vmem:[%s3280_s1 + $0x18] sm:$0xff]  ;;  %v50_v34 = vld [vmem:[%s3280_s1 + $0xa0] sm:$0xff] }
   0x7   :  { %324 = vmatprep.subr.bf16.mxu0 %v2115_v11  ;;  %367 = vmatprep.subr.bf16.mxu1 %v2117_v14  ;;  %v41_v29 = vld [vmem:[%s3280_s1 + $0x58] sm:$0xff]  ;;  %v2136_v31 = vcombine.low %v49_v20, %v57_v21  ;;  %v2119_v32 = vcombine.high %v32_v25, %v40_v26  ;;  %v58_v35 = vld [vmem:[%s3280_s1 + $0xe0] sm:$0xff]  ;;  %v51_v36 = vld [vmem:[%s3280_s1 + $0xa8] sm:$0xff]  ;;  %v2118_v38 = vcombine.low %v32_v25, %v40_v26 }
   0x8   :  { %v2121_v33 = vcombine.high %v33_v28, %v41_v29  ;;  %v59_v37 = vld [vmem:[%s3280_s1 + $0xe8] sm:$0xff]  ;;  %v34_v39 = vld [vmem:[%s3280_s1 + $0x20] sm:$0xff]  ;;  %v2120_v40 = vcombine.low %v33_v28, %v41_v29  ;;  %v2139_v41 = vcombine.high %v50_v34, %v58_v35  ;;  %v2138_v46 = vcombine.low %v50_v34, %v58_v35  ;;  %v52_v47 = vld [vmem:[%s3280_s1 + $0xb0] sm:$0xff] }
   0x9   :  { %v42_v42 = vld [vmem:[%s3280_s1 + $0x60] sm:$0xff]  ;;  %v2141_v43 = vcombine.high %v51_v36, %v59_v37  ;;  %v35_v44 = vld [vmem:[%s3280_s1 + $0x28] sm:$0xff]  ;;  %v2140_v48 = vcombine.low %v51_v36, %v59_v37  ;;  %v60_v50 = vld [vmem:[%s3280_s1 + $0xf0] sm:$0xff] }
   0xa   :  { %325 = vmatpush1.bf16.msra.mxu0 %v2114_v18  ;;  %368 = vmatpush1.bf16.msra.mxu1 %v2116_v22  ;;  %v43_v45 = vld [vmem:[%s3280_s1 + $0x68] sm:$0xff]  ;;  %v2123_v49 = vcombine.high %v34_v39, %v42_v42  ;;  %v53_v52 = vld [vmem:[%s3280_s1 + $0xb8] sm:$0xff]  ;;  %v2122_v54 = vcombine.low %v34_v39, %v42_v42  ;;  %v36_v55 = vld [vmem:[%s3280_s1 + $0x30] sm:$0xff]  ;;  %v2143_v57 = vcombine.high %v52_v47, %v60_v50 }
   0xb   :  { %408 = vmatprep.subr.bf16.mxu0 %v2135_v23  ;;  %451 = vmatprep.subr.bf16.mxu1 %v2137_v24  ;;  %v2125_v51 = vcombine.high %v35_v44, %v43_v45  ;;  %v61_v53 = vld [vmem:[%s3280_s1 + $0xf8] sm:$0xff]  ;;  %v2124_v56 = vcombine.low %v35_v44, %v43_v45  ;;  %v44_v58 = vld [vmem:[%s3280_s1 + $0x70] sm:$0xff]  ;;  %v2142_v62 = vcombine.low %v52_v47, %v60_v50  ;;  %v2470_v12 = vld [vmem:[%s3282_s3 + $0x68] sm:$0xff]  }
   0xc   :  { %v2145_v59 = vcombine.high %v53_v52, %v61_v53  ;;  %v37_v60 = vld [vmem:[%s3280_s1 + $0x38] sm:$0xff]  ;;  %v2144_v63 = vcombine.low %v53_v52, %v61_v53  ;;  %v2127_v0 = vcombine.high %v36_v55, %v44_v58  ;;  %v2126_v2 = vcombine.low %v36_v55, %v44_v58  ;;  %v2466_v9 = vld [vmem:[%s3282_s3 + $0x70] sm:$0xff]   ;;  %v2471_v13 = vld [vmem:[%s3282_s3 + $0xe8] sm:$0xff]  }
   0xd   :  { %2146 = vmatmul.mubr.msk.bf16.vlgmr.msra.gmra.mxu0 %vm306_vm0, %v2687_v27  ;;  %2147 = vmatmul.mubr.msk.bf16.vlgmr.msra.gmra.mxu1 %vm306_vm0, %v2687_v27  ;;  %v45_v61 = vld [vmem:[%s3280_s1 + $0x78] sm:$0xff]  ;;  %v2467_v10 = vld [vmem:[%s3282_s3 + $0xf0] sm:$0xff]   ;;  %v2472_v14 = vld [vmem:[%s3282_s3 + $0x28] sm:$0xff]  }
   0xe   :  { %409 = vmatpush1.bf16.msra.mxu0 %v2134_v30  ;;  %452 = vmatpush1.bf16.msra.mxu1 %v2136_v31  ;;  %v2129_v1 = vcombine.high %v37_v60, %v45_v61  ;;  %v2462_v4 = vld [vmem:[%s3282_s3 + $0x78] sm:$0xff]   ;;  %v2128_v5 = vcombine.low %v37_v60, %v45_v61  ;;  %v2469_v11 = vld [vmem:[%s3282_s3 + $0xb0] sm:$0xff]   ;;  %v2473_v15 = vld [vmem:[%s3282_s3 + $0xa8] sm:$0xff]  }
   0xf   :  { %410 = vmatprep.subr.bf16.mxu0 %v2119_v32  ;;  %453 = vmatprep.subr.bf16.mxu1 %v2121_v33  ;;  %v2463_v6 = vld [vmem:[%s3282_s3 + $0xf8] sm:$0xff]   ;;  %v2474_v16 = vld [vmem:[%s3282_s3 + $0x60] sm:$0xff]   ;;  %v2482_v24 = vld [vmem:[%s3282_s3 + $0x50] sm:$0xff]  }
  0x10   :  { %428 = vmatprep.mubr.bf16.mxu0 %v2596_v3  ;;  %471 = vmatprep.mubr.bf16.mxu1 %v2596_v3  ;;  %v2464_v7 = vld [vmem:[%s3282_s3 + $0x38] sm:$0xff]   ;;  %v2475_v17 = vld [vmem:[%s3282_s3 + $0xe0] sm:$0xff]   ;;  %v2483_v25 = vld [vmem:[%s3282_s3 + $0xd0] sm:$0xff]  }
  0x11   :  { %v2465_v8 = vld [vmem:[%s3282_s3 + $0xb8] sm:$0xff]   ;;  %v2476_v18 = vld [vmem:[%s3282_s3 + $0x20] sm:$0xff]   ;;  %v2484_v26 = vld [vmem:[%s3282_s3 + $0x10] sm:$0xff]  }
  0x12   :  { %411 = vmatpush1.bf16.msra.mxu0 %v2118_v38  ;;  %454 = vmatpush1.bf16.msra.mxu1 %v2120_v40  ;;  %v2477_v19 = vld [vmem:[%s3282_s3 + $0xa0] sm:$0xff]   ;;  %v2478_v20 = vld [vmem:[%s3282_s3 + $0x58] sm:$0xff]   ;;  %v2486_v28 = vld [vmem:[%s3282_s3 + $0x48] sm:$0xff]   ;;  %v66_v38 = vlaneseq }
  0x13   :  { %494 = vmatprep.subr.bf16.mxu0 %v2139_v41  ;;  %537 = vmatprep.subr.bf16.mxu1 %v2141_v43  ;;  %v2479_v21 = vld [vmem:[%s3282_s3 + $0xd8] sm:$0xff]   ;;  %v2487_v29 = vld [vmem:[%s3282_s3 + $0xc8] sm:$0xff]   ;;  %v2490_v32 = vld [vmem:[%s3282_s3 + $0x40] sm:$0xff]  }
  0x14   :  { %v2480_v22 = vld [vmem:[%s3282_s3 + $0x18] sm:$0xff]   ;;  %v2488_v30 = vld [vmem:[%s3282_s3 + $0x8] sm:$0xff]   ;;  %v2491_v33 = vld [vmem:[%s3282_s3 + $0xc0] sm:$0xff]   ;;  %v2867_v39 = vshrl.u32 %v66_v38, 7 }
  0x15   :  { %2148 = vmatmul.mubr.msk.bf16.vlgmr.msra.gmra.mxu0 %vm306_vm0, %v2687_v27  ;;  %2149 = vmatmul.mubr.msk.bf16.vlgmr.msra.gmra.mxu1 %vm306_vm0, %v2687_v27  ;;  %v2481_v23 = vld [vmem:[%s3282_s3 + $0x98] sm:$0xff]   ;;  %v2489_v31 = vld [vmem:[%s3282_s3 + $0x88] sm:$0xff]   ;;  %v2492_v34 = vld [vmem:[%s3282_s3] sm:$0xff]  }
  0x16   :  { %495 = vmatpush1.bf16.msra.mxu0 %v2138_v46  ;;  %538 = vmatpush1.bf16.msra.mxu1 %v2140_v48  ;;  %v2493_v35 = vld [vmem:[%s3282_s3 + $0x80] sm:$0xff]   ;;  %v2494_v36 = vld [vmem:[%s3282_s3 + $0x178] sm:$0xff]   ;;  %v72_v40 = vsub.s32 1, %v2867_v39  ;;  %v68_v41 = vsub.s32 0, %v2867_v39  ;;  %v80_v42 = vsub.s32 3, %v2867_v39  ;;  %v76_v44 = vsub.s32 2, %v2867_v39 }
  0x17   :  { %496 = vmatprep.subr.bf16.mxu0 %v2123_v49  ;;  %539 = vmatprep.subr.bf16.mxu1 %v2125_v51  ;;  %v2495_v37 = vld [vmem:[%s3282_s3 + $0x1f8] sm:$0xff]   ;;  %v2875_v43 = vld [vmem:[%s3283_s2] sm:$0xff]  ;;  %v88_v53 = vsub.s32 5, %v2867_v39  ;;  %v96_v55 = vsub.s32 7, %v2867_v39  ;;  %v2503_v38 = vld [vmem:[%s3282_s3 + $0x1e8] sm:$0xff]  }
  0x18   :  { %514 = vmatprep.mubr.bf16.mxu0 %v2596_v3  ;;  %557 = vmatprep.mubr.bf16.mxu1 %v2596_v3  ;;  %v73_v47 = vrot.slane %v2875_v43, %v72_v40  ;;  %v69_v48 = vrot.slane %v2875_v43, %v68_v41  ;;  %v81_v50 = vrot.slane %v2875_v43, %v80_v42 }
  0x19   :  { %v77_v51 = vrot.slane %v2875_v43, %v76_v44 }
  0x1a   :  { %497 = vmatpush1.bf16.msra.mxu0 %v2122_v54  ;;  %540 = vmatpush1.bf16.msra.mxu1 %v2124_v56 }
  0x1b   :  { %580 = vmatprep.subr.bf16.mxu0 %v2143_v57  ;;  %623 = vmatprep.subr.bf16.mxu1 %v2145_v59 }
  0x1d   :  { %2150 = vmatmul.mubr.msk.bf16.vlgmr.msra.gmra.mxu0 %vm306_vm0, %v2687_v27  ;;  %2151 = vmatmul.mubr.msk.bf16.vlgmr.msra.gmra.mxu1 %vm306_vm0, %v2687_v27 }
  0x1e   :  { %581 = vmatpush1.bf16.msra.mxu0 %v2142_v62  ;;  %624 = vmatpush1.bf16.msra.mxu1 %v2144_v63 }
  0x1f   :  { %582 = vmatprep.subr.bf16.mxu0 %v2127_v0  ;;  %625 = vmatprep.subr.bf16.mxu1 %v2129_v1 }
  0x20   :  { %600 = vmatprep.mubr.bf16.mxu0 %v2596_v3  ;;  %643 = vmatprep.mubr.bf16.mxu1 %v2596_v3  ;;  %v2468_v3 = vld [vmem:[%s3282_s3 + $0x30] sm:$0xff]  }
  0x22   :  { %583 = vmatpush1.bf16.msra.mxu0 %v2126_v2  ;;  %626 = vmatpush1.bf16.msra.mxu1 %v2128_v5  ;;  %v89_v2 = vrot.slane %v2875_v43, %v88_v53 }
  0x23   :  { %2285 = vmatprep.subr.bf16.mxu0 %v2462_v4  ;;  %2307 = vmatprep.subr.bf16.mxu1 %v2463_v6 }
  0x25   :  { %2152 = vmatmul.mubr.msk.bf16.vlgmr.msra.gmra.mxu0 %vm306_vm0, %v2687_v27  ;;  %2153 = vmatmul.mubr.msk.bf16.vlgmr.msra.gmra.mxu1 %vm306_vm0, %v2687_v27  ;;  %v2485_v27 = vld [vmem:[%s3282_s3 + $0x90] sm:$0xff]  }
  0x26   :  { %2286 = vmatpush3.bf16.msra.mxu0 %v2464_v7  ;;  %2308 = vmatpush3.bf16.msra.mxu1 %v2465_v8  ;;  %v97_v7 = vrot.slane %v2875_v43, %v96_v55 }
  0x27   :  { %2287 = vmatprep.subr.bf16.mxu0 %v2466_v9  ;;  %2309 = vmatprep.subr.bf16.mxu1 %v2467_v10 }
  0x2a   :  { %2288 = vmatpush3.bf16.msra.mxu0 %v2468_v3  ;;  %2310 = vmatpush3.bf16.msra.mxu1 %v2469_v11 }
  0x2b   :  { %2289 = vmatprep.subr.bf16.mxu0 %v2470_v12  ;;  %2311 = vmatprep.subr.bf16.mxu1 %v2471_v13 }
  0x2e   :  { %2290 = vmatpush3.bf16.msra.mxu0 %v2472_v14  ;;  %2312 = vmatpush3.bf16.msra.mxu1 %v2473_v15 }
  0x2f   :  { %2291 = vmatprep.subr.bf16.mxu0 %v2474_v16  ;;  %2313 = vmatprep.subr.bf16.mxu1 %v2475_v17  ;;  %v2496_v17 = vld [vmem:[%s3282_s3 + $0x138] sm:$0xff]  }
  0x32   :  { %2292 = vmatpush3.bf16.msra.mxu0 %v2476_v18  ;;  %2314 = vmatpush3.bf16.msra.mxu1 %v2477_v19 }
  0x33   :  { %2293 = vmatprep.subr.bf16.mxu0 %v2478_v20  ;;  %2315 = vmatprep.subr.bf16.mxu1 %v2479_v21 }
  0x36   :  { %2294 = vmatpush3.bf16.msra.mxu0 %v2480_v22  ;;  %2316 = vmatpush3.bf16.msra.mxu1 %v2481_v23  ;;  %v2497_v22 = vld [vmem:[%s3282_s3 + $0x1b8] sm:$0xff]   ;;  %v2498_v23 = vld [vmem:[%s3282_s3 + $0x170] sm:$0xff]  }
  0x37   :  { %2295 = vmatprep.subr.bf16.mxu0 %v2482_v24  ;;  %2317 = vmatprep.subr.bf16.mxu1 %v2483_v25 }
  0x3a   :  { %2296 = vmatpush3.bf16.msra.mxu0 %v2484_v26  ;;  %2318 = vmatpush3.bf16.msra.mxu1 %v2485_v27  ;;  %v2499_v27 = vld [vmem:[%s3282_s3 + $0x1f0] sm:$0xff]  }
  0x3b   :  { %2297 = vmatprep.subr.bf16.mxu0 %v2486_v28  ;;  %2319 = vmatprep.subr.bf16.mxu1 %v2487_v29 }
  0x3e   :  { %2298 = vmatpush3.bf16.msra.mxu0 %v2488_v30  ;;  %2320 = vmatpush3.bf16.msra.mxu1 %v2489_v31  ;;  %v2500_v30 = vld [vmem:[%s3282_s3 + $0x130] sm:$0xff]  }
  0x3f   :  { %2299 = vmatprep.subr.bf16.mxu0 %v2490_v32  ;;  %2321 = vmatprep.subr.bf16.mxu1 %v2491_v33 }
  0x42   :  { %2300 = vmatpush3.bf16.msra.mxu0 %v2492_v34  ;;  %2322 = vmatpush3.bf16.msra.mxu1 %v2493_v35  ;;  %v2501_v34 = vld [vmem:[%s3282_s3 + $0x1b0] sm:$0xff]   ;;  %v2502_v35 = vld [vmem:[%s3282_s3 + $0x168] sm:$0xff]  }
  0x43   :  { %2329 = vmatprep.subr.bf16.mxu0 %v2494_v36  ;;  %2351 = vmatprep.subr.bf16.mxu1 %v2495_v37 }
  0xcd   :  { %v344_v45 = vpop.f32.mrf.mxu0  ;;  %v387_v46 = vpop.f32.mrf.mxu1 }
  0xce   :  { %v345_v59 = vadd.f32 %v344_v45, %v69_v48  ;;  %v388_v63 = vadd.f32 %v387_v46, %v77_v51 }
  0xcf   :  { %v346_v49 = vpop.f32.mrf.mxu0  ;;  %v389_v52 = vpop.f32.mrf.mxu1 }
  0xd0   :  { %v347_v56 = vadd.f32 %v346_v49, %v73_v47  ;;  %v390_v60 = vadd.f32 %v389_v52, %v81_v50  ;;  %v654_v11 = vmax.f32 %v345_v59, 0.0  ;;  %v656_v15 = vmax.f32 %v388_v63, 0.0  ;;  %v2505_v49 = vld [vmem:[%s3282_s3 + $0x1a8] sm:$0xff]   ;;  %v2507_v52 = vld [vmem:[%s3282_s3 + $0x1e0] sm:$0xff]   ;;  %v2510_v59 = vld [vmem:[%s3282_s3 + $0x158] sm:$0xff]  }
  0xd1   :  { %v348_v54 = vpop.f32.mrf.mxu0  ;;  %v391_v58 = vpop.f32.mrf.mxu1 }
  0xd2   :  { %v349_v57 = vadd.f32 %v348_v54, %v69_v48  ;;  %v392_v61 = vadd.f32 %v391_v58, %v77_v51  ;;  %v655_v8 = vmax.f32 %v347_v56, 0.0  ;;  %v657_v12 = vmax.f32 %v390_v60, 0.0  ;;  %v2508_v56 = vld [vmem:[%s3282_s3 + $0x120] sm:$0xff]   ;;  %v2511_v60 = vld [vmem:[%s3282_s3 + $0x1d8] sm:$0xff]  }
  0xd3   :  { %v350_v62 = vpop.f32.mrf.mxu0  ;;  %v393_v1 = vpop.f32.mrf.mxu1  ;;  %v2509_v58 = vld [vmem:[%s3282_s3 + $0x1a0] sm:$0xff]  }
  0xd4   :  { %v351_v0 = vadd.f32 %v350_v62, %v73_v47  ;;  %v670_v4 = vmax.f32 %v349_v57, 0.0  ;;  %v394_v5 = vadd.f32 %v393_v1, %v81_v50  ;;  %v672_v9 = vmax.f32 %v392_v61, 0.0  ;;  %v2504_v47 = vld [vmem:[%s3282_s3 + $0x128] sm:$0xff]   ;;  %v2506_v50 = vld [vmem:[%s3282_s3 + $0x160] sm:$0xff]   ;;  %v2512_v62 = vld [vmem:[%s3282_s3 + $0x118] sm:$0xff]  }
  0xd5   :  { %v2895_v6 = vpop.f32.mrf.mxu0  ;;  %v2900_v3 = vpop.f32.mrf.mxu1  ;;  %v2513_v1 = vld [vmem:[%s3282_s3 + $0x198] sm:$0xff]  }
  0xd6   :  { %v671_v10 = vmax.f32 %v351_v0, 0.0  ;;  %v673_v13 = vmax.f32 %v394_v5, 0.0  ;;  %v686_v20 = vpack.c.bf16 %v670_v4, %v654_v11  ;;  %v688_v26 = vpack.c.bf16 %v672_v9, %v656_v15  ;;  %v2515_v5 = vld [vmem:[%s3282_s3 + $0x1d0] sm:$0xff]   ;;  %v2519_v15 = vld [vmem:[%s3282_s3 + $0x1c8] sm:$0xff]  }
  0xd7   :  { %v432_v14 = vpop.f32.mrf.mxu0  ;;  %v475_v19 = vpop.f32.mrf.mxu1  ;;  %v84_v0 = vsub.s32 4, %v2867_v39  ;;  %v92_v4 = vsub.s32 6, %v2867_v39  ;;  %v2516_v9 = vld [vmem:[%s3282_s3 + $0x110] sm:$0xff]   ;;  %v2585_v39 = vld [vmem:[%s3282_s3 + $0x388] sm:$0xff]  }
  0xd8   :  { %v687_v16 = vpack.c.bf16 %v671_v10, %v655_v8  ;;  %v433_v18 = vadd.f32 %v432_v14, %v89_v2  ;;  %v689_v21 = vpack.c.bf16 %v673_v13, %v657_v12  ;;  %v476_v25 = vadd.f32 %v475_v19, %v97_v7  ;;  %v2517_v12 = vld [vmem:[%s3282_s3 + $0x190] sm:$0xff]   ;;  %v2518_v13 = vld [vmem:[%s3282_s3 + $0x148] sm:$0xff]  }
  0xd9   :  { %v2911_v24 = vpop.f32.mrf.mxu0  ;;  %v2916_v28 = vpop.f32.mrf.mxu1  ;;  %v85_v11 = vrot.slane %v2875_v43, %v84_v0  ;;  %v93_v14 = vrot.slane %v2875_v43, %v92_v4  ;;  %v2520_v19 = vld [vmem:[%s3282_s3 + $0x108] sm:$0xff]  }
  0xda   :  { %1765 = vmatprep.mubr.bf16.mxu0 %v687_v16  ;;  %1806 = vmatprep.mubr.bf16.mxu1 %v689_v21  ;;  %v659_v31 = vmax.f32 %v433_v18, 0.0  ;;  %v661_v36 = vmax.f32 %v476_v25, 0.0 }
  0xdb   :  { %1766 = vmatmul.mubr.bf16.vlgmr.msra.gmra.mxu0 %v686_v20  ;;  %v436_v29 = vpop.f32.mrf.mxu0  ;;  %1807 = vmatmul.mubr.bf16.vlgmr.msra.gmra.mxu1 %v688_v26  ;;  %v479_v33 = vpop.f32.mrf.mxu1  ;;  %v431_v20 = vadd.f32 %v2895_v6, %v85_v11  ;;  %v435_v21 = vadd.f32 %v2911_v24, %v85_v11  ;;  %v2523_v6 = vld [vmem:[%s3282_s3 + $0x1c0] sm:$0xff]  }
  0xdc   :  { %2330 = vmatpush3.bf16.msra.mxu0 %v2496_v17  ;;  %v437_v32 = vadd.f32 %v436_v29, %v89_v2  ;;  %2352 = vmatpush3.bf16.msra.mxu1 %v2497_v22  ;;  %v480_v37 = vadd.f32 %v479_v33, %v97_v7  ;;  %v2514_v2 = vld [vmem:[%s3282_s3 + $0x150] sm:$0xff]   ;;  %v2975_v7 = vld [vmem:[%s3283_s2 + $0x8] sm:$0xff]  ;;  %v474_v22 = vadd.f32 %v2900_v3, %v93_v14  ;;  %v2524_v29 = vld [vmem:[%s3282_s3 + $0x100] sm:$0xff]  }
  0xdd   :  { %2331 = vmatprep.subr.bf16.mxu0 %v2498_v23  ;;  %2353 = vmatprep.subr.bf16.mxu1 %v2499_v27  ;;  %v2942_v54 = vpop.f32.mrf.mxu0  ;;  %v2947_v57 = vpop.f32.mrf.mxu1  ;;  %v105_v16 = vrot.slane %v2975_v7, %v72_v40  ;;  %v113_v17 = vrot.slane %v2975_v7, %v80_v42  ;;  %v2521_v40 = vld [vmem:[%s3282_s3 + $0x188] sm:$0xff]   ;;  %v2522_v42 = vld [vmem:[%s3282_s3 + $0x140] sm:$0xff]   ;;  %v478_v23 = vadd.f32 %v2916_v28, %v93_v14  ;;  %v2526_v28 = vld [vmem:[%s3282_s3 + $0x278] sm:$0xff]  }
  0xde   :  { %v675_v45 = vmax.f32 %v437_v32, 0.0  ;;  %v677_v46 = vmax.f32 %v480_v37, 0.0  ;;  %v2525_v3 = vld [vmem:[%s3282_s3 + $0x180] sm:$0xff]   ;;  %v660_v32 = vmax.f32 %v474_v22, 0.0  ;;  %v2550_v22 = vld [vmem:[%s3282_s3 + $0x248] sm:$0xff]  }
  0xdf   :  { %v518_v61 = vpop.f32.mrf.mxu0  ;;  %v561_v63 = vpop.f32.mrf.mxu1  ;;  %v676_v33 = vmax.f32 %v478_v23, 0.0  ;;  %v2541_v11 = vld [vmem:[%s3282_s3 + $0x2a0] sm:$0xff]   ;;  %v109_v23 = vrot.slane %v2975_v7, %v76_v44 }
  0xe0   :  { %2332 = vmatpush3.bf16.msra.mxu0 %v2500_v30  ;;  %v691_v48 = vpack.c.bf16 %v675_v45, %v659_v31  ;;  %2354 = vmatpush3.bf16.msra.mxu1 %v2501_v34  ;;  %v693_v51 = vpack.c.bf16 %v677_v46, %v661_v36  ;;  %v519_v24 = vadd.f32 %v518_v61, %v105_v16  ;;  %v658_v30 = vmax.f32 %v431_v20, 0.0  ;;  %v2527_v34 = vld [vmem:[%s3282_s3 + $0x2f8] sm:$0xff]   ;;  %v2536_v61 = vld [vmem:[%s3282_s3 + $0x228] sm:$0xff]   ;;  %v2548_v20 = vld [vmem:[%s3282_s3 + $0x210] sm:$0xff]  }
  0xe1   :  { %2333 = vmatprep.subr.bf16.mxu0 %v2502_v35  ;;  %2355 = vmatprep.subr.bf16.mxu1 %v2503_v38  ;;  %v2977_v8 = vpop.f32.mrf.mxu0  ;;  %v2982_v10 = vpop.f32.mrf.mxu1  ;;  %v562_v26 = vadd.f32 %v561_v63, %v113_v17  ;;  %v674_v31 = vmax.f32 %v435_v21, 0.0  ;;  %v2528_v45 = vld [vmem:[%s3282_s3 + $0x238] sm:$0xff]   ;;  %v2538_v63 = vld [vmem:[%s3282_s3 + $0x260] sm:$0xff]  }
  0xe2   :  { %1847 = vmatprep.mubr.bf16.mxu0 %v691_v48  ;;  %1888 = vmatprep.mubr.bf16.mxu1 %v693_v51  ;;  %v663_v35 = vmax.f32 %v519_v24, 0.0  ;;  %v2530_v48 = vld [vmem:[%s3282_s3 + $0x270] sm:$0xff]   ;;  %v129_v24 = vrot.slane %v2975_v7, %v96_v55  ;;  %v2554_v55 = vld [vmem:[%s3282_s3 + $0x240] sm:$0xff]  }
  0xe3   :  { %v522_v18 = vpop.f32.mrf.mxu0  ;;  %v565_v43 = vpop.f32.mrf.mxu1  ;;  %v665_v37 = vmax.f32 %v562_v26, 0.0  ;;  %v690_v46 = vpack.c.bf16 %v674_v31, %v658_v30  ;;  %v2552_v26 = vld [vmem:[%s3282_s3 + $0x208] sm:$0xff]   ;;  %v560_v30 = vadd.f32 %v2947_v57, %v109_v23  ;;  %v564_v31 = vadd.f32 %v2982_v10, %v109_v23  ;;  %v2557_v57 = vld [vmem:[%s3282_s3 + $0x280] sm:$0xff]   ;;  %v2558_v10 = vld [vmem:[%s3282_s3 + $0x378] sm:$0xff]  }
  0xe4   :  { %2334 = vmatpush3.bf16.msra.mxu0 %v2504_v47  ;;  %2356 = vmatpush3.bf16.msra.mxu1 %v2505_v49  ;;  %v523_v25 = vadd.f32 %v522_v18, %v105_v16  ;;  %v566_v27 = vadd.f32 %v565_v43, %v113_v17  ;;  %v2529_v47 = vld [vmem:[%s3282_s3 + $0x2b8] sm:$0xff]   ;;  %v692_v49 = vpack.c.bf16 %v676_v33, %v660_v32  ;;  %v2546_v18 = vld [vmem:[%s3282_s3 + $0x250] sm:$0xff]   ;;  %v2556_v33 = vld [vmem:[%s3282_s3 + $0x200] sm:$0xff]  }
  0xe5   :  { %2335 = vmatprep.subr.bf16.mxu0 %v2506_v50  ;;  %2357 = vmatprep.subr.bf16.mxu1 %v2507_v52  ;;  %v2531_v50 = vld [vmem:[%s3282_s3 + $0x2f0] sm:$0xff]   ;;  %v2545_v17 = vld [vmem:[%s3282_s3 + $0x298] sm:$0xff]  }
  0xe6   :  { %v679_v36 = vmax.f32 %v523_v25, 0.0  ;;  %v681_v38 = vmax.f32 %v566_v27, 0.0  ;;  %v2581_v23 = vld [vmem:[%s3282_s3 + $0x390] sm:$0xff]  }
  0xe8   :  { %2336 = vmatpush3.bf16.msra.mxu0 %v2508_v56  ;;  %2358 = vmatpush3.bf16.msra.mxu1 %v2509_v58  ;;  %v695_v51 = vpack.c.bf16 %v679_v36, %v663_v35  ;;  %v697_v52 = vpack.c.bf16 %v681_v38, %v665_v37  ;;  %v2532_v56 = vld [vmem:[%s3282_s3 + $0x230] sm:$0xff]   ;;  %v664_v36 = vmax.f32 %v560_v30, 0.0  ;;  %v680_v37 = vmax.f32 %v564_v31, 0.0  ;;  %v2559_v38 = vld [vmem:[%s3282_s3 + $0x3f8] sm:$0xff]  }
  0xe9   :  { %2337 = vmatprep.subr.bf16.mxu0 %v2510_v59  ;;  %2359 = vmatprep.subr.bf16.mxu1 %v2511_v60  ;;  %v2533_v58 = vld [vmem:[%s3282_s3 + $0x2b0] sm:$0xff]   ;;  %v2534_v59 = vld [vmem:[%s3282_s3 + $0x268] sm:$0xff]  }
  0xea   :  { %v2535_v60 = vld [vmem:[%s3282_s3 + $0x2e8] sm:$0xff]  }
  0xec   :  { %2338 = vmatpush3.bf16.msra.mxu0 %v2512_v62  ;;  %2360 = vmatpush3.bf16.msra.mxu1 %v2513_v1  ;;  %v2537_v62 = vld [vmem:[%s3282_s3 + $0x2a8] sm:$0xff]   ;;  %v2539_v1 = vld [vmem:[%s3282_s3 + $0x2e0] sm:$0xff]  }
  0xed   :  { %2339 = vmatprep.subr.bf16.mxu0 %v2514_v2  ;;  %2361 = vmatprep.subr.bf16.mxu1 %v2515_v5  ;;  %v3069_v2 = vpop.f32.mrf.mxu0  ;;  %v2540_v5 = vld [vmem:[%s3282_s3 + $0x220] sm:$0xff]  }
  0xef   :  { %v604_v14 = vpop.f32.mrf.mxu0 }
  0xf0   :  { %2340 = vmatpush3.bf16.msra.mxu0 %v2516_v9  ;;  %2362 = vmatpush3.bf16.msra.mxu1 %v2517_v12  ;;  %v3074_v9 = vpop.f32.mrf.mxu1  ;;  %v2542_v12 = vld [vmem:[%s3282_s3 + $0x258] sm:$0xff]  }
  0xf1   :  { %2341 = vmatprep.subr.bf16.mxu0 %v2518_v13  ;;  %2363 = vmatprep.subr.bf16.mxu1 %v2519_v15  ;;  %v2543_v13 = vld [vmem:[%s3282_s3 + $0x2d8] sm:$0xff]   ;;  %v3097_v43 = vpop.f32.mrf.mxu0 }
  0xf2   :  { %v2544_v15 = vld [vmem:[%s3282_s3 + $0x218] sm:$0xff]   ;;  %v647_v16 = vpop.f32.mrf.mxu1 }
  0xf3   :  { %v608_v25 = vpop.f32.mrf.mxu0 }
  0xf4   :  { %2342 = vmatpush3.bf16.msra.mxu0 %v2520_v19  ;;  %2364 = vmatpush3.bf16.msra.mxu1 %v2521_v40  ;;  %v2547_v19 = vld [vmem:[%s3282_s3 + $0x2d0] sm:$0xff]   ;;  %v3102_v21 = vpop.f32.mrf.mxu1  ;;  %v101_v40 = vrot.slane %v2975_v7, %v68_v41  ;;  %v121_v41 = vrot.slane %v2975_v7, %v88_v53  ;;  %v2553_v53 = vld [vmem:[%s3282_s3 + $0x288] sm:$0xff]  }
  0xf5   :  { %2343 = vmatprep.subr.bf16.mxu0 %v2522_v42  ;;  %2365 = vmatprep.subr.bf16.mxu1 %v2523_v6  ;;  %v2549_v42 = vld [vmem:[%s3282_s3 + $0x290] sm:$0xff]   ;;  %v2551_v6 = vld [vmem:[%s3282_s3 + $0x2c8] sm:$0xff]  }
  0xf6   :  { %v651_v44 = vpop.f32.mrf.mxu1  ;;  %v517_v27 = vadd.f32 %v2942_v54, %v101_v40  ;;  %v2555_v54 = vld [vmem:[%s3282_s3 + $0x2c0] sm:$0xff]  }
  0xf7   :  { %v652_v32 = vadd.f32 %v651_v44, %v129_v24 }
  0xf8   :  { %2344 = vmatpush3.bf16.msra.mxu0 %v2524_v29  ;;  %2366 = vmatpush3.bf16.msra.mxu1 %v2525_v3  ;;  %v521_v29 = vadd.f32 %v2977_v8, %v101_v40  ;;  %v605_v8 = vadd.f32 %v604_v14, %v121_v41  ;;  %v609_v3 = vadd.f32 %v608_v25, %v121_v41  ;;  %v2572_v14 = vld [vmem:[%s3282_s3 + $0x320] sm:$0xff]   ;;  %v2579_v40 = vld [vmem:[%s3282_s3 + $0x3d0] sm:$0xff]  }
  0xf9   :  { %2373 = vmatprep.subr.bf16.mxu0 %v2526_v28  ;;  %2395 = vmatprep.subr.bf16.mxu1 %v2527_v34  ;;  %v648_v28 = vadd.f32 %v647_v16, %v129_v24  ;;  %v662_v34 = vmax.f32 %v517_v27, 0.0  ;;  %v2574_v16 = vld [vmem:[%s3282_s3 + $0x358] sm:$0xff]   ;;  %v125_v41 = vrot.slane %v2975_v7, %v92_v4  ;;  %v2583_v24 = vld [vmem:[%s3282_s3 + $0x3c8] sm:$0xff]   ;;  %v2586_v4 = vld [vmem:[%s3282_s3 + $0x340] sm:$0xff]  }
  0xfa   :  { %v678_v35 = vmax.f32 %v521_v29, 0.0 }
  0xfb   :  { %1848 = vmatmul.mubr.bf16.vlgmr.msra.gmra.mxu0 %v690_v46  ;;  %1889 = vmatmul.mubr.bf16.vlgmr.msra.gmra.mxu1 %v692_v49  ;;  %v683_v46 = vmax.f32 %v609_v3, 0.0  ;;  %v2560_v49 = vld [vmem:[%s3282_s3 + $0x338] sm:$0xff]   ;;  %v650_v44 = vadd.f32 %v3102_v21, %v125_v41 }
  0xfc   :  { %2374 = vmatpush3.bf16.msra.mxu0 %v2528_v45  ;;  %2396 = vmatpush3.bf16.msra.mxu1 %v2529_v47  ;;  %v667_v45 = vmax.f32 %v605_v8, 0.0  ;;  %v669_v47 = vmax.f32 %v648_v28, 0.0 }
  0xfd   :  { %2375 = vmatprep.subr.bf16.mxu0 %v2530_v48  ;;  %2397 = vmatprep.subr.bf16.mxu1 %v2531_v50  ;;  %v685_v48 = vmax.f32 %v652_v32, 0.0  ;;  %v694_v50 = vpack.c.bf16 %v678_v35, %v662_v34  ;;  %v684_v21 = vmax.f32 %v650_v44, 0.0 }
  0xfe   :  { %1929 = vmatprep.mubr.bf16.mxu0 %v695_v51  ;;  %1970 = vmatprep.mubr.bf16.mxu1 %v697_v52  ;;  %v2561_v51 = vld [vmem:[%s3282_s3 + $0x3b8] sm:$0xff]   ;;  %v2562_v52 = vld [vmem:[%s3282_s3 + $0x370] sm:$0xff]  }
 0x100   :  { %2376 = vmatpush3.bf16.msra.mxu0 %v2532_v56  ;;  %2398 = vmatpush3.bf16.msra.mxu1 %v2533_v58  ;;  %v696_v56 = vpack.c.bf16 %v680_v37, %v664_v36  ;;  %v2563_v58 = vld [vmem:[%s3282_s3 + $0x3f0] sm:$0xff]  }
 0x101   :  { %2377 = vmatprep.subr.bf16.mxu0 %v2534_v59  ;;  %2399 = vmatprep.subr.bf16.mxu1 %v2535_v60  ;;  %v699_v59 = vpack.c.bf16 %v683_v46, %v667_v45  ;;  %v701_v60 = vpack.c.bf16 %v685_v48, %v669_v47  ;;  %v2154_v47 = vld [vmem:[%s3284_s4] ss:$0 sm:$0xff] }
 0x104   :  { %2378 = vmatpush3.bf16.msra.mxu0 %v2536_v61  ;;  %2400 = vmatpush3.bf16.msra.mxu1 %v2537_v62  ;;  %v2564_v61 = vld [vmem:[%s3282_s3 + $0x330] sm:$0xff]  }
 0x105   :  { %2379 = vmatprep.subr.bf16.mxu0 %v2538_v63  ;;  %2401 = vmatprep.subr.bf16.mxu1 %v2539_v1  ;;  %v2565_v62 = vld [vmem:[%s3282_s3 + $0x3b0] sm:$0xff]   ;;  %v2566_v63 = vld [vmem:[%s3282_s3 + $0x368] sm:$0xff]  }
 0x106   :  { %v2567_v1 = vld [vmem:[%s3282_s3 + $0x3e8] sm:$0xff]  }
 0x108   :  { %2380 = vmatpush3.bf16.msra.mxu0 %v2540_v5  ;;  %2402 = vmatpush3.bf16.msra.mxu1 %v2541_v11  ;;  %v2568_v5 = vld [vmem:[%s3282_s3 + $0x328] sm:$0xff]  }
 0x109   :  { %2381 = vmatprep.subr.bf16.mxu0 %v2542_v12  ;;  %2403 = vmatprep.subr.bf16.mxu1 %v2543_v13  ;;  %v2569_v11 = vld [vmem:[%s3282_s3 + $0x3a8] sm:$0xff]   ;;  %v2570_v12 = vld [vmem:[%s3282_s3 + $0x360] sm:$0xff]  }
 0x10a   :  { %v2571_v13 = vld [vmem:[%s3282_s3 + $0x3e0] sm:$0xff]  }
 0x10c   :  { %2382 = vmatpush3.bf16.msra.mxu0 %v2544_v15  ;;  %2404 = vmatpush3.bf16.msra.mxu1 %v2545_v17  ;;  %v2573_v15 = vld [vmem:[%s3282_s3 + $0x3a0] sm:$0xff]   ;;  %v2575_v17 = vld [vmem:[%s3282_s3 + $0x3d8] sm:$0xff]  }
 0x10d   :  { %2383 = vmatprep.subr.bf16.mxu0 %v2546_v18  ;;  %2405 = vmatprep.subr.bf16.mxu1 %v2547_v19  ;;  %v2576_v18 = vld [vmem:[%s3282_s3 + $0x318] sm:$0xff]  }
 0x10e   :  { %v2577_v19 = vld [vmem:[%s3282_s3 + $0x398] sm:$0xff]  }
 0x110   :  { %2384 = vmatpush3.bf16.msra.mxu0 %v2548_v20  ;;  %2406 = vmatpush3.bf16.msra.mxu1 %v2549_v42  ;;  %v2578_v20 = vld [vmem:[%s3282_s3 + $0x350] sm:$0xff]  }
 0x111   :  { %2385 = vmatprep.subr.bf16.mxu0 %v2550_v22  ;;  %2407 = vmatprep.subr.bf16.mxu1 %v2551_v6  ;;  %v2580_v42 = vld [vmem:[%s3282_s3 + $0x310] sm:$0xff]   ;;  %v117_v22 = vrot.slane %v2975_v7, %v84_v0  ;;  %v2582_v6 = vld [vmem:[%s3282_s3 + $0x348] sm:$0xff]   ;;  %v646_v7 = vadd.f32 %v3074_v9, %v125_v41  ;;  %v2589_v9 = vld [vmem:[%s3282_s3 + $0x380] sm:$0xff]  }
 0x112   :  { %v2584_v0 = vld [vmem:[%s3282_s3 + $0x308] sm:$0xff]  }
 0x113   :  { %v603_v25 = vadd.f32 %v3069_v2, %v117_v22  ;;  %v2587_v2 = vld [vmem:[%s3282_s3 + $0x3c0] sm:$0xff]  }
 0x114   :  { %2386 = vmatpush3.bf16.msra.mxu0 %v2552_v26  ;;  %2408 = vmatpush3.bf16.msra.mxu1 %v2553_v53  ;;  %v607_v26 = vadd.f32 %v3097_v43, %v117_v22  ;;  %v2588_v43 = vld [vmem:[%s3282_s3 + $0x300] sm:$0xff]   ;;  %v668_v53 = vmax.f32 %v646_v7, 0.0 }
 0x115   :  { %2387 = vmatprep.subr.bf16.mxu0 %v2554_v55  ;;  %2409 = vmatprep.subr.bf16.mxu1 %v2555_v54  ;;  %v666_v27 = vmax.f32 %v603_v25, 0.0 }
 0x116   :  { %v682_v29 = vmax.f32 %v607_v26, 0.0  ;;  %v700_v30 = vpack.c.bf16 %v684_v21, %v668_v53 }
 0x118   :  { %2388 = vmatpush3.bf16.msra.mxu0 %v2556_v33  ;;  %2410 = vmatpush3.bf16.msra.mxu1 %v2557_v57  ;;  %v698_v55 = vpack.c.bf16 %v682_v29, %v666_v27 }
 0x119   :  { %2417 = vmatprep.subr.bf16.mxu0 %v2558_v10  ;;  %2439 = vmatprep.subr.bf16.mxu1 %v2559_v38 }
 0x11b   :  { %1930 = vmatmul.mubr.bf16.vlgmr.msra.gmra.mxu0 %v694_v50  ;;  %1971 = vmatmul.mubr.bf16.vlgmr.msra.gmra.mxu1 %v696_v56 }
 0x11c   :  { %2418 = vmatpush3.bf16.msra.mxu0 %v2560_v49  ;;  %2440 = vmatpush3.bf16.msra.mxu1 %v2561_v51 }
 0x11d   :  { %2419 = vmatprep.subr.bf16.mxu0 %v2562_v52  ;;  %2441 = vmatprep.subr.bf16.mxu1 %v2563_v58 }
 0x11e   :  { %2011 = vmatprep.mubr.bf16.mxu0 %v699_v59  ;;  %2052 = vmatprep.mubr.bf16.mxu1 %v701_v60 }
 0x120   :  { %2420 = vmatpush3.bf16.msra.mxu0 %v2564_v61  ;;  %2442 = vmatpush3.bf16.msra.mxu1 %v2565_v62 }
 0x121   :  { %2421 = vmatprep.subr.bf16.mxu0 %v2566_v63  ;;  %2443 = vmatprep.subr.bf16.mxu1 %v2567_v1 }
 0x124   :  { %2422 = vmatpush3.bf16.msra.mxu0 %v2568_v5  ;;  %2444 = vmatpush3.bf16.msra.mxu1 %v2569_v11 }
 0x125   :  { %2423 = vmatprep.subr.bf16.mxu0 %v2570_v12  ;;  %2445 = vmatprep.subr.bf16.mxu1 %v2571_v13 }
 0x128   :  { %2424 = vmatpush3.bf16.msra.mxu0 %v2572_v14  ;;  %2446 = vmatpush3.bf16.msra.mxu1 %v2573_v15 }
 0x129   :  { %2425 = vmatprep.subr.bf16.mxu0 %v2574_v16  ;;  %2447 = vmatprep.subr.bf16.mxu1 %v2575_v17 }
 0x12c   :  { %2426 = vmatpush3.bf16.msra.mxu0 %v2576_v18  ;;  %2448 = vmatpush3.bf16.msra.mxu1 %v2577_v19 }
 0x12d   :  { %2427 = vmatprep.subr.bf16.mxu0 %v2578_v20  ;;  %2449 = vmatprep.subr.bf16.mxu1 %v2579_v40 }
 0x130   :  { %2428 = vmatpush3.bf16.msra.mxu0 %v2580_v42  ;;  %2450 = vmatpush3.bf16.msra.mxu1 %v2581_v23 }
 0x131   :  { %2429 = vmatprep.subr.bf16.mxu0 %v2582_v6  ;;  %2451 = vmatprep.subr.bf16.mxu1 %v2583_v24 }
 0x134   :  { %2430 = vmatpush3.bf16.msra.mxu0 %v2584_v0  ;;  %2452 = vmatpush3.bf16.msra.mxu1 %v2585_v39 }
 0x135   :  { %2431 = vmatprep.subr.bf16.mxu0 %v2586_v4  ;;  %2453 = vmatprep.subr.bf16.mxu1 %v2587_v2 }
 0x138   :  { %2432 = vmatpush3.bf16.msra.mxu0 %v2588_v43  ;;  %2454 = vmatpush3.bf16.msra.mxu1 %v2589_v9 }
 0x13b   :  { %2012 = vmatmul.mubr.bf16.vlgmr.msra.gmra.mxu0 %v698_v55  ;;  %2053 = vmatmul.mubr.bf16.vlgmr.msra.gmra.mxu1 %v700_v30 }
 0x19b   :  { %v2301_v31 = vpop.f32.mrf.mxu0  ;;  %v2323_v54 = vpop.f32.mrf.mxu1 }
 0x19d   :  { %v2302_v8 = vpop.f32.mrf.mxu0  ;;  %v2324_v3 = vpop.f32.mrf.mxu1 }
 0x19e   :  { %v2303_v46 = vadd.f32 %v2302_v8, %v2301_v31  ;;  %v2325_v58 = vadd.f32 %v2324_v3, %v2323_v54  ;;  %v2594_v31 = vld [vmem:[%s3281_s0] sm:$0xff] }
 0x19f   :  { %v2304_v28 = vpop.f32.mrf.mxu0  ;;  %v2326_v32 = vpop.f32.mrf.mxu1 }
 0x1a0   :  { %v1768_v50 = vadd.f32 %v2303_v46, %v2154_v47 }
 0x1a1   :  { %v2305_v33 = vpop.f32.mrf.mxu0  ;;  %v2327_v35 = vpop.f32.mrf.mxu1 }
 0x1a2   :  { %v2306_v51 = vadd.f32 %v2305_v33, %v2304_v28  ;;  %v1809_v60 = vadd.f32 %v2325_v58, %v1768_v50  ;;  %v2328_v1 = vadd.f32 %v2327_v35, %v2326_v32  ;;  %v2595_v28 = vld [vmem:[%s3281_s0 + $0x8] sm:$0xff] }
 0x1a4   :  { %v1771_v61 = vadd.f32 %v2306_v51, %v2154_v47 }
 0x1a6   :  { %v1812_v12 = vadd.f32 %v2328_v1, %v1771_v61  ;;  %v2284_v61 = vld [vmem:[%s3286_s6] ss:$0 sm:$0xff] }
 0x1bb   :  { %v2345_v34 = vpop.f32.mrf.mxu0  ;;  %v2367_v57 = vpop.f32.mrf.mxu1 }
 0x1bd   :  { %v2346_v10 = vpop.f32.mrf.mxu0  ;;  %v2368_v36 = vpop.f32.mrf.mxu1 }
 0x1be   :  { %v2347_v59 = vadd.f32 %v2346_v10, %v2345_v34  ;;  %v2369_v13 = vadd.f32 %v2368_v36, %v2367_v57 }
 0x1bf   :  { %v2348_v37 = vpop.f32.mrf.mxu0  ;;  %v2370_v38 = vpop.f32.mrf.mxu1 }
 0x1c0   :  { %v1850_v5 = vadd.f32 %v2347_v59, %v1809_v60  ;;  %v2283_v59 = vld [vmem:[%s3285_s5] ss:$0 sm:$0xff] }
 0x1c1   :  { %v2349_v45 = vpop.f32.mrf.mxu0  ;;  %v2371_v49 = vpop.f32.mrf.mxu1 }
 0x1c2   :  { %v2350_v11 = vadd.f32 %v2349_v45, %v2348_v37  ;;  %v1891_v17 = vadd.f32 %v2369_v13, %v1850_v5  ;;  %v2372_v19 = vadd.f32 %v2371_v49, %v2370_v38 }
 0x1c4   :  { %v1853_v18 = vadd.f32 %v2350_v11, %v1812_v12 }
 0x1c6   :  { %v1894_v23 = vadd.f32 %v2372_v19, %v1853_v18 }
 0x1db   :  { %v2389_v48 = vpop.f32.mrf.mxu0  ;;  %v2411_v52 = vpop.f32.mrf.mxu1 }
 0x1dd   :  { %v2390_v56 = vpop.f32.mrf.mxu0  ;;  %v2412_v62 = vpop.f32.mrf.mxu1 }
 0x1de   :  { %v2391_v14 = vadd.f32 %v2390_v56, %v2389_v48  ;;  %v2413_v6 = vadd.f32 %v2412_v62, %v2411_v52 }
 0x1df   :  { %v2392_v63 = vpop.f32.mrf.mxu0  ;;  %v2414_v15 = vpop.f32.mrf.mxu1 }
 0x1e0   :  { %v1932_v20 = vadd.f32 %v2391_v14, %v1891_v17 }
 0x1e1   :  { %v2393_v16 = vpop.f32.mrf.mxu0  ;;  %v2415_v42 = vpop.f32.mrf.mxu1 }
 0x1e2   :  { %v2394_v40 = vadd.f32 %v2393_v16, %v2392_v63  ;;  %v1973_v0 = vadd.f32 %v2413_v6, %v1932_v20  ;;  %v2416_v7 = vadd.f32 %v2415_v42, %v2414_v15 }
 0x1e4   :  { %v1935_v25 = vadd.f32 %v2394_v40, %v1894_v23 }
 0x1e6   :  { %v1976_v29 = vadd.f32 %v2416_v7, %v1935_v25 }
 0x1fb   :  { %v2433_v22 = vpop.f32.mrf.mxu0  ;;  %v2455_v41 = vpop.f32.mrf.mxu1 }
 0x1fd   :  { %v2434_v24 = vpop.f32.mrf.mxu0  ;;  %v2456_v39 = vpop.f32.mrf.mxu1 }
 0x1fe   :  { %v2435_v26 = vadd.f32 %v2434_v24, %v2433_v22  ;;  %v2457_v2 = vadd.f32 %v2456_v39, %v2455_v41 }
 0x1ff   :  { %v2436_v4 = vpop.f32.mrf.mxu0  ;;  %v2458_v43 = vpop.f32.mrf.mxu1 }
 0x200   :  { %v2014_v44 = vadd.f32 %v2435_v26, %v1973_v0 }
 0x201   :  { %v2437_v27 = vpop.f32.mrf.mxu0  ;;  %v2459_v21 = vpop.f32.mrf.mxu1 }
 0x202   :  { %v2055_v9 = vadd.f32 %v2457_v2, %v2014_v44  ;;  %v2438_v53 = vadd.f32 %v2437_v27, %v2436_v4  ;;  %v2460_v30 = vadd.f32 %v2459_v21, %v2458_v43 }
 0x204   :  { %v2017_v55 = vadd.f32 %v2438_v53, %v1976_v29  ;;  %v2061_v54 = vadd.f32 %v2594_v31, %v2055_v9 }
 0x206   :  { %v2058_v8 = vadd.f32 %v2460_v30, %v2017_v55  ;;  %v2063_v3 = vsel %vm306_vm0, %v2061_v54, 0.0 }
 0x207   :  { %2064 = vadd.xlane.f32.xlu0 %v2063_v3 }
 0x208   :  { %v2062_v32 = vadd.f32 %v2595_v28, %v2058_v8 }
 0x20a   :  { %v2066_v33 = vsel %vm306_vm0, %v2062_v32, 0.0 }
 0x20b   :  { %2067 = vadd.xlane.f32.xlu0 %v2066_v33 }
 0x290   :  { %v2065_v34 = vpop.xlane.xlu0 %2064 }
 0x291   :  { %v2070_v35 = vmul.f32 0.03125, %v2065_v34 }
 0x293   :  { %v2072_v57 = vsub.f32 %v2061_v54, %v2070_v35 }
 0x294   :  { %v2068_v10 = vpop.xlane.xlu0 %2067 }
 0x295   :  { %v2071_v36 = vmul.f32 0.03125, %v2068_v10  ;;  %v2074_v37 = vmul.f32 %v2072_v57, %v2072_v57 }
 0x297   :  { %v2073_v38 = vsub.f32 %v2062_v32, %v2071_v36  ;;  %v2076_v45 = vsel %vm306_vm0, %v2074_v37, 0.0 }
 0x298   :  { %2077 = vadd.xlane.f32.xlu1 %v2076_v45 }
 0x299   :  { %v2075_v46 = vmul.f32 %v2073_v38, %v2073_v38 }
 0x29b   :  { %v2079_v47 = vsel %vm306_vm0, %v2075_v46, 0.0 }
 0x29c   :  { %2080 = vadd.xlane.f32.xlu1 %v2079_v47 }
 0x321   :  { %v2078_v48 = vpop.xlane.xlu1 %2077 }
 0x322   :  { %v2082_v49 = vmul.f32 0.03125, %v2078_v48 }
 0x324   :  { %v2084_v50 = vadd.f32 1e-05, %v2082_v49 }
 0x325   :  { %v2081_v51 = vpop.xlane.xlu1 %2080 }
 0x326   :  { %2590 = vrsqrt.f32 %v2084_v50  ;;  %v2083_v52 = vmul.f32 0.03125, %v2081_v51 }
 0x328   :  { %v2085_v56 = vadd.f32 1e-05, %v2083_v52 }
 0x32a   :  { %2592 = vrsqrt.f32 %v2085_v56 }
 0x333   :  { %v2591_v58 = vpop.eup %2590 }
 0x334   :  { %v2088_v60 = vmul.f32 %v2591_v58, %v2072_v57 }
 0x336   :  { %v2097_v62 = vmul.f32 %v2283_v59, %v2088_v60 }
 0x337   :  { %v2593_v63 = vpop.eup %2592 }
 0x338   :  { %v2106_v1 = vadd.f32 %v2284_v61, %v2097_v62  ;;  %v2089_v5 = vmul.f32 %v2593_v63, %v2073_v38 }
 0x33a   :  { %2108 = vst.msk [vmem:[%s3287_s7] sm:$0xff] %vm306_vm0, %v2106_v1  ;;  %v2098_v11 = vmul.f32 %v2283_v59, %v2089_v5 }
 0x33c   :  { %v2107_v12 = vadd.f32 %v2284_v61, %v2098_v11 }
 0x33e   :  { %2109 = vst.msk [vmem:[%s3287_s7 + $0x8] sm:$0xff] %vm306_vm0, %v2107_v12 }

</bundles_post_ra>
